<compile_context>
chip_gen: v5e
topology: v5e:2x2
jax: 0.10.0
libtpu: 0.0.40
codegen_flags: <defaults>
</compile_context>

<pallas_src>
import numpy as np
import jax
import jax.numpy as jnp
from jax import lax
from jax.experimental import pallas as pl
from jax.experimental.pallas import tpu as pltpu

# ----- small, shape-consistent hyper-parameters -----
DIM = 128          # "dim" (768 in the original)
WINDOW = 2         # "window" (11 in the original); kernel size K = 2*window+1
K = 2 * WINDOW + 1
LAYER_CNN = 3
LAYER_OUT = 3
N_WORD = 25
B = 2
L = 16             # protein sequence length
N_NODES = 6        # ligand nodes per graph
OUT_PAD = 128      # lane-dense padded width for the 2-logit interaction head


def cpi_kernel(conv_w_ref,            # SMEM (LAYER_CNN*K*K,)  flattened conv weights
               conv_b_ref,            # SMEM (LAYER_CNN,)      conv biases
               nodes_ref,             # VMEM (B, N_NODES, D)   ligand node embeddings
               words_ref,             # VMEM (B, L, D)         protein word vectors
               wa_ref, ba_ref,        # (D, D), (1, D)
               wout_ref, bout_ref,    # (LAYER_OUT, 2D, 2D), (LAYER_OUT, 1, 2D)
               wint_ref, bint_ref,    # (2D, OUT_PAD), (1, OUT_PAD)  (zero-padded)
               out_ref,               # (B, OUT_PAD)
               pad_ref):              # scratch (B, L + 2*WINDOW, D)
    # ---- ligand: global mean pooling over graph nodes ----
    compound = jnp.mean(nodes_ref[...], axis=1)                        # (B, D)

    # ---- attention_cnn: stacked Conv2d(1->1, KxK, same padding) + ReLU ----
    # dy shifts via zero-padded scratch rows; dx shifts via lane roll + mask.
    pad_ref[...] = jnp.zeros_like(pad_ref)
    lane = lax.broadcasted_iota(jnp.int32, (B, L, DIM), 2)
    edge_mask = {}                                                     # hoisted, reused by all layers
    for s in range(-WINDOW, WINDOW + 1):
        if s == 0:
            continue
        edge_mask[s] = (lane < (DIM - s)) if s > 0 else (lane >= (-s))

    xs = words_ref[...]                                                # (B, L, D)
    for layer in range(LAYER_CNN):
        pad_ref[:, WINDOW:WINDOW + L, :] = xs                          # interior; borders stay zero
        acc = jnp.zeros((B, L, DIM), jnp.float32)
        for dy in range(K):
            rows = pad_ref[:, dy:dy + L, :]                            # (B, L, D), hoisted per dy
            for dx in range(K):
                s = dx - WINDOW
                w = conv_w_ref[layer * K * K + dy * K + dx]            # SMEM scalar
                if s == 0:
                    tap = rows
                else:
                    rolled = pltpu.roll(rows, (-s) % DIM, axis=2)      # tap[..., j] = rows[..., j+s]
                    tap = jnp.where(edge_mask[s], rolled, 0.0)
                acc = acc + w * tap
        xs = jnp.maximum(acc + conv_b_ref[layer], 0.0)

    # ---- attention between compound vector and CNN features (no transposes) ----
    wa = wa_ref[...]
    ba = ba_ref[...]
    h = jnp.maximum(jnp.dot(compound, wa,
                            preferred_element_type=jnp.float32) + ba, 0.0)        # (B, D)
    hs2 = jnp.maximum(jnp.dot(xs.reshape(B * L, DIM), wa,
                              preferred_element_type=jnp.float32) + ba, 0.0)      # (B*L, D)
    hs = hs2.reshape(B, L, DIM)
    att = jnp.tanh(jnp.sum(hs * h[:, None, :], axis=2, keepdims=True))            # (B, L, 1)
    ys = att * hs                                                                  # (B, L, D)
    protein = jnp.mean(ys, axis=1)                                                 # (B, D)

    # ---- concat + output MLP + interaction head (batched, M = B) ----
    cat = jnp.concatenate([compound, protein], axis=1)                 # (B, 2D)
    for j in range(LAYER_OUT):
        cat = jnp.maximum(jnp.dot(cat, wout_ref[j],
                                  preferred_element_type=jnp.float32) + bout_ref[j], 0.0)
    out_ref[...] = jnp.dot(cat, wint_ref[...],
                           preferred_element_type=jnp.float32) + bint_ref[...]     # (B, OUT_PAD)


def build_params(key):
    ks = jax.random.split(key, 9)
    p = {}
    p['embed'] = jax.random.normal(ks[0], (N_WORD, DIM), jnp.float32) * 0.1
    p['conv_w'] = jax.random.normal(ks[1], (LAYER_CNN, K, K), jnp.float32) * (1.0 / K)
    p['conv_b'] = jax.random.normal(ks[2], (LAYER_CNN,), jnp.float32) * 0.1
    p['wa'] = jax.random.normal(ks[3], (DIM, DIM), jnp.float32) / jnp.sqrt(DIM)
    p['ba'] = jax.random.normal(ks[4], (DIM,), jnp.float32) * 0.1
    p['wout'] = jax.random.normal(ks[5], (LAYER_OUT, 2 * DIM, 2 * DIM), jnp.float32) / jnp.sqrt(2 * DIM)
    p['bout'] = jax.random.normal(ks[6], (LAYER_OUT, 2 * DIM), jnp.float32) * 0.1
    p['wint'] = jax.random.normal(ks[7], (2 * DIM, 2), jnp.float32) / jnp.sqrt(2 * DIM)
    p['bint'] = jax.random.normal(ks[8], (2,), jnp.float32) * 0.1
    return p


def cpi_forward(node_feats, words, params):
    word_vec = params['embed'][words]                       # embedding lookup (glue), (B, L, D)
    conv_w_flat = params['conv_w'].reshape(-1)              # (LAYER_CNN*K*K,) -> SMEM
    ba = params['ba'][None, :]
    bout = params['bout'][:, None, :]
    # lane-dense interaction head: pad (2D, 2) -> (2D, 128), logits sliced after the call
    wint_p = jnp.zeros((2 * DIM, OUT_PAD), jnp.float32).at[:, :2].set(params['wint'])
    bint_p = jnp.zeros((1, OUT_PAD), jnp.float32).at[0, :2].set(params['bint'])

    vmem = pl.BlockSpec(memory_space=pltpu.MemorySpace.VMEM)
    smem = pl.BlockSpec(memory_space=pltpu.MemorySpace.SMEM)

    out = pl.pallas_call(
        cpi_kernel,
        out_shape=jax.ShapeDtypeStruct((B, OUT_PAD), jnp.float32),
        in_specs=[smem, smem,            # conv weights / biases (scalars)
                  vmem, vmem,            # ligand nodes, word vectors
                  vmem, vmem,            # W_attention, b_attention
                  vmem, vmem,            # W_out, b_out
                  vmem, vmem],           # W_interaction (padded), b_interaction (padded)
        out_specs=vmem,
        scratch_shapes=[pltpu.VMEM((B, L + 2 * WINDOW, DIM), jnp.float32)],
    )(conv_w_flat, params['conv_b'], node_feats, word_vec,
      params['wa'], ba, params['wout'], bout, wint_p, bint_p)
    return out[:, :2]                                       # (B, 2)


def reference(node_feats, words, params):
    compound = jnp.mean(node_feats, axis=1)                 # (B, D)
    xs = params['embed'][words]                             # (B, L, D)
    x4 = xs[:, None, :, :]                                  # NCHW
    for l in range(LAYER_CNN):
        w = params['conv_w'][l][None, None]                 # OIHW (1,1,K,K)
        x4 = lax.conv_general_dilated(
            x4, w, window_strides=(1, 1),
            padding=[(WINDOW, WINDOW), (WINDOW, WINDOW)],
            dimension_numbers=('NCHW', 'OIHW', 'NCHW'))
        x4 = jnp.maximum(x4 + params['conv_b'][l], 0.0)
    xs = x4[:, 0]
    h = jnp.maximum(compound @ params['wa'] + params['ba'], 0.0)
    hs = jnp.maximum(xs @ params['wa'] + params['ba'], 0.0)
    att = jnp.tanh(jnp.einsum('bd,bld->bl', h, hs))
    ys = att[..., None] * hs
    protein = jnp.mean(ys, axis=1)
    cat = jnp.concatenate([compound, protein], axis=1)
    for j in range(LAYER_OUT):
        cat = jnp.maximum(cat @ params['wout'][j] + params['bout'][j], 0.0)
    return cat @ params['wint'] + params['bint']


if __name__ == "__main__":
    key = jax.random.PRNGKey(0)
    kp, kn, kw = jax.random.split(key, 3)
    params = build_params(kp)
    node_feats = jax.random.normal(kn, (B, N_NODES, DIM), jnp.float32)
    words = jax.random.randint(kw, (B, L), 0, N_WORD)

    out = cpi_forward(node_feats, words, params)
    out = jax.block_until_ready(out)
    assert out.shape == (B, 2)

    ref = reference(node_feats, words, params)
    np.testing.assert_allclose(np.asarray(out), np.asarray(ref), rtol=2e-3, atol=2e-3)
    print("KERNEL_OK")
</pallas_src>

<mosaic_0001>
module attributes {stable_mosaic.version = 11 : i64} {
  func.func @cpi_kernel(%arg0: memref<75xf32, #tpu.memory_space<smem>>, %arg1: memref<3xf32, #tpu.memory_space<smem>>, %arg2: memref<2x6x128xf32, #tpu.memory_space<vmem>>, %arg3: memref<2x16x128xf32, #tpu.memory_space<vmem>>, %arg4: memref<128x128xf32, #tpu.memory_space<vmem>>, %arg5: memref<1x128xf32, #tpu.memory_space<vmem>>, %arg6: memref<3x256x256xf32, #tpu.memory_space<vmem>>, %arg7: memref<3x1x256xf32, #tpu.memory_space<vmem>>, %arg8: memref<256x128xf32, #tpu.memory_space<vmem>>, %arg9: memref<1x128xf32, #tpu.memory_space<vmem>>, %arg10: memref<2x128xf32, #tpu.memory_space<vmem>>, %arg11: memref<2x20x128xf32, #tpu.memory_space<vmem>>) attributes {dimension_semantics = [], scalar_prefetch = 0 : i64, scratch_operands = 1 : i64, tpu.core_type = #tpu.core_type<tc>} {
    %c0 = arith.constant 0 : index
    %c0_0 = arith.constant 0 : index
    %c0_1 = arith.constant 0 : index
    %0 = vector.load %arg2[%c0, %c0_0, %c0_1] : memref<2x6x128xf32, #tpu.memory_space<vmem>>, vector<2x6x128xf32>
    %cst = arith.constant dense<0.000000e+00> : vector<2x128xf32>
    %1 = vector.multi_reduction <add>, %0, %cst [1] : vector<2x6x128xf32> to vector<2x128xf32>
    %cst_2 = arith.constant 6.000000e+00 : f32
    %2 = vector.broadcast %cst_2 : f32 to vector<2x128xf32>
    %3 = arith.divf %1, %2 : vector<2x128xf32>
    %cst_3 = arith.constant 0.000000e+00 : f32
    %4 = vector.broadcast %cst_3 : f32 to vector<2x20x128xf32>
    %c0_4 = arith.constant 0 : index
    %c0_5 = arith.constant 0 : index
    %c0_6 = arith.constant 0 : index
    %5 = vector.load %arg11[%c0_4, %c0_5, %c0_6] : memref<2x20x128xf32, #tpu.memory_space<vmem>>, vector<2x20x128xf32>
    tpu.vector_store %arg11[%c0_4, %c0_5, %c0_6], %4 {strides = array<i32>} : memref<2x20x128xf32, #tpu.memory_space<vmem>>, vector<2x20x128xf32>,
    %6 = tpu.iota {dimensions = array<i32: 2>} : vector<2x16x128xi32>
    %c2_i32 = arith.constant 2 : i32
    %7 = vector.broadcast %c2_i32 : i32 to vector<2x16x128xi32>
    %8 = arith.cmpi sge, %6, %7 : vector<2x16x128xi32>
    %c1_i32 = arith.constant 1 : i32
    %9 = vector.broadcast %c1_i32 : i32 to vector<2x16x128xi32>
    %10 = arith.cmpi sge, %6, %9 : vector<2x16x128xi32>
    %c127_i32 = arith.constant 127 : i32
    %11 = vector.broadcast %c127_i32 : i32 to vector<2x16x128xi32>
    %12 = arith.cmpi slt, %6, %11 : vector<2x16x128xi32>
    %c126_i32 = arith.constant 126 : i32
    %13 = vector.broadcast %c126_i32 : i32 to vector<2x16x128xi32>
    %14 = arith.cmpi slt, %6, %13 : vector<2x16x128xi32>
    %c0_7 = arith.constant 0 : index
    %c0_8 = arith.constant 0 : index
    %c0_9 = arith.constant 0 : index
    %15 = vector.load %arg3[%c0_7, %c0_8, %c0_9] : memref<2x16x128xf32, #tpu.memory_space<vmem>>, vector<2x16x128xf32>
    %c0_10 = arith.constant 0 : index
    %c2 = arith.constant 2 : index
    %c0_11 = arith.constant 0 : index
    %16 = vector.load %arg11[%c0_10, %c2, %c0_11] : memref<2x20x128xf32, #tpu.memory_space<vmem>>, vector<2x16x128xf32>
    tpu.vector_store %arg11[%c0_10, %c2, %c0_11], %15 {strides = array<i32>} : memref<2x20x128xf32, #tpu.memory_space<vmem>>, vector<2x16x128xf32>,
    %cst_12 = arith.constant 0.000000e+00 : f32
    %17 = vector.broadcast %cst_12 : f32 to vector<2x16x128xf32>
    %c0_13 = arith.constant 0 : index
    %c0_14 = arith.constant 0 : index
    %c0_15 = arith.constant 0 : index
    %18 = vector.load %arg11[%c0_13, %c0_14, %c0_15] : memref<2x20x128xf32, #tpu.memory_space<vmem>>, vector<2x16x128xf32>
    %c0_16 = arith.constant 0 : index
    %19 = memref.load %arg0[%c0_16] : memref<75xf32, #tpu.memory_space<smem>>
    %c2_i32_17 = arith.constant 2 : i32
    %20 = tpu.dynamic_rotate %18 by %c2_i32_17 dim 2 : vector<2x16x128xf32>, i32 -> vector<2x16x128xf32>
    %cst_18 = arith.constant 0.000000e+00 : f32
    %21 = vector.broadcast %cst_18 : f32 to vector<2x16x128xf32>
    %22 = arith.select %8, %20, %21 : vector<2x16x128xi1>, vector<2x16x128xf32>
    %23 = vector.broadcast %19 : f32 to vector<2x16x128xf32>
    %24 = arith.mulf %23, %22 : vector<2x16x128xf32>
    %25 = arith.addf %17, %24 : vector<2x16x128xf32>
    %c1 = arith.constant 1 : index
    %26 = memref.load %arg0[%c1] : memref<75xf32, #tpu.memory_space<smem>>
    %c1_i32_19 = arith.constant 1 : i32
    %27 = tpu.dynamic_rotate %18 by %c1_i32_19 dim 2 : vector<2x16x128xf32>, i32 -> vector<2x16x128xf32>
    %cst_20 = arith.constant 0.000000e+00 : f32
    %28 = vector.broadcast %cst_20 : f32 to vector<2x16x128xf32>
    %29 = arith.select %10, %27, %28 : vector<2x16x128xi1>, vector<2x16x128xf32>
    %30 = vector.broadcast %26 : f32 to vector<2x16x128xf32>
    %31 = arith.mulf %30, %29 : vector<2x16x128xf32>
    %32 = arith.addf %25, %31 : vector<2x16x128xf32>
    %c2_21 = arith.constant 2 : index
    %33 = memref.load %arg0[%c2_21] : memref<75xf32, #tpu.memory_space<smem>>
    %34 = vector.broadcast %33 : f32 to vector<2x16x128xf32>
    %35 = arith.mulf %34, %18 : vector<2x16x128xf32>
    %36 = arith.addf %32, %35 : vector<2x16x128xf32>
    %c3 = arith.constant 3 : index
    %37 = memref.load %arg0[%c3] : memref<75xf32, #tpu.memory_space<smem>>
    %c127_i32_22 = arith.constant 127 : i32
    %38 = tpu.dynamic_rotate %18 by %c127_i32_22 dim 2 : vector<2x16x128xf32>, i32 -> vector<2x16x128xf32>
    %cst_23 = arith.constant 0.000000e+00 : f32
    %39 = vector.broadcast %cst_23 : f32 to vector<2x16x128xf32>
    %40 = arith.select %12, %38, %39 : vector<2x16x128xi1>, vector<2x16x128xf32>
    %41 = vector.broadcast %37 : f32 to vector<2x16x128xf32>
    %42 = arith.mulf %41, %40 : vector<2x16x128xf32>
    %43 = arith.addf %36, %42 : vector<2x16x128xf32>
    %c4 = arith.constant 4 : index
    %44 = memref.load %arg0[%c4] : memref<75xf32, #tpu.memory_space<smem>>
    %c126_i32_24 = arith.constant 126 : i32
    %45 = tpu.dynamic_rotate %18 by %c126_i32_24 dim 2 : vector<2x16x128xf32>, i32 -> vector<2x16x128xf32>
    %cst_25 = arith.constant 0.000000e+00 : f32
    %46 = vector.broadcast %cst_25 : f32 to vector<2x16x128xf32>
    %47 = arith.select %14, %45, %46 : vector<2x16x128xi1>, vector<2x16x128xf32>
    %48 = vector.broadcast %44 : f32 to vector<2x16x128xf32>
    %49 = arith.mulf %48, %47 : vector<2x16x128xf32>
    %50 = arith.addf %43, %49 : vector<2x16x128xf32>
    %c0_26 = arith.constant 0 : index
    %c1_27 = arith.constant 1 : index
    %c0_28 = arith.constant 0 : index
    %51 = vector.load %arg11[%c0_26, %c1_27, %c0_28] : memref<2x20x128xf32, #tpu.memory_space<vmem>>, vector<2x16x128xf32>
    %c5 = arith.constant 5 : index
    %52 = memref.load %arg0[%c5] : memref<75xf32, #tpu.memory_space<smem>>
    %c2_i32_29 = arith.constant 2 : i32
    %53 = tpu.dynamic_rotate %51 by %c2_i32_29 dim 2 : vector<2x16x128xf32>, i32 -> vector<2x16x128xf32>
    %cst_30 = arith.constant 0.000000e+00 : f32
    %54 = vector.broadcast %cst_30 : f32 to vector<2x16x128xf32>
    %55 = arith.select %8, %53, %54 : vector<2x16x128xi1>, vector<2x16x128xf32>
    %56 = vector.broadcast %52 : f32 to vector<2x16x128xf32>
    %57 = arith.mulf %56, %55 : vector<2x16x128xf32>
    %58 = arith.addf %50, %57 : vector<2x16x128xf32>
    %c6 = arith.constant 6 : index
    %59 = memref.load %arg0[%c6] : memref<75xf32, #tpu.memory_space<smem>>
    %c1_i32_31 = arith.constant 1 : i32
    %60 = tpu.dynamic_rotate %51 by %c1_i32_31 dim 2 : vector<2x16x128xf32>, i32 -> vector<2x16x128xf32>
    %cst_32 = arith.constant 0.000000e+00 : f32
    %61 = vector.broadcast %cst_32 : f32 to vector<2x16x128xf32>
    %62 = arith.select %10, %60, %61 : vector<2x16x128xi1>, vector<2x16x128xf32>
    %63 = vector.broadcast %59 : f32 to vector<2x16x128xf32>
    %64 = arith.mulf %63, %62 : vector<2x16x128xf32>
    %65 = arith.addf %58, %64 : vector<2x16x128xf32>
    %c7 = arith.constant 7 : index
    %66 = memref.load %arg0[%c7] : memref<75xf32, #tpu.memory_space<smem>>
    %67 = vector.broadcast %66 : f32 to vector<2x16x128xf32>
    %68 = arith.mulf %67, %51 : vector<2x16x128xf32>
    %69 = arith.addf %65, %68 : vector<2x16x128xf32>
    %c8 = arith.constant 8 : index
    %70 = memref.load %arg0[%c8] : memref<75xf32, #tpu.memory_space<smem>>
    %c127_i32_33 = arith.constant 127 : i32
    %71 = tpu.dynamic_rotate %51 by %c127_i32_33 dim 2 : vector<2x16x128xf32>, i32 -> vector<2x16x128xf32>
    %cst_34 = arith.constant 0.000000e+00 : f32
    %72 = vector.broadcast %cst_34 : f32 to vector<2x16x128xf32>
    %73 = arith.select %12, %71, %72 : vector<2x16x128xi1>, vector<2x16x128xf32>
    %74 = vector.broadcast %70 : f32 to vector<2x16x128xf32>
    %75 = arith.mulf %74, %73 : vector<2x16x128xf32>
    %76 = arith.addf %69, %75 : vector<2x16x128xf32>
    %c9 = arith.constant 9 : index
    %77 = memref.load %arg0[%c9] : memref<75xf32, #tpu.memory_space<smem>>
    %c126_i32_35 = arith.constant 126 : i32
    %78 = tpu.dynamic_rotate %51 by %c126_i32_35 dim 2 : vector<2x16x128xf32>, i32 -> vector<2x16x128xf32>
    %cst_36 = arith.constant 0.000000e+00 : f32
    %79 = vector.broadcast %cst_36 : f32 to vector<2x16x128xf32>
    %80 = arith.select %14, %78, %79 : vector<2x16x128xi1>, vector<2x16x128xf32>
    %81 = vector.broadcast %77 : f32 to vector<2x16x128xf32>
    %82 = arith.mulf %81, %80 : vector<2x16x128xf32>
    %83 = arith.addf %76, %82 : vector<2x16x128xf32>
    %c0_37 = arith.constant 0 : index
    %c2_38 = arith.constant 2 : index
    %c0_39 = arith.constant 0 : index
    %84 = vector.load %arg11[%c0_37, %c2_38, %c0_39] : memref<2x20x128xf32, #tpu.memory_space<vmem>>, vector<2x16x128xf32>
    %c10 = arith.constant 10 : index
    %85 = memref.load %arg0[%c10] : memref<75xf32, #tpu.memory_space<smem>>
    %c2_i32_40 = arith.constant 2 : i32
    %86 = tpu.dynamic_rotate %84 by %c2_i32_40 dim 2 : vector<2x16x128xf32>, i32 -> vector<2x16x128xf32>
    %cst_41 = arith.constant 0.000000e+00 : f32
    %87 = vector.broadcast %cst_41 : f32 to vector<2x16x128xf32>
    %88 = arith.select %8, %86, %87 : vector<2x16x128xi1>, vector<2x16x128xf32>
    %89 = vector.broadcast %85 : f32 to vector<2x16x128xf32>
    %90 = arith.mulf %89, %88 : vector<2x16x128xf32>
    %91 = arith.addf %83, %90 : vector<2x16x128xf32>
    %c11 = arith.constant 11 : index
    %92 = memref.load %arg0[%c11] : memref<75xf32, #tpu.memory_space<smem>>
    %c1_i32_42 = arith.constant 1 : i32
    %93 = tpu.dynamic_rotate %84 by %c1_i32_42 dim 2 : vector<2x16x128xf32>, i32 -> vector<2x16x128xf32>
    %cst_43 = arith.constant 0.000000e+00 : f32
    %94 = vector.broadcast %cst_43 : f32 to vector<2x16x128xf32>
    %95 = arith.select %10, %93, %94 : vector<2x16x128xi1>, vector<2x16x128xf32>
    %96 = vector.broadcast %92 : f32 to vector<2x16x128xf32>
    %97 = arith.mulf %96, %95 : vector<2x16x128xf32>
    %98 = arith.addf %91, %97 : vector<2x16x128xf32>
    %c12 = arith.constant 12 : index
    %99 = memref.load %arg0[%c12] : memref<75xf32, #tpu.memory_space<smem>>
    %100 = vector.broadcast %99 : f32 to vector<2x16x128xf32>
    %101 = arith.mulf %100, %84 : vector<2x16x128xf32>
    %102 = arith.addf %98, %101 : vector<2x16x128xf32>
    %c13 = arith.constant 13 : index
    %103 = memref.load %arg0[%c13] : memref<75xf32, #tpu.memory_space<smem>>
    %c127_i32_44 = arith.constant 127 : i32
    %104 = tpu.dynamic_rotate %84 by %c127_i32_44 dim 2 : vector<2x16x128xf32>, i32 -> vector<2x16x128xf32>
    %cst_45 = arith.constant 0.000000e+00 : f32
    %105 = vector.broadcast %cst_45 : f32 to vector<2x16x128xf32>
    %106 = arith.select %12, %104, %105 : vector<2x16x128xi1>, vector<2x16x128xf32>
    %107 = vector.broadcast %103 : f32 to vector<2x16x128xf32>
    %108 = arith.mulf %107, %106 : vector<2x16x128xf32>
    %109 = arith.addf %102, %108 : vector<2x16x128xf32>
    %c14 = arith.constant 14 : index
    %110 = memref.load %arg0[%c14] : memref<75xf32, #tpu.memory_space<smem>>
    %c126_i32_46 = arith.constant 126 : i32
    %111 = tpu.dynamic_rotate %84 by %c126_i32_46 dim 2 : vector<2x16x128xf32>, i32 -> vector<2x16x128xf32>
    %cst_47 = arith.constant 0.000000e+00 : f32
    %112 = vector.broadcast %cst_47 : f32 to vector<2x16x128xf32>
    %113 = arith.select %14, %111, %112 : vector<2x16x128xi1>, vector<2x16x128xf32>
    %114 = vector.broadcast %110 : f32 to vector<2x16x128xf32>
    %115 = arith.mulf %114, %113 : vector<2x16x128xf32>
    %116 = arith.addf %109, %115 : vector<2x16x128xf32>
    %c0_48 = arith.constant 0 : index
    %c3_49 = arith.constant 3 : index
    %c0_50 = arith.constant 0 : index
    %117 = vector.load %arg11[%c0_48, %c3_49, %c0_50] : memref<2x20x128xf32, #tpu.memory_space<vmem>>, vector<2x16x128xf32>
    %c15 = arith.constant 15 : index
    %118 = memref.load %arg0[%c15] : memref<75xf32, #tpu.memory_space<smem>>
    %c2_i32_51 = arith.constant 2 : i32
    %119 = tpu.dynamic_rotate %117 by %c2_i32_51 dim 2 : vector<2x16x128xf32>, i32 -> vector<2x16x128xf32>
    %cst_52 = arith.constant 0.000000e+00 : f32
    %120 = vector.broadcast %cst_52 : f32 to vector<2x16x128xf32>
    %121 = arith.select %8, %119, %120 : vector<2x16x128xi1>, vector<2x16x128xf32>
    %122 = vector.broadcast %118 : f32 to vector<2x16x128xf32>
    %123 = arith.mulf %122, %121 : vector<2x16x128xf32>
    %124 = arith.addf %116, %123 : vector<2x16x128xf32>
    %c16 = arith.constant 16 : index
    %125 = memref.load %arg0[%c16] : memref<75xf32, #tpu.memory_space<smem>>
    %c1_i32_53 = arith.constant 1 : i32
    %126 = tpu.dynamic_rotate %117 by %c1_i32_53 dim 2 : vector<2x16x128xf32>, i32 -> vector<2x16x128xf32>
    %cst_54 = arith.constant 0.000000e+00 : f32
    %127 = vector.broadcast %cst_54 : f32 to vector<2x16x128xf32>
    %128 = arith.select %10, %126, %127 : vector<2x16x128xi1>, vector<2x16x128xf32>
    %129 = vector.broadcast %125 : f32 to vector<2x16x128xf32>
    %130 = arith.mulf %129, %128 : vector<2x16x128xf32>
    %131 = arith.addf %124, %130 : vector<2x16x128xf32>
    %c17 = arith.constant 17 : index
    %132 = memref.load %arg0[%c17] : memref<75xf32, #tpu.memory_space<smem>>
    %133 = vector.broadcast %132 : f32 to vector<2x16x128xf32>
    %134 = arith.mulf %133, %117 : vector<2x16x128xf32>
    %135 = arith.addf %131, %134 : vector<2x16x128xf32>
    %c18 = arith.constant 18 : index
    %136 = memref.load %arg0[%c18] : memref<75xf32, #tpu.memory_space<smem>>
    %c127_i32_55 = arith.constant 127 : i32
    %137 = tpu.dynamic_rotate %117 by %c127_i32_55 dim 2 : vector<2x16x128xf32>, i32 -> vector<2x16x128xf32>
    %cst_56 = arith.constant 0.000000e+00 : f32
    %138 = vector.broadcast %cst_56 : f32 to vector<2x16x128xf32>
    %139 = arith.select %12, %137, %138 : vector<2x16x128xi1>, vector<2x16x128xf32>
    %140 = vector.broadcast %136 : f32 to vector<2x16x128xf32>
    %141 = arith.mulf %140, %139 : vector<2x16x128xf32>
    %142 = arith.addf %135, %141 : vector<2x16x128xf32>
    %c19 = arith.constant 19 : index
    %143 = memref.load %arg0[%c19] : memref<75xf32, #tpu.memory_space<smem>>
    %c126_i32_57 = arith.constant 126 : i32
    %144 = tpu.dynamic_rotate %117 by %c126_i32_57 dim 2 : vector<2x16x128xf32>, i32 -> vector<2x16x128xf32>
    %cst_58 = arith.constant 0.000000e+00 : f32
    %145 = vector.broadcast %cst_58 : f32 to vector<2x16x128xf32>
    %146 = arith.select %14, %144, %145 : vector<2x16x128xi1>, vector<2x16x128xf32>
    %147 = vector.broadcast %143 : f32 to vector<2x16x128xf32>
    %148 = arith.mulf %147, %146 : vector<2x16x128xf32>
    %149 = arith.addf %142, %148 : vector<2x16x128xf32>
    %c0_59 = arith.constant 0 : index
    %c4_60 = arith.constant 4 : index
    %c0_61 = arith.constant 0 : index
    %150 = vector.load %arg11[%c0_59, %c4_60, %c0_61] : memref<2x20x128xf32, #tpu.memory_space<vmem>>, vector<2x16x128xf32>
    %c20 = arith.constant 20 : index
    %151 = memref.load %arg0[%c20] : memref<75xf32, #tpu.memory_space<smem>>
    %c2_i32_62 = arith.constant 2 : i32
    %152 = tpu.dynamic_rotate %150 by %c2_i32_62 dim 2 : vector<2x16x128xf32>, i32 -> vector<2x16x128xf32>
    %cst_63 = arith.constant 0.000000e+00 : f32
    %153 = vector.broadcast %cst_63 : f32 to vector<2x16x128xf32>
    %154 = arith.select %8, %152, %153 : vector<2x16x128xi1>, vector<2x16x128xf32>
    %155 = vector.broadcast %151 : f32 to vector<2x16x128xf32>
    %156 = arith.mulf %155, %154 : vector<2x16x128xf32>
    %157 = arith.addf %149, %156 : vector<2x16x128xf32>
    %c21 = arith.constant 21 : index
    %158 = memref.load %arg0[%c21] : memref<75xf32, #tpu.memory_space<smem>>
    %c1_i32_64 = arith.constant 1 : i32
    %159 = tpu.dynamic_rotate %150 by %c1_i32_64 dim 2 : vector<2x16x128xf32>, i32 -> vector<2x16x128xf32>
    %cst_65 = arith.constant 0.000000e+00 : f32
    %160 = vector.broadcast %cst_65 : f32 to vector<2x16x128xf32>
    %161 = arith.select %10, %159, %160 : vector<2x16x128xi1>, vector<2x16x128xf32>
    %162 = vector.broadcast %158 : f32 to vector<2x16x128xf32>
    %163 = arith.mulf %162, %161 : vector<2x16x128xf32>
    %164 = arith.addf %157, %163 : vector<2x16x128xf32>
    %c22 = arith.constant 22 : index
    %165 = memref.load %arg0[%c22] : memref<75xf32, #tpu.memory_space<smem>>
    %166 = vector.broadcast %165 : f32 to vector<2x16x128xf32>
    %167 = arith.mulf %166, %150 : vector<2x16x128xf32>
    %168 = arith.addf %164, %167 : vector<2x16x128xf32>
    %c23 = arith.constant 23 : index
    %169 = memref.load %arg0[%c23] : memref<75xf32, #tpu.memory_space<smem>>
    %c127_i32_66 = arith.constant 127 : i32
    %170 = tpu.dynamic_rotate %150 by %c127_i32_66 dim 2 : vector<2x16x128xf32>, i32 -> vector<2x16x128xf32>
    %cst_67 = arith.constant 0.000000e+00 : f32
    %171 = vector.broadcast %cst_67 : f32 to vector<2x16x128xf32>
    %172 = arith.select %12, %170, %171 : vector<2x16x128xi1>, vector<2x16x128xf32>
    %173 = vector.broadcast %169 : f32 to vector<2x16x128xf32>
    %174 = arith.mulf %173, %172 : vector<2x16x128xf32>
    %175 = arith.addf %168, %174 : vector<2x16x128xf32>
    %c24 = arith.constant 24 : index
    %176 = memref.load %arg0[%c24] : memref<75xf32, #tpu.memory_space<smem>>
    %c126_i32_68 = arith.constant 126 : i32
    %177 = tpu.dynamic_rotate %150 by %c126_i32_68 dim 2 : vector<2x16x128xf32>, i32 -> vector<2x16x128xf32>
    %cst_69 = arith.constant 0.000000e+00 : f32
    %178 = vector.broadcast %cst_69 : f32 to vector<2x16x128xf32>
    %179 = arith.select %14, %177, %178 : vector<2x16x128xi1>, vector<2x16x128xf32>
    %180 = vector.broadcast %176 : f32 to vector<2x16x128xf32>
    %181 = arith.mulf %180, %179 : vector<2x16x128xf32>
    %182 = arith.addf %175, %181 : vector<2x16x128xf32>
    %c0_70 = arith.constant 0 : index
    %183 = memref.load %arg1[%c0_70] : memref<3xf32, #tpu.memory_space<smem>>
    %184 = vector.broadcast %183 : f32 to vector<2x16x128xf32>
    %185 = arith.addf %182, %184 : vector<2x16x128xf32>
    %cst_71 = arith.constant 0.000000e+00 : f32
    %186 = vector.broadcast %cst_71 : f32 to vector<2x16x128xf32>
    %187 = arith.maximumf %185, %186 : vector<2x16x128xf32>
    %c0_72 = arith.constant 0 : index
    %c2_73 = arith.constant 2 : index
    %c0_74 = arith.constant 0 : index
    %188 = vector.load %arg11[%c0_72, %c2_73, %c0_74] : memref<2x20x128xf32, #tpu.memory_space<vmem>>, vector<2x16x128xf32>
    tpu.vector_store %arg11[%c0_72, %c2_73, %c0_74], %187 {strides = array<i32>} : memref<2x20x128xf32, #tpu.memory_space<vmem>>, vector<2x16x128xf32>,
    %cst_75 = arith.constant 0.000000e+00 : f32
    %189 = vector.broadcast %cst_75 : f32 to vector<2x16x128xf32>
    %c0_76 = arith.constant 0 : index
    %c0_77 = arith.constant 0 : index
    %c0_78 = arith.constant 0 : index
    %190 = vector.load %arg11[%c0_76, %c0_77, %c0_78] : memref<2x20x128xf32, #tpu.memory_space<vmem>>, vector<2x16x128xf32>
    %c25 = arith.constant 25 : index
    %191 = memref.load %arg0[%c25] : memref<75xf32, #tpu.memory_space<smem>>
    %c2_i32_79 = arith.constant 2 : i32
    %192 = tpu.dynamic_rotate %190 by %c2_i32_79 dim 2 : vector<2x16x128xf32>, i32 -> vector<2x16x128xf32>
    %cst_80 = arith.constant 0.000000e+00 : f32
    %193 = vector.broadcast %cst_80 : f32 to vector<2x16x128xf32>
    %194 = arith.select %8, %192, %193 : vector<2x16x128xi1>, vector<2x16x128xf32>
    %195 = vector.broadcast %191 : f32 to vector<2x16x128xf32>
    %196 = arith.mulf %195, %194 : vector<2x16x128xf32>
    %197 = arith.addf %189, %196 : vector<2x16x128xf32>
    %c26 = arith.constant 26 : index
    %198 = memref.load %arg0[%c26] : memref<75xf32, #tpu.memory_space<smem>>
    %c1_i32_81 = arith.constant 1 : i32
    %199 = tpu.dynamic_rotate %190 by %c1_i32_81 dim 2 : vector<2x16x128xf32>, i32 -> vector<2x16x128xf32>
    %cst_82 = arith.constant 0.000000e+00 : f32
    %200 = vector.broadcast %cst_82 : f32 to vector<2x16x128xf32>
    %201 = arith.select %10, %199, %200 : vector<2x16x128xi1>, vector<2x16x128xf32>
    %202 = vector.broadcast %198 : f32 to vector<2x16x128xf32>
    %203 = arith.mulf %202, %201 : vector<2x16x128xf32>
    %204 = arith.addf %197, %203 : vector<2x16x128xf32>
    %c27 = arith.constant 27 : index
    %205 = memref.load %arg0[%c27] : memref<75xf32, #tpu.memory_space<smem>>
    %206 = vector.broadcast %205 : f32 to vector<2x16x128xf32>
    %207 = arith.mulf %206, %190 : vector<2x16x128xf32>
    %208 = arith.addf %204, %207 : vector<2x16x128xf32>
    %c28 = arith.constant 28 : index
    %209 = memref.load %arg0[%c28] : memref<75xf32, #tpu.memory_space<smem>>
    %c127_i32_83 = arith.constant 127 : i32
    %210 = tpu.dynamic_rotate %190 by %c127_i32_83 dim 2 : vector<2x16x128xf32>, i32 -> vector<2x16x128xf32>
    %cst_84 = arith.constant 0.000000e+00 : f32
    %211 = vector.broadcast %cst_84 : f32 to vector<2x16x128xf32>
    %212 = arith.select %12, %210, %211 : vector<2x16x128xi1>, vector<2x16x128xf32>
    %213 = vector.broadcast %209 : f32 to vector<2x16x128xf32>
    %214 = arith.mulf %213, %212 : vector<2x16x128xf32>
    %215 = arith.addf %208, %214 : vector<2x16x128xf32>
    %c29 = arith.constant 29 : index
    %216 = memref.load %arg0[%c29] : memref<75xf32, #tpu.memory_space<smem>>
    %c126_i32_85 = arith.constant 126 : i32
    %217 = tpu.dynamic_rotate %190 by %c126_i32_85 dim 2 : vector<2x16x128xf32>, i32 -> vector<2x16x128xf32>
    %cst_86 = arith.constant 0.000000e+00 : f32
    %218 = vector.broadcast %cst_86 : f32 to vector<2x16x128xf32>
    %219 = arith.select %14, %217, %218 : vector<2x16x128xi1>, vector<2x16x128xf32>
    %220 = vector.broadcast %216 : f32 to vector<2x16x128xf32>
    %221 = arith.mulf %220, %219 : vector<2x16x128xf32>
    %222 = arith.addf %215, %221 : vector<2x16x128xf32>
    %c0_87 = arith.constant 0 : index
    %c1_88 = arith.constant 1 : index
    %c0_89 = arith.constant 0 : index
    %223 = vector.load %arg11[%c0_87, %c1_88, %c0_89] : memref<2x20x128xf32, #tpu.memory_space<vmem>>, vector<2x16x128xf32>
    %c30 = arith.constant 30 : index
    %224 = memref.load %arg0[%c30] : memref<75xf32, #tpu.memory_space<smem>>
    %c2_i32_90 = arith.constant 2 : i32
    %225 = tpu.dynamic_rotate %223 by %c2_i32_90 dim 2 : vector<2x16x128xf32>, i32 -> vector<2x16x128xf32>
    %cst_91 = arith.constant 0.000000e+00 : f32
    %226 = vector.broadcast %cst_91 : f32 to vector<2x16x128xf32>
    %227 = arith.select %8, %225, %226 : vector<2x16x128xi1>, vector<2x16x128xf32>
    %228 = vector.broadcast %224 : f32 to vector<2x16x128xf32>
    %229 = arith.mulf %228, %227 : vector<2x16x128xf32>
    %230 = arith.addf %222, %229 : vector<2x16x128xf32>
    %c31 = arith.constant 31 : index
    %231 = memref.load %arg0[%c31] : memref<75xf32, #tpu.memory_space<smem>>
    %c1_i32_92 = arith.constant 1 : i32
    %232 = tpu.dynamic_rotate %223 by %c1_i32_92 dim 2 : vector<2x16x128xf32>, i32 -> vector<2x16x128xf32>
    %cst_93 = arith.constant 0.000000e+00 : f32
    %233 = vector.broadcast %cst_93 : f32 to vector<2x16x128xf32>
    %234 = arith.select %10, %232, %233 : vector<2x16x128xi1>, vector<2x16x128xf32>
    %235 = vector.broadcast %231 : f32 to vector<2x16x128xf32>
    %236 = arith.mulf %235, %234 : vector<2x16x128xf32>
    %237 = arith.addf %230, %236 : vector<2x16x128xf32>
    %c32 = arith.constant 32 : index
    %238 = memref.load %arg0[%c32] : memref<75xf32, #tpu.memory_space<smem>>
    %239 = vector.broadcast %238 : f32 to vector<2x16x128xf32>
    %240 = arith.mulf %239, %223 : vector<2x16x128xf32>
    %241 = arith.addf %237, %240 : vector<2x16x128xf32>
    %c33 = arith.constant 33 : index
    %242 = memref.load %arg0[%c33] : memref<75xf32, #tpu.memory_space<smem>>
    %c127_i32_94 = arith.constant 127 : i32
    %243 = tpu.dynamic_rotate %223 by %c127_i32_94 dim 2 : vector<2x16x128xf32>, i32 -> vector<2x16x128xf32>
    %cst_95 = arith.constant 0.000000e+00 : f32
    %244 = vector.broadcast %cst_95 : f32 to vector<2x16x128xf32>
    %245 = arith.select %12, %243, %244 : vector<2x16x128xi1>, vector<2x16x128xf32>
    %246 = vector.broadcast %242 : f32 to vector<2x16x128xf32>
    %247 = arith.mulf %246, %245 : vector<2x16x128xf32>
    %248 = arith.addf %241, %247 : vector<2x16x128xf32>
    %c34 = arith.constant 34 : index
    %249 = memref.load %arg0[%c34] : memref<75xf32, #tpu.memory_space<smem>>
    %c126_i32_96 = arith.constant 126 : i32
    %250 = tpu.dynamic_rotate %223 by %c126_i32_96 dim 2 : vector<2x16x128xf32>, i32 -> vector<2x16x128xf32>
    %cst_97 = arith.constant 0.000000e+00 : f32
    %251 = vector.broadcast %cst_97 : f32 to vector<2x16x128xf32>
    %252 = arith.select %14, %250, %251 : vector<2x16x128xi1>, vector<2x16x128xf32>
    %253 = vector.broadcast %249 : f32 to vector<2x16x128xf32>
    %254 = arith.mulf %253, %252 : vector<2x16x128xf32>
    %255 = arith.addf %248, %254 : vector<2x16x128xf32>
    %c0_98 = arith.constant 0 : index
    %c2_99 = arith.constant 2 : index
    %c0_100 = arith.constant 0 : index
    %256 = vector.load %arg11[%c0_98, %c2_99, %c0_100] : memref<2x20x128xf32, #tpu.memory_space<vmem>>, vector<2x16x128xf32>
    %c35 = arith.constant 35 : index
    %257 = memref.load %arg0[%c35] : memref<75xf32, #tpu.memory_space<smem>>
    %c2_i32_101 = arith.constant 2 : i32
    %258 = tpu.dynamic_rotate %256 by %c2_i32_101 dim 2 : vector<2x16x128xf32>, i32 -> vector<2x16x128xf32>
    %cst_102 = arith.constant 0.000000e+00 : f32
    %259 = vector.broadcast %cst_102 : f32 to vector<2x16x128xf32>
    %260 = arith.select %8, %258, %259 : vector<2x16x128xi1>, vector<2x16x128xf32>
    %261 = vector.broadcast %257 : f32 to vector<2x16x128xf32>
    %262 = arith.mulf %261, %260 : vector<2x16x128xf32>
    %263 = arith.addf %255, %262 : vector<2x16x128xf32>
    %c36 = arith.constant 36 : index
    %264 = memref.load %arg0[%c36] : memref<75xf32, #tpu.memory_space<smem>>
    %c1_i32_103 = arith.constant 1 : i32
    %265 = tpu.dynamic_rotate %256 by %c1_i32_103 dim 2 : vector<2x16x128xf32>, i32 -> vector<2x16x128xf32>
    %cst_104 = arith.constant 0.000000e+00 : f32
    %266 = vector.broadcast %cst_104 : f32 to vector<2x16x128xf32>
    %267 = arith.select %10, %265, %266 : vector<2x16x128xi1>, vector<2x16x128xf32>
    %268 = vector.broadcast %264 : f32 to vector<2x16x128xf32>
    %269 = arith.mulf %268, %267 : vector<2x16x128xf32>
    %270 = arith.addf %263, %269 : vector<2x16x128xf32>
    %c37 = arith.constant 37 : index
    %271 = memref.load %arg0[%c37] : memref<75xf32, #tpu.memory_space<smem>>
    %272 = vector.broadcast %271 : f32 to vector<2x16x128xf32>
    %273 = arith.mulf %272, %256 : vector<2x16x128xf32>
    %274 = arith.addf %270, %273 : vector<2x16x128xf32>
    %c38 = arith.constant 38 : index
    %275 = memref.load %arg0[%c38] : memref<75xf32, #tpu.memory_space<smem>>
    %c127_i32_105 = arith.constant 127 : i32
    %276 = tpu.dynamic_rotate %256 by %c127_i32_105 dim 2 : vector<2x16x128xf32>, i32 -> vector<2x16x128xf32>
    %cst_106 = arith.constant 0.000000e+00 : f32
    %277 = vector.broadcast %cst_106 : f32 to vector<2x16x128xf32>
    %278 = arith.select %12, %276, %277 : vector<2x16x128xi1>, vector<2x16x128xf32>
    %279 = vector.broadcast %275 : f32 to vector<2x16x128xf32>
    %280 = arith.mulf %279, %278 : vector<2x16x128xf32>
    %281 = arith.addf %274, %280 : vector<2x16x128xf32>
    %c39 = arith.constant 39 : index
    %282 = memref.load %arg0[%c39] : memref<75xf32, #tpu.memory_space<smem>>
    %c126_i32_107 = arith.constant 126 : i32
    %283 = tpu.dynamic_rotate %256 by %c126_i32_107 dim 2 : vector<2x16x128xf32>, i32 -> vector<2x16x128xf32>
    %cst_108 = arith.constant 0.000000e+00 : f32
    %284 = vector.broadcast %cst_108 : f32 to vector<2x16x128xf32>
    %285 = arith.select %14, %283, %284 : vector<2x16x128xi1>, vector<2x16x128xf32>
    %286 = vector.broadcast %282 : f32 to vector<2x16x128xf32>
    %287 = arith.mulf %286, %285 : vector<2x16x128xf32>
    %288 = arith.addf %281, %287 : vector<2x16x128xf32>
    %c0_109 = arith.constant 0 : index
    %c3_110 = arith.constant 3 : index
    %c0_111 = arith.constant 0 : index
    %289 = vector.load %arg11[%c0_109, %c3_110, %c0_111] : memref<2x20x128xf32, #tpu.memory_space<vmem>>, vector<2x16x128xf32>
    %c40 = arith.constant 40 : index
    %290 = memref.load %arg0[%c40] : memref<75xf32, #tpu.memory_space<smem>>
    %c2_i32_112 = arith.constant 2 : i32
    %291 = tpu.dynamic_rotate %289 by %c2_i32_112 dim 2 : vector<2x16x128xf32>, i32 -> vector<2x16x128xf32>
    %cst_113 = arith.constant 0.000000e+00 : f32
    %292 = vector.broadcast %cst_113 : f32 to vector<2x16x128xf32>
    %293 = arith.select %8, %291, %292 : vector<2x16x128xi1>, vector<2x16x128xf32>
    %294 = vector.broadcast %290 : f32 to vector<2x16x128xf32>
    %295 = arith.mulf %294, %293 : vector<2x16x128xf32>
    %296 = arith.addf %288, %295 : vector<2x16x128xf32>
    %c41 = arith.constant 41 : index
    %297 = memref.load %arg0[%c41] : memref<75xf32, #tpu.memory_space<smem>>
    %c1_i32_114 = arith.constant 1 : i32
    %298 = tpu.dynamic_rotate %289 by %c1_i32_114 dim 2 : vector<2x16x128xf32>, i32 -> vector<2x16x128xf32>
    %cst_115 = arith.constant 0.000000e+00 : f32
    %299 = vector.broadcast %cst_115 : f32 to vector<2x16x128xf32>
    %300 = arith.select %10, %298, %299 : vector<2x16x128xi1>, vector<2x16x128xf32>
    %301 = vector.broadcast %297 : f32 to vector<2x16x128xf32>
    %302 = arith.mulf %301, %300 : vector<2x16x128xf32>
    %303 = arith.addf %296, %302 : vector<2x16x128xf32>
    %c42 = arith.constant 42 : index
    %304 = memref.load %arg0[%c42] : memref<75xf32, #tpu.memory_space<smem>>
    %305 = vector.broadcast %304 : f32 to vector<2x16x128xf32>
    %306 = arith.mulf %305, %289 : vector<2x16x128xf32>
    %307 = arith.addf %303, %306 : vector<2x16x128xf32>
    %c43 = arith.constant 43 : index
    %308 = memref.load %arg0[%c43] : memref<75xf32, #tpu.memory_space<smem>>
    %c127_i32_116 = arith.constant 127 : i32
    %309 = tpu.dynamic_rotate %289 by %c127_i32_116 dim 2 : vector<2x16x128xf32>, i32 -> vector<2x16x128xf32>
    %cst_117 = arith.constant 0.000000e+00 : f32
    %310 = vector.broadcast %cst_117 : f32 to vector<2x16x128xf32>
    %311 = arith.select %12, %309, %310 : vector<2x16x128xi1>, vector<2x16x128xf32>
    %312 = vector.broadcast %308 : f32 to vector<2x16x128xf32>
    %313 = arith.mulf %312, %311 : vector<2x16x128xf32>
    %314 = arith.addf %307, %313 : vector<2x16x128xf32>
    %c44 = arith.constant 44 : index
    %315 = memref.load %arg0[%c44] : memref<75xf32, #tpu.memory_space<smem>>
    %c126_i32_118 = arith.constant 126 : i32
    %316 = tpu.dynamic_rotate %289 by %c126_i32_118 dim 2 : vector<2x16x128xf32>, i32 -> vector<2x16x128xf32>
    %cst_119 = arith.constant 0.000000e+00 : f32
    %317 = vector.broadcast %cst_119 : f32 to vector<2x16x128xf32>
    %318 = arith.select %14, %316, %317 : vector<2x16x128xi1>, vector<2x16x128xf32>
    %319 = vector.broadcast %315 : f32 to vector<2x16x128xf32>
    %320 = arith.mulf %319, %318 : vector<2x16x128xf32>
    %321 = arith.addf %314, %320 : vector<2x16x128xf32>
    %c0_120 = arith.constant 0 : index
    %c4_121 = arith.constant 4 : index
    %c0_122 = arith.constant 0 : index
    %322 = vector.load %arg11[%c0_120, %c4_121, %c0_122] : memref<2x20x128xf32, #tpu.memory_space<vmem>>, vector<2x16x128xf32>
    %c45 = arith.constant 45 : index
    %323 = memref.load %arg0[%c45] : memref<75xf32, #tpu.memory_space<smem>>
    %c2_i32_123 = arith.constant 2 : i32
    %324 = tpu.dynamic_rotate %322 by %c2_i32_123 dim 2 : vector<2x16x128xf32>, i32 -> vector<2x16x128xf32>
    %cst_124 = arith.constant 0.000000e+00 : f32
    %325 = vector.broadcast %cst_124 : f32 to vector<2x16x128xf32>
    %326 = arith.select %8, %324, %325 : vector<2x16x128xi1>, vector<2x16x128xf32>
    %327 = vector.broadcast %323 : f32 to vector<2x16x128xf32>
    %328 = arith.mulf %327, %326 : vector<2x16x128xf32>
    %329 = arith.addf %321, %328 : vector<2x16x128xf32>
    %c46 = arith.constant 46 : index
    %330 = memref.load %arg0[%c46] : memref<75xf32, #tpu.memory_space<smem>>
    %c1_i32_125 = arith.constant 1 : i32
    %331 = tpu.dynamic_rotate %322 by %c1_i32_125 dim 2 : vector<2x16x128xf32>, i32 -> vector<2x16x128xf32>
    %cst_126 = arith.constant 0.000000e+00 : f32
    %332 = vector.broadcast %cst_126 : f32 to vector<2x16x128xf32>
    %333 = arith.select %10, %331, %332 : vector<2x16x128xi1>, vector<2x16x128xf32>
    %334 = vector.broadcast %330 : f32 to vector<2x16x128xf32>
    %335 = arith.mulf %334, %333 : vector<2x16x128xf32>
    %336 = arith.addf %329, %335 : vector<2x16x128xf32>
    %c47 = arith.constant 47 : index
    %337 = memref.load %arg0[%c47] : memref<75xf32, #tpu.memory_space<smem>>
    %338 = vector.broadcast %337 : f32 to vector<2x16x128xf32>
    %339 = arith.mulf %338, %322 : vector<2x16x128xf32>
    %340 = arith.addf %336, %339 : vector<2x16x128xf32>
    %c48 = arith.constant 48 : index
    %341 = memref.load %arg0[%c48] : memref<75xf32, #tpu.memory_space<smem>>
    %c127_i32_127 = arith.constant 127 : i32
    %342 = tpu.dynamic_rotate %322 by %c127_i32_127 dim 2 : vector<2x16x128xf32>, i32 -> vector<2x16x128xf32>
    %cst_128 = arith.constant 0.000000e+00 : f32
    %343 = vector.broadcast %cst_128 : f32 to vector<2x16x128xf32>
    %344 = arith.select %12, %342, %343 : vector<2x16x128xi1>, vector<2x16x128xf32>
    %345 = vector.broadcast %341 : f32 to vector<2x16x128xf32>
    %346 = arith.mulf %345, %344 : vector<2x16x128xf32>
    %347 = arith.addf %340, %346 : vector<2x16x128xf32>
    %c49 = arith.constant 49 : index
    %348 = memref.load %arg0[%c49] : memref<75xf32, #tpu.memory_space<smem>>
    %c126_i32_129 = arith.constant 126 : i32
    %349 = tpu.dynamic_rotate %322 by %c126_i32_129 dim 2 : vector<2x16x128xf32>, i32 -> vector<2x16x128xf32>
    %cst_130 = arith.constant 0.000000e+00 : f32
    %350 = vector.broadcast %cst_130 : f32 to vector<2x16x128xf32>
    %351 = arith.select %14, %349, %350 : vector<2x16x128xi1>, vector<2x16x128xf32>
    %352 = vector.broadcast %348 : f32 to vector<2x16x128xf32>
    %353 = arith.mulf %352, %351 : vector<2x16x128xf32>
    %354 = arith.addf %347, %353 : vector<2x16x128xf32>
    %c1_131 = arith.constant 1 : index
    %355 = memref.load %arg1[%c1_131] : memref<3xf32, #tpu.memory_space<smem>>
    %356 = vector.broadcast %355 : f32 to vector<2x16x128xf32>
    %357 = arith.addf %354, %356 : vector<2x16x128xf32>
    %cst_132 = arith.constant 0.000000e+00 : f32
    %358 = vector.broadcast %cst_132 : f32 to vector<2x16x128xf32>
    %359 = arith.maximumf %357, %358 : vector<2x16x128xf32>
    %c0_133 = arith.constant 0 : index
    %c2_134 = arith.constant 2 : index
    %c0_135 = arith.constant 0 : index
    %360 = vector.load %arg11[%c0_133, %c2_134, %c0_135] : memref<2x20x128xf32, #tpu.memory_space<vmem>>, vector<2x16x128xf32>
    tpu.vector_store %arg11[%c0_133, %c2_134, %c0_135], %359 {strides = array<i32>} : memref<2x20x128xf32, #tpu.memory_space<vmem>>, vector<2x16x128xf32>,
    %cst_136 = arith.constant 0.000000e+00 : f32
    %361 = vector.broadcast %cst_136 : f32 to vector<2x16x128xf32>
    %c0_137 = arith.constant 0 : index
    %c0_138 = arith.constant 0 : index
    %c0_139 = arith.constant 0 : index
    %362 = vector.load %arg11[%c0_137, %c0_138, %c0_139] : memref<2x20x128xf32, #tpu.memory_space<vmem>>, vector<2x16x128xf32>
    %c50 = arith.constant 50 : index
    %363 = memref.load %arg0[%c50] : memref<75xf32, #tpu.memory_space<smem>>
    %c2_i32_140 = arith.constant 2 : i32
    %364 = tpu.dynamic_rotate %362 by %c2_i32_140 dim 2 : vector<2x16x128xf32>, i32 -> vector<2x16x128xf32>
    %cst_141 = arith.constant 0.000000e+00 : f32
    %365 = vector.broadcast %cst_141 : f32 to vector<2x16x128xf32>
    %366 = arith.select %8, %364, %365 : vector<2x16x128xi1>, vector<2x16x128xf32>
    %367 = vector.broadcast %363 : f32 to vector<2x16x128xf32>
    %368 = arith.mulf %367, %366 : vector<2x16x128xf32>
    %369 = arith.addf %361, %368 : vector<2x16x128xf32>
    %c51 = arith.constant 51 : index
    %370 = memref.load %arg0[%c51] : memref<75xf32, #tpu.memory_space<smem>>
    %c1_i32_142 = arith.constant 1 : i32
    %371 = tpu.dynamic_rotate %362 by %c1_i32_142 dim 2 : vector<2x16x128xf32>, i32 -> vector<2x16x128xf32>
    %cst_143 = arith.constant 0.000000e+00 : f32
    %372 = vector.broadcast %cst_143 : f32 to vector<2x16x128xf32>
    %373 = arith.select %10, %371, %372 : vector<2x16x128xi1>, vector<2x16x128xf32>
    %374 = vector.broadcast %370 : f32 to vector<2x16x128xf32>
    %375 = arith.mulf %374, %373 : vector<2x16x128xf32>
    %376 = arith.addf %369, %375 : vector<2x16x128xf32>
    %c52 = arith.constant 52 : index
    %377 = memref.load %arg0[%c52] : memref<75xf32, #tpu.memory_space<smem>>
    %378 = vector.broadcast %377 : f32 to vector<2x16x128xf32>
    %379 = arith.mulf %378, %362 : vector<2x16x128xf32>
    %380 = arith.addf %376, %379 : vector<2x16x128xf32>
    %c53 = arith.constant 53 : index
    %381 = memref.load %arg0[%c53] : memref<75xf32, #tpu.memory_space<smem>>
    %c127_i32_144 = arith.constant 127 : i32
    %382 = tpu.dynamic_rotate %362 by %c127_i32_144 dim 2 : vector<2x16x128xf32>, i32 -> vector<2x16x128xf32>
    %cst_145 = arith.constant 0.000000e+00 : f32
    %383 = vector.broadcast %cst_145 : f32 to vector<2x16x128xf32>
    %384 = arith.select %12, %382, %383 : vector<2x16x128xi1>, vector<2x16x128xf32>
    %385 = vector.broadcast %381 : f32 to vector<2x16x128xf32>
    %386 = arith.mulf %385, %384 : vector<2x16x128xf32>
    %387 = arith.addf %380, %386 : vector<2x16x128xf32>
    %c54 = arith.constant 54 : index
    %388 = memref.load %arg0[%c54] : memref<75xf32, #tpu.memory_space<smem>>
    %c126_i32_146 = arith.constant 126 : i32
    %389 = tpu.dynamic_rotate %362 by %c126_i32_146 dim 2 : vector<2x16x128xf32>, i32 -> vector<2x16x128xf32>
    %cst_147 = arith.constant 0.000000e+00 : f32
    %390 = vector.broadcast %cst_147 : f32 to vector<2x16x128xf32>
    %391 = arith.select %14, %389, %390 : vector<2x16x128xi1>, vector<2x16x128xf32>
    %392 = vector.broadcast %388 : f32 to vector<2x16x128xf32>
    %393 = arith.mulf %392, %391 : vector<2x16x128xf32>
    %394 = arith.addf %387, %393 : vector<2x16x128xf32>
    %c0_148 = arith.constant 0 : index
    %c1_149 = arith.constant 1 : index
    %c0_150 = arith.constant 0 : index
    %395 = vector.load %arg11[%c0_148, %c1_149, %c0_150] : memref<2x20x128xf32, #tpu.memory_space<vmem>>, vector<2x16x128xf32>
    %c55 = arith.constant 55 : index
    %396 = memref.load %arg0[%c55] : memref<75xf32, #tpu.memory_space<smem>>
    %c2_i32_151 = arith.constant 2 : i32
    %397 = tpu.dynamic_rotate %395 by %c2_i32_151 dim 2 : vector<2x16x128xf32>, i32 -> vector<2x16x128xf32>
    %cst_152 = arith.constant 0.000000e+00 : f32
    %398 = vector.broadcast %cst_152 : f32 to vector<2x16x128xf32>
    %399 = arith.select %8, %397, %398 : vector<2x16x128xi1>, vector<2x16x128xf32>
    %400 = vector.broadcast %396 : f32 to vector<2x16x128xf32>
    %401 = arith.mulf %400, %399 : vector<2x16x128xf32>
    %402 = arith.addf %394, %401 : vector<2x16x128xf32>
    %c56 = arith.constant 56 : index
    %403 = memref.load %arg0[%c56] : memref<75xf32, #tpu.memory_space<smem>>
    %c1_i32_153 = arith.constant 1 : i32
    %404 = tpu.dynamic_rotate %395 by %c1_i32_153 dim 2 : vector<2x16x128xf32>, i32 -> vector<2x16x128xf32>
    %cst_154 = arith.constant 0.000000e+00 : f32
    %405 = vector.broadcast %cst_154 : f32 to vector<2x16x128xf32>
    %406 = arith.select %10, %404, %405 : vector<2x16x128xi1>, vector<2x16x128xf32>
    %407 = vector.broadcast %403 : f32 to vector<2x16x128xf32>
    %408 = arith.mulf %407, %406 : vector<2x16x128xf32>
    %409 = arith.addf %402, %408 : vector<2x16x128xf32>
    %c57 = arith.constant 57 : index
    %410 = memref.load %arg0[%c57] : memref<75xf32, #tpu.memory_space<smem>>
    %411 = vector.broadcast %410 : f32 to vector<2x16x128xf32>
    %412 = arith.mulf %411, %395 : vector<2x16x128xf32>
    %413 = arith.addf %409, %412 : vector<2x16x128xf32>
    %c58 = arith.constant 58 : index
    %414 = memref.load %arg0[%c58] : memref<75xf32, #tpu.memory_space<smem>>
    %c127_i32_155 = arith.constant 127 : i32
    %415 = tpu.dynamic_rotate %395 by %c127_i32_155 dim 2 : vector<2x16x128xf32>, i32 -> vector<2x16x128xf32>
    %cst_156 = arith.constant 0.000000e+00 : f32
    %416 = vector.broadcast %cst_156 : f32 to vector<2x16x128xf32>
    %417 = arith.select %12, %415, %416 : vector<2x16x128xi1>, vector<2x16x128xf32>
    %418 = vector.broadcast %414 : f32 to vector<2x16x128xf32>
    %419 = arith.mulf %418, %417 : vector<2x16x128xf32>
    %420 = arith.addf %413, %419 : vector<2x16x128xf32>
    %c59 = arith.constant 59 : index
    %421 = memref.load %arg0[%c59] : memref<75xf32, #tpu.memory_space<smem>>
    %c126_i32_157 = arith.constant 126 : i32
    %422 = tpu.dynamic_rotate %395 by %c126_i32_157 dim 2 : vector<2x16x128xf32>, i32 -> vector<2x16x128xf32>
    %cst_158 = arith.constant 0.000000e+00 : f32
    %423 = vector.broadcast %cst_158 : f32 to vector<2x16x128xf32>
    %424 = arith.select %14, %422, %423 : vector<2x16x128xi1>, vector<2x16x128xf32>
    %425 = vector.broadcast %421 : f32 to vector<2x16x128xf32>
    %426 = arith.mulf %425, %424 : vector<2x16x128xf32>
    %427 = arith.addf %420, %426 : vector<2x16x128xf32>
    %c0_159 = arith.constant 0 : index
    %c2_160 = arith.constant 2 : index
    %c0_161 = arith.constant 0 : index
    %428 = vector.load %arg11[%c0_159, %c2_160, %c0_161] : memref<2x20x128xf32, #tpu.memory_space<vmem>>, vector<2x16x128xf32>
    %c60 = arith.constant 60 : index
    %429 = memref.load %arg0[%c60] : memref<75xf32, #tpu.memory_space<smem>>
    %c2_i32_162 = arith.constant 2 : i32
    %430 = tpu.dynamic_rotate %428 by %c2_i32_162 dim 2 : vector<2x16x128xf32>, i32 -> vector<2x16x128xf32>
    %cst_163 = arith.constant 0.000000e+00 : f32
    %431 = vector.broadcast %cst_163 : f32 to vector<2x16x128xf32>
    %432 = arith.select %8, %430, %431 : vector<2x16x128xi1>, vector<2x16x128xf32>
    %433 = vector.broadcast %429 : f32 to vector<2x16x128xf32>
    %434 = arith.mulf %433, %432 : vector<2x16x128xf32>
    %435 = arith.addf %427, %434 : vector<2x16x128xf32>
    %c61 = arith.constant 61 : index
    %436 = memref.load %arg0[%c61] : memref<75xf32, #tpu.memory_space<smem>>
    %c1_i32_164 = arith.constant 1 : i32
    %437 = tpu.dynamic_rotate %428 by %c1_i32_164 dim 2 : vector<2x16x128xf32>, i32 -> vector<2x16x128xf32>
    %cst_165 = arith.constant 0.000000e+00 : f32
    %438 = vector.broadcast %cst_165 : f32 to vector<2x16x128xf32>
    %439 = arith.select %10, %437, %438 : vector<2x16x128xi1>, vector<2x16x128xf32>
    %440 = vector.broadcast %436 : f32 to vector<2x16x128xf32>
    %441 = arith.mulf %440, %439 : vector<2x16x128xf32>
    %442 = arith.addf %435, %441 : vector<2x16x128xf32>
    %c62 = arith.constant 62 : index
    %443 = memref.load %arg0[%c62] : memref<75xf32, #tpu.memory_space<smem>>
    %444 = vector.broadcast %443 : f32 to vector<2x16x128xf32>
    %445 = arith.mulf %444, %428 : vector<2x16x128xf32>
    %446 = arith.addf %442, %445 : vector<2x16x128xf32>
    %c63 = arith.constant 63 : index
    %447 = memref.load %arg0[%c63] : memref<75xf32, #tpu.memory_space<smem>>
    %c127_i32_166 = arith.constant 127 : i32
    %448 = tpu.dynamic_rotate %428 by %c127_i32_166 dim 2 : vector<2x16x128xf32>, i32 -> vector<2x16x128xf32>
    %cst_167 = arith.constant 0.000000e+00 : f32
    %449 = vector.broadcast %cst_167 : f32 to vector<2x16x128xf32>
    %450 = arith.select %12, %448, %449 : vector<2x16x128xi1>, vector<2x16x128xf32>
    %451 = vector.broadcast %447 : f32 to vector<2x16x128xf32>
    %452 = arith.mulf %451, %450 : vector<2x16x128xf32>
    %453 = arith.addf %446, %452 : vector<2x16x128xf32>
    %c64 = arith.constant 64 : index
    %454 = memref.load %arg0[%c64] : memref<75xf32, #tpu.memory_space<smem>>
    %c126_i32_168 = arith.constant 126 : i32
    %455 = tpu.dynamic_rotate %428 by %c126_i32_168 dim 2 : vector<2x16x128xf32>, i32 -> vector<2x16x128xf32>
    %cst_169 = arith.constant 0.000000e+00 : f32
    %456 = vector.broadcast %cst_169 : f32 to vector<2x16x128xf32>
    %457 = arith.select %14, %455, %456 : vector<2x16x128xi1>, vector<2x16x128xf32>
    %458 = vector.broadcast %454 : f32 to vector<2x16x128xf32>
    %459 = arith.mulf %458, %457 : vector<2x16x128xf32>
    %460 = arith.addf %453, %459 : vector<2x16x128xf32>
    %c0_170 = arith.constant 0 : index
    %c3_171 = arith.constant 3 : index
    %c0_172 = arith.constant 0 : index
    %461 = vector.load %arg11[%c0_170, %c3_171, %c0_172] : memref<2x20x128xf32, #tpu.memory_space<vmem>>, vector<2x16x128xf32>
    %c65 = arith.constant 65 : index
    %462 = memref.load %arg0[%c65] : memref<75xf32, #tpu.memory_space<smem>>
    %c2_i32_173 = arith.constant 2 : i32
    %463 = tpu.dynamic_rotate %461 by %c2_i32_173 dim 2 : vector<2x16x128xf32>, i32 -> vector<2x16x128xf32>
    %cst_174 = arith.constant 0.000000e+00 : f32
    %464 = vector.broadcast %cst_174 : f32 to vector<2x16x128xf32>
    %465 = arith.select %8, %463, %464 : vector<2x16x128xi1>, vector<2x16x128xf32>
    %466 = vector.broadcast %462 : f32 to vector<2x16x128xf32>
    %467 = arith.mulf %466, %465 : vector<2x16x128xf32>
    %468 = arith.addf %460, %467 : vector<2x16x128xf32>
    %c66 = arith.constant 66 : index
    %469 = memref.load %arg0[%c66] : memref<75xf32, #tpu.memory_space<smem>>
    %c1_i32_175 = arith.constant 1 : i32
    %470 = tpu.dynamic_rotate %461 by %c1_i32_175 dim 2 : vector<2x16x128xf32>, i32 -> vector<2x16x128xf32>
    %cst_176 = arith.constant 0.000000e+00 : f32
    %471 = vector.broadcast %cst_176 : f32 to vector<2x16x128xf32>
    %472 = arith.select %10, %470, %471 : vector<2x16x128xi1>, vector<2x16x128xf32>
    %473 = vector.broadcast %469 : f32 to vector<2x16x128xf32>
    %474 = arith.mulf %473, %472 : vector<2x16x128xf32>
    %475 = arith.addf %468, %474 : vector<2x16x128xf32>
    %c67 = arith.constant 67 : index
    %476 = memref.load %arg0[%c67] : memref<75xf32, #tpu.memory_space<smem>>
    %477 = vector.broadcast %476 : f32 to vector<2x16x128xf32>
    %478 = arith.mulf %477, %461 : vector<2x16x128xf32>
    %479 = arith.addf %475, %478 : vector<2x16x128xf32>
    %c68 = arith.constant 68 : index
    %480 = memref.load %arg0[%c68] : memref<75xf32, #tpu.memory_space<smem>>
    %c127_i32_177 = arith.constant 127 : i32
    %481 = tpu.dynamic_rotate %461 by %c127_i32_177 dim 2 : vector<2x16x128xf32>, i32 -> vector<2x16x128xf32>
    %cst_178 = arith.constant 0.000000e+00 : f32
    %482 = vector.broadcast %cst_178 : f32 to vector<2x16x128xf32>
    %483 = arith.select %12, %481, %482 : vector<2x16x128xi1>, vector<2x16x128xf32>
    %484 = vector.broadcast %480 : f32 to vector<2x16x128xf32>
    %485 = arith.mulf %484, %483 : vector<2x16x128xf32>
    %486 = arith.addf %479, %485 : vector<2x16x128xf32>
    %c69 = arith.constant 69 : index
    %487 = memref.load %arg0[%c69] : memref<75xf32, #tpu.memory_space<smem>>
    %c126_i32_179 = arith.constant 126 : i32
    %488 = tpu.dynamic_rotate %461 by %c126_i32_179 dim 2 : vector<2x16x128xf32>, i32 -> vector<2x16x128xf32>
    %cst_180 = arith.constant 0.000000e+00 : f32
    %489 = vector.broadcast %cst_180 : f32 to vector<2x16x128xf32>
    %490 = arith.select %14, %488, %489 : vector<2x16x128xi1>, vector<2x16x128xf32>
    %491 = vector.broadcast %487 : f32 to vector<2x16x128xf32>
    %492 = arith.mulf %491, %490 : vector<2x16x128xf32>
    %493 = arith.addf %486, %492 : vector<2x16x128xf32>
    %c0_181 = arith.constant 0 : index
    %c4_182 = arith.constant 4 : index
    %c0_183 = arith.constant 0 : index
    %494 = vector.load %arg11[%c0_181, %c4_182, %c0_183] : memref<2x20x128xf32, #tpu.memory_space<vmem>>, vector<2x16x128xf32>
    %c70 = arith.constant 70 : index
    %495 = memref.load %arg0[%c70] : memref<75xf32, #tpu.memory_space<smem>>
    %c2_i32_184 = arith.constant 2 : i32
    %496 = tpu.dynamic_rotate %494 by %c2_i32_184 dim 2 : vector<2x16x128xf32>, i32 -> vector<2x16x128xf32>
    %cst_185 = arith.constant 0.000000e+00 : f32
    %497 = vector.broadcast %cst_185 : f32 to vector<2x16x128xf32>
    %498 = arith.select %8, %496, %497 : vector<2x16x128xi1>, vector<2x16x128xf32>
    %499 = vector.broadcast %495 : f32 to vector<2x16x128xf32>
    %500 = arith.mulf %499, %498 : vector<2x16x128xf32>
    %501 = arith.addf %493, %500 : vector<2x16x128xf32>
    %c71 = arith.constant 71 : index
    %502 = memref.load %arg0[%c71] : memref<75xf32, #tpu.memory_space<smem>>
    %c1_i32_186 = arith.constant 1 : i32
    %503 = tpu.dynamic_rotate %494 by %c1_i32_186 dim 2 : vector<2x16x128xf32>, i32 -> vector<2x16x128xf32>
    %cst_187 = arith.constant 0.000000e+00 : f32
    %504 = vector.broadcast %cst_187 : f32 to vector<2x16x128xf32>
    %505 = arith.select %10, %503, %504 : vector<2x16x128xi1>, vector<2x16x128xf32>
    %506 = vector.broadcast %502 : f32 to vector<2x16x128xf32>
    %507 = arith.mulf %506, %505 : vector<2x16x128xf32>
    %508 = arith.addf %501, %507 : vector<2x16x128xf32>
    %c72 = arith.constant 72 : index
    %509 = memref.load %arg0[%c72] : memref<75xf32, #tpu.memory_space<smem>>
    %510 = vector.broadcast %509 : f32 to vector<2x16x128xf32>
    %511 = arith.mulf %510, %494 : vector<2x16x128xf32>
    %512 = arith.addf %508, %511 : vector<2x16x128xf32>
    %c73 = arith.constant 73 : index
    %513 = memref.load %arg0[%c73] : memref<75xf32, #tpu.memory_space<smem>>
    %c127_i32_188 = arith.constant 127 : i32
    %514 = tpu.dynamic_rotate %494 by %c127_i32_188 dim 2 : vector<2x16x128xf32>, i32 -> vector<2x16x128xf32>
    %cst_189 = arith.constant 0.000000e+00 : f32
    %515 = vector.broadcast %cst_189 : f32 to vector<2x16x128xf32>
    %516 = arith.select %12, %514, %515 : vector<2x16x128xi1>, vector<2x16x128xf32>
    %517 = vector.broadcast %513 : f32 to vector<2x16x128xf32>
    %518 = arith.mulf %517, %516 : vector<2x16x128xf32>
    %519 = arith.addf %512, %518 : vector<2x16x128xf32>
    %c74 = arith.constant 74 : index
    %520 = memref.load %arg0[%c74] : memref<75xf32, #tpu.memory_space<smem>>
    %c126_i32_190 = arith.constant 126 : i32
    %521 = tpu.dynamic_rotate %494 by %c126_i32_190 dim 2 : vector<2x16x128xf32>, i32 -> vector<2x16x128xf32>
    %cst_191 = arith.constant 0.000000e+00 : f32
    %522 = vector.broadcast %cst_191 : f32 to vector<2x16x128xf32>
    %523 = arith.select %14, %521, %522 : vector<2x16x128xi1>, vector<2x16x128xf32>
    %524 = vector.broadcast %520 : f32 to vector<2x16x128xf32>
    %525 = arith.mulf %524, %523 : vector<2x16x128xf32>
    %526 = arith.addf %519, %525 : vector<2x16x128xf32>
    %c2_192 = arith.constant 2 : index
    %527 = memref.load %arg1[%c2_192] : memref<3xf32, #tpu.memory_space<smem>>
    %528 = vector.broadcast %527 : f32 to vector<2x16x128xf32>
    %529 = arith.addf %526, %528 : vector<2x16x128xf32>
    %cst_193 = arith.constant 0.000000e+00 : f32
    %530 = vector.broadcast %cst_193 : f32 to vector<2x16x128xf32>
    %531 = arith.maximumf %529, %530 : vector<2x16x128xf32>
    %c0_194 = arith.constant 0 : index
    %c0_195 = arith.constant 0 : index
    %532 = vector.load %arg4[%c0_194, %c0_195] : memref<128x128xf32, #tpu.memory_space<vmem>>, vector<128x128xf32>
    %c0_196 = arith.constant 0 : index
    %c0_197 = arith.constant 0 : index
    %533 = vector.load %arg5[%c0_196, %c0_197] : memref<1x128xf32, #tpu.memory_space<vmem>>, vector<1x128xf32>
    %cst_198 = arith.constant dense<0.000000e+00> : vector<2x128xf32>
    %534 = tpu.matmul %3, %532, %cst_198 {dimension_numbers = #tpu.dot_dimension_numbers<[1], [0], [0], [1], [0, 0, 1, 1], [], []>} : vector<2x128xf32>, vector<128x128xf32>, vector<2x128xf32> -> vector<2x128xf32>
    %535 = vector.broadcast %533 : vector<1x128xf32> to vector<2x128xf32>
    %536 = arith.addf %534, %535 : vector<2x128xf32>
    %cst_199 = arith.constant 0.000000e+00 : f32
    %537 = vector.broadcast %cst_199 : f32 to vector<2x128xf32>
    %538 = arith.maximumf %536, %537 : vector<2x128xf32>
    %539 = vector.shape_cast %531 : vector<2x16x128xf32> to vector<32x128xf32>
    %cst_200 = arith.constant dense<0.000000e+00> : vector<32x128xf32>
    %540 = tpu.matmul %539, %532, %cst_200 {dimension_numbers = #tpu.dot_dimension_numbers<[1], [0], [0], [1], [0, 0, 1, 1], [], []>} : vector<32x128xf32>, vector<128x128xf32>, vector<32x128xf32> -> vector<32x128xf32>
    %541 = vector.broadcast %533 : vector<1x128xf32> to vector<32x128xf32>
    %542 = arith.addf %540, %541 : vector<32x128xf32>
    %cst_201 = arith.constant 0.000000e+00 : f32
    %543 = vector.broadcast %cst_201 : f32 to vector<32x128xf32>
    %544 = arith.maximumf %542, %543 : vector<32x128xf32>
    %545 = vector.shape_cast %544 : vector<32x128xf32> to vector<2x16x128xf32>
    %546 = vector.shape_cast %538 : vector<2x128xf32> to vector<2x1x128xf32>
    %547 = vector.broadcast %546 : vector<2x1x128xf32> to vector<2x16x128xf32>
    %548 = arith.mulf %545, %547 : vector<2x16x128xf32>
    %cst_202 = arith.constant dense<0.000000e+00> : vector<2x16xf32>
    %549 = vector.multi_reduction <add>, %548, %cst_202 [2] : vector<2x16x128xf32> to vector<2x16xf32>
    %550 = vector.shape_cast %549 : vector<2x16xf32> to vector<2x16x1xf32>
    %551 = math.tanh %550 : vector<2x16x1xf32>
    %552 = vector.broadcast %551 : vector<2x16x1xf32> to vector<2x16x128xf32>
    %553 = arith.mulf %552, %545 : vector<2x16x128xf32>
    %cst_203 = arith.constant dense<0.000000e+00> : vector<2x128xf32>
    %554 = vector.multi_reduction <add>, %553, %cst_203 [1] : vector<2x16x128xf32> to vector<2x128xf32>
    %cst_204 = arith.constant 1.600000e+01 : f32
    %555 = vector.broadcast %cst_204 : f32 to vector<2x128xf32>
    %556 = arith.divf %554, %555 : vector<2x128xf32>
    %557 = tpu.concatenate %3, %556 in 1 : vector<2x128xf32>, vector<2x128xf32> -> vector<2x256xf32>
    %c0_205 = arith.constant 0 : index
    %c0_206 = arith.constant 0 : index
    %c0_207 = arith.constant 0 : index
    %558 = vector.load %arg6[%c0_205, %c0_206, %c0_207] : memref<3x256x256xf32, #tpu.memory_space<vmem>>, vector<1x256x256xf32>
    %559 = vector.shape_cast %558 : vector<1x256x256xf32> to vector<256x256xf32>
    %cst_208 = arith.constant dense<0.000000e+00> : vector<2x256xf32>
    %560 = tpu.matmul %557, %559, %cst_208 {dimension_numbers = #tpu.dot_dimension_numbers<[1], [0], [0], [1], [0, 0, 1, 1], [], []>} : vector<2x256xf32>, vector<256x256xf32>, vector<2x256xf32> -> vector<2x256xf32>
    %c0_209 = arith.constant 0 : index
    %c0_210 = arith.constant 0 : index
    %c0_211 = arith.constant 0 : index
    %561 = vector.load %arg7[%c0_209, %c0_210, %c0_211] : memref<3x1x256xf32, #tpu.memory_space<vmem>>, vector<1x1x256xf32>
    %562 = vector.shape_cast %561 : vector<1x1x256xf32> to vector<1x256xf32>
    %563 = vector.broadcast %562 : vector<1x256xf32> to vector<2x256xf32>
    %564 = arith.addf %560, %563 : vector<2x256xf32>
    %cst_212 = arith.constant 0.000000e+00 : f32
    %565 = vector.broadcast %cst_212 : f32 to vector<2x256xf32>
    %566 = arith.maximumf %564, %565 : vector<2x256xf32>
    %c1_213 = arith.constant 1 : index
    %c0_214 = arith.constant 0 : index
    %c0_215 = arith.constant 0 : index
    %567 = vector.load %arg6[%c1_213, %c0_214, %c0_215] : memref<3x256x256xf32, #tpu.memory_space<vmem>>, vector<1x256x256xf32>
    %568 = vector.shape_cast %567 : vector<1x256x256xf32> to vector<256x256xf32>
    %cst_216 = arith.constant dense<0.000000e+00> : vector<2x256xf32>
    %569 = tpu.matmul %566, %568, %cst_216 {dimension_numbers = #tpu.dot_dimension_numbers<[1], [0], [0], [1], [0, 0, 1, 1], [], []>} : vector<2x256xf32>, vector<256x256xf32>, vector<2x256xf32> -> vector<2x256xf32>
    %c1_217 = arith.constant 1 : index
    %c0_218 = arith.constant 0 : index
    %c0_219 = arith.constant 0 : index
    %570 = vector.load %arg7[%c1_217, %c0_218, %c0_219] : memref<3x1x256xf32, #tpu.memory_space<vmem>>, vector<1x1x256xf32>
    %571 = vector.shape_cast %570 : vector<1x1x256xf32> to vector<1x256xf32>
    %572 = vector.broadcast %571 : vector<1x256xf32> to vector<2x256xf32>
    %573 = arith.addf %569, %572 : vector<2x256xf32>
    %cst_220 = arith.constant 0.000000e+00 : f32
    %574 = vector.broadcast %cst_220 : f32 to vector<2x256xf32>
    %575 = arith.maximumf %573, %574 : vector<2x256xf32>
    %c2_221 = arith.constant 2 : index
    %c0_222 = arith.constant 0 : index
    %c0_223 = arith.constant 0 : index
    %576 = vector.load %arg6[%c2_221, %c0_222, %c0_223] : memref<3x256x256xf32, #tpu.memory_space<vmem>>, vector<1x256x256xf32>
    %577 = vector.shape_cast %576 : vector<1x256x256xf32> to vector<256x256xf32>
    %cst_224 = arith.constant dense<0.000000e+00> : vector<2x256xf32>
    %578 = tpu.matmul %575, %577, %cst_224 {dimension_numbers = #tpu.dot_dimension_numbers<[1], [0], [0], [1], [0, 0, 1, 1], [], []>} : vector<2x256xf32>, vector<256x256xf32>, vector<2x256xf32> -> vector<2x256xf32>
    %c2_225 = arith.constant 2 : index
    %c0_226 = arith.constant 0 : index
    %c0_227 = arith.constant 0 : index
    %579 = vector.load %arg7[%c2_225, %c0_226, %c0_227] : memref<3x1x256xf32, #tpu.memory_space<vmem>>, vector<1x1x256xf32>
    %580 = vector.shape_cast %579 : vector<1x1x256xf32> to vector<1x256xf32>
    %581 = vector.broadcast %580 : vector<1x256xf32> to vector<2x256xf32>
    %582 = arith.addf %578, %581 : vector<2x256xf32>
    %cst_228 = arith.constant 0.000000e+00 : f32
    %583 = vector.broadcast %cst_228 : f32 to vector<2x256xf32>
    %584 = arith.maximumf %582, %583 : vector<2x256xf32>
    %c0_229 = arith.constant 0 : index
    %c0_230 = arith.constant 0 : index
    %585 = vector.load %arg8[%c0_229, %c0_230] : memref<256x128xf32, #tpu.memory_space<vmem>>, vector<256x128xf32>
    %cst_231 = arith.constant dense<0.000000e+00> : vector<2x128xf32>
    %586 = tpu.matmul %584, %585, %cst_231 {dimension_numbers = #tpu.dot_dimension_numbers<[1], [0], [0], [1], [0, 0, 1, 1], [], []>} : vector<2x256xf32>, vector<256x128xf32>, vector<2x128xf32> -> vector<2x128xf32>
    %c0_232 = arith.constant 0 : index
    %c0_233 = arith.constant 0 : index
    %587 = vector.load %arg9[%c0_232, %c0_233] : memref<1x128xf32, #tpu.memory_space<vmem>>, vector<1x128xf32>
    %588 = vector.broadcast %587 : vector<1x128xf32> to vector<2x128xf32>
    %589 = arith.addf %586, %588 : vector<2x128xf32>
    %c0_234 = arith.constant 0 : index
    %c0_235 = arith.constant 0 : index
    %590 = vector.load %arg10[%c0_234, %c0_235] : memref<2x128xf32, #tpu.memory_space<vmem>>, vector<2x128xf32>
    tpu.vector_store %arg10[%c0_234, %c0_235], %589 {strides = array<i32>} : memref<2x128xf32, #tpu.memory_space<vmem>>, vector<2x128xf32>,
    return
  }
}

</mosaic_0001>

<bundles_post_ra>
// kernel: tpu_custom_call.1
= control target key start
LH: loop header
LB: loop body
LE: loop exit
PB: predicated region body
PF: predicated region fallthrough
CT: control target
= control target key end

     0   :  { %15 = vsyncpa [#allocation6], 0  ;;  %s4828_s0 = inlined_call_operand.vmem [shape: f32[75], index: 0, kind: input, shape index: {}]   ;;  %s4829_s1 = inlined_call_operand.vmem [shape: f32[3], index: 1, kind: input, shape index: {}]   ;;  %s4830_s2 = inlined_call_operand.vmem [shape: f32[2,6,128], index: 2, kind: input, shape index: {}]   ;;  %s4831_s3 = inlined_call_operand.hbm [shape: f32[2,16,128], index: 3, kind: input, shape index: {}]   ;;  %s4832_s4 = inlined_call_operand.hbm [shape: f32[128,128], index: 4, kind: input, shape index: {}]   ;;  %s4833_s5 = inlined_call_operand.vmem [shape: f32[1,128], index: 5, kind: input, shape index: {}]   ;;  %s4834_s6 = inlined_call_operand.hbm [shape: f32[3,256,256], index: 6, kind: input, shape index: {}]   ;;  %s4835_s7 = inlined_call_operand.vmem [shape: f32[3,1,256], index: 7, kind: input, shape index: {}]   ;;  %s4836_s8 = inlined_call_operand.hbm [shape: f32[256,128], index: 8, kind: input, shape index: {}]   ;;  %s4837_s9 = inlined_call_operand.vmem [shape: f32[1,128], index: 9, kind: input, shape index: {}]   ;;  %s4838_s10 = inlined_call_operand.hbm [shape: f32[2,128], index: 10, kind: output, shape index: {}]  }
   0x1   :  { %16 = vsyncpa [#allocation8], 0 }
   0x2   :  { %17 = vsyncpa [#allocation4], 0 }
   0x3   :  { %18 = vsyncpa [#allocation11], 0 }
   0x4   :  { %19 = vsyncpa [#allocation14], 0 }
   0x5   :  { %20 = vsyncpa [#allocation5], 0  ;;  %s58_s15 = sshll.u32 %s4832_s4, 4  ;;  %s2694_s16 = smov [#allocation10]   ;;  %s59_s15 = int_to_ptr.hbm [resolvable:$true] %s58_s15 }
   0x6   :  { %s60_s17 = sshll.u32 %s2694_s16, 4  ;;  %s26_s20 = sshll.u32 %s4828_s0, 4  ;;  %s61_s17 = int_to_ptr.vmem [resolvable:$true] %s60_s17  ;;  %s27_s20 = int_to_ptr.vmem [resolvable:$true] %s26_s20 }
   0x7   :  { %s2695_s21 = smov 128   ;;  %s2696_s22 = smov 8  }
   0x8   :  { %66 = dma.hbm_to_vmem [thread:$0]  %s59_s15, 2048, %s61_s17, [#allocation11], %s2695_s21, %s2695_s21, %s2696_s22  }
   0x9   :  { %s2697_s23 = smov [#allocation3]   ;;  %s35_s4 = sshll.u32 %s4829_s1, 4  ;;  %s36_s4 = int_to_ptr.vmem [resolvable:$true] %s35_s4 }
   0xa   :  { %29 = dma.vmem_to_smem %s27_s20, 16, %s2697_s23, [#allocation6]  }
   0xb   :  { %s45_s28 = sshll.u32 %s4831_s3, 4  ;;  %s2698_s29 = smov [#allocation7]   ;;  %s46_s28 = int_to_ptr.hbm [resolvable:$true] %s45_s28 }
   0xc   :  { %38 = dma.vmem_to_smem %s36_s4, 16, %s2698_s29, [#allocation8]  }
   0xd   :  { %s2699_s0 = smov [#allocation9]   ;;  %s73_s13 = sshll.u32 %s4834_s6, 4  ;;  %s74_s13 = int_to_ptr.hbm [resolvable:$true] %s73_s13 }
   0xe   :  { %s47_s30 = sshll.u32 %s2699_s0, 4  ;;  %s2700_s1 = smov [#allocation12]   ;;  %s48_s30 = int_to_ptr.vmem [resolvable:$true] %s47_s30 }
   0xf   :  { %53 = dma.hbm_to_vmem [thread:$0]  %s46_s28, 512, %s48_s30, [#allocation4], %s2695_s21, %s2695_s21, %s2696_s22  }
  0x10   :  { %s75_s14 = sshll.u32 %s2700_s1, 4  ;;  %s88_s16 = sshll.u32 %s4836_s8, 4  ;;  %s76_s14 = int_to_ptr.vmem [resolvable:$true] %s75_s14  ;;  %s89_s16 = int_to_ptr.hbm [resolvable:$true] %s88_s16 }
  0x11   :  { %s2701_s17 = smov 256   ;;  %s2702_s18 = smov 16  }
  0x12   :  { %81 = dma.hbm_to_vmem [thread:$0]  %s74_s13, 24576, %s76_s14, [#allocation11], %s2701_s17, %s2701_s17, %s2702_s18  }
  0x13   :  { %s2703_s19 = smov [#allocation13]  }
  0x14   :  { %s90_s20 = sshll.u32 %s2703_s19, 4  ;;  %s91_s20 = int_to_ptr.vmem [resolvable:$true] %s90_s20 }
  0x15   :  { %96 = dma.hbm_to_vmem [thread:$0]  %s89_s16, 4096, %s91_s20, [#allocation14], %s2695_s21, %s2695_s21, %s2696_s22  }
  0x16   :  { %2682 = dma.done.wait [#allocation6], 16  }
  0x17   :  { %2683 = vsyncadd [#allocation6], 4294967280 }
  0x18   :  { %2684 = dma.done.wait [#allocation8], 16  }
  0x19   :  { %2685 = vsyncadd [#allocation8], 4294967280 }
  0x1a   :  { %2686 = dma.done.wait [#allocation4], 512  }
  0x1b   :  { %2687 = vsyncadd [#allocation4], 4294966784 }
  0x1c   :  { %2688 = dma.done.wait [#allocation11], 26624  }
  0x1d   :  { %2689 = vsyncadd [#allocation11], 4294940672 }
  0x1e   :  { %2690 = dma.done.wait [#allocation14], 4096  }
  0x1f   :  { %2691 = vsyncadd [#allocation14], 4294963200 }
  0x20   :  { %123 = sfence }
  0x21   :  { %v2704_v0 = vmov 0.0   ;;  %v2794_v1 = vld [vmem:[#allocation9] sm:$0xff]  ;;  %v2796_v2 = vld [vmem:[#allocation9 + $0x8] sm:$0xff]  ;;  %v2800_v3 = vld [vmem:[#allocation9 + $0x10] sm:$0xff]  ;;  %s2705_s6 = smov 127   ;;  %s2706_s8 = smov 2   ;;  %v156_v53 = vlaneseq }
  0x22   :  { %150 = vst [vmem:[#allocation2] sm:$0xff] %v2704_v0  ;;  %v2802_v4 = vld [vmem:[#allocation9 + $0x18] sm:$0xff]  ;;  %s2707_s21 = smov 126   ;;  %s2708_s22 = smov 1   ;;  %vm126_vm4 = vcmask 1045504   ;;  %vm1760_vm6 = vcmask 1041409  }
  0x23   :  { %151 = vst [vmem:[#allocation2 + $0x8] sm:$0xff] %v2704_v0  ;;  %s174_s23 = sld [smem:[#allocation3]]  ;;  %v3052_v54 = vand.u32 127, %v156_v53 }
  0x24   :  { %152 = vst [vmem:[#allocation2 + $0x10] sm:$0xf] %v2704_v0  ;;  %s2428_s24 = sld [smem:[#allocation3 + $0x1]] }
  0x25   :  { %166 = vst [vmem:[#allocation2 + $0x2] sm:$0xff] %v2794_v1  ;;  %s2429_s25 = sld [smem:[#allocation3 + $0x2]]  ;;  %vm158_vm0 = vcmp.ge.s32.totalorder %v3052_v54, 2  ;;  %vm159_vm1 = vcmp.ge.s32.totalorder %v3052_v54, 1  ;;  %vm160_vm2 = vcmp.lt.s32.totalorder %v3052_v54, 127  ;;  %vm161_vm3 = vcmp.lt.s32.totalorder %v3052_v54, 126 }
  0x26   :  { %167 = vst [vmem:[#allocation2 + $0xa] sm:$0xff] %v2796_v2  ;;  %s2430_s4 = sld [smem:[#allocation3 + $0x3]] }
  0x27   :  { %153 = vst [vmem:[#allocation2 + $0x18] sm:$0xff] %v2704_v0  ;;  %s2431_s26 = sld [smem:[#allocation3 + $0x4]] }
  0x28   :  { %4850 = vst [vmem:[#allocation22_spill] sm:$0xff] %v2800_v3  ;;  %s2432_s27 = sld [smem:[#allocation3 + $0x5]] }
  0x29   :  { %154 = vst [vmem:[#allocation2 + $0x20] sm:$0xff] %v2704_v0  ;;  %v3064_v59 = vstv %s174_s23  ;;  %s2433_s28 = sld [smem:[#allocation3 + $0x6]] }
  0x2a   :  { %4851 = vst [vmem:[#allocation23_spill] sm:$0xff] %v2802_v4  ;;  %v3066_v60 = vstv %s2428_s24  ;;  %s2434_s29 = sld [smem:[#allocation3 + $0x7]] }
  0x2b   :  { %155 = vst [vmem:[#allocation2 + $0x28] sm:$0xf] %v2704_v0  ;;  %s2435_s0 = sld [smem:[#allocation3 + $0x8]] }
  0x2c   :  { %168 = vst [vmem:[#allocation2 + $0x1a] sm:$0xff] %v2800_v3  ;;  %v2806_v5 = vld [vmem:[#allocation2] sm:$0xff]  ;;  %s2436_s30 = sld [smem:[#allocation3 + $0x9]] }
  0x2d   :  { %169 = vst [vmem:[#allocation2 + $0x22] sm:$0xff] %v2802_v4  ;;  %v2808_v6 = vld [vmem:[#allocation2 + $0x8] sm:$0xff]  ;;  %229 = vrot.lane.b32.xlu1 %v2806_v5, %s2705_s6  ;;  %175 = vrot.lane.b32.xlu0 %v2806_v5, %s2706_s8  ;;  %s2437_s11 = sld [smem:[#allocation3 + $0xa]] }
  0x2e   :  { %177 = vrot.lane.b32.xlu2 %v2808_v6, %s2706_s8  ;;  %v2822_v7 = vld [vmem:[#allocation2 + $0x1] sm:$0xff]  ;;  %v2838_v9 = vld [vmem:[#allocation2 + $0x9] sm:$0xff]  ;;  %s2438_s12 = sld [smem:[#allocation3 + $0xb]] }
  0x2f   :  { %v2880_v12 = vld [vmem:[#allocation2 + $0x3] sm:$0xff]  ;;  %v2914_v17 = vld [vmem:[#allocation2 + $0xb] sm:$0xff]  ;;  %s2439_s13 = sld [smem:[#allocation3 + $0xc]] }
  0x30   :  { %4854 = vst [vmem:[#allocation26_spill] sm:$0xff] %v2914_v17  ;;  %v2928_v21 = vld [vmem:[#allocation2 + $0x4] sm:$0xff]  ;;  %v2980_v35 = vld [vmem:[#allocation2 + $0xc] sm:$0xff]  ;;  %s2440_s1 = sld [smem:[#allocation3 + $0xd]] }
  0x31   :  { %4855 = vst [vmem:[#allocation27_spill] sm:$0xff] %v2928_v21  ;;  %s2441_s14 = sld [smem:[#allocation3 + $0xe]] }
  0x32   :  { %4857 = vst [vmem:[#allocation29_spill] sm:$0xff] %v2980_v35  ;;  %s2442_s15 = sld [smem:[#allocation3 + $0xf]] }
  0x33   :  { %v2830_v8 = vld [vmem:[#allocation2 + $0x18] sm:$0xff]  ;;  %s2443_s3 = sld [smem:[#allocation3 + $0x10]] }
  0x34   :  { %v2858_v10 = vld [vmem:[#allocation2 + $0x20] sm:$0xff]  ;;  %s3213_s16 = sld [smem:[#allocation3 + $0x11]] }
  0x35   :  { %251 = vrot.lane.b32.xlu1 %v2806_v5, %s2707_s21  ;;  %197 = vrot.lane.b32.xlu0 %v2806_v5, %s2708_s22  ;;  %v2860_v11 = vld [vmem:[#allocation2 + $0x19] sm:$0xff]  ;;  %v2888_v13 = vld [vmem:[#allocation2 + $0x21] sm:$0xff]  ;;  %s3232_s17 = sld [smem:[#allocation3 + $0x12]] }
  0x36   :  { %199 = vrot.lane.b32.xlu2 %v2808_v6, %s2708_s22  ;;  %4852 = vst [vmem:[#allocation24_spill] sm:$0xff] %v2860_v11  ;;  %v2966_v31 = vld [vmem:[#allocation2 + $0x1b] sm:$0xff]  ;;  %v3006_v42 = vld [vmem:[#allocation2 + $0x23] sm:$0xff]  ;;  %s3257_s18 = sld [smem:[#allocation3 + $0x13]] }
  0x37   :  { %4853 = vst [vmem:[#allocation25_spill] sm:$0xff] %v2888_v13  ;;  %v3032_v49 = vld [vmem:[#allocation2 + $0x1c] sm:$0xff]  ;;  %v3062_v58 = vld [vmem:[#allocation2 + $0x24] sm:$0xff]  ;;  %s3286_s19 = sld [smem:[#allocation3 + $0x14]] }
  0x38   :  { %4856 = vst [vmem:[#allocation28_spill] sm:$0xff] %v2966_v31  ;;  %s3298_s20 = sld [smem:[#allocation3 + $0x15]] }
  0x39   :  { %4858 = vst [vmem:[#allocation30_spill] sm:$0xff] %v3006_v42  ;;  %s3325_s23 = sld [smem:[#allocation3 + $0x16]] }
  0x3a   :  { %4859 = vst [vmem:[#allocation31_spill] sm:$0xff] %v3032_v49  ;;  %s3340_s24 = sld [smem:[#allocation3 + $0x17]] }
  0x3b   :  { %4861 = vst [vmem:[#allocation33_spill] sm:$0xff] %v3062_v58 }
  0x3d   :  { %299 = vrot.lane.b32.xlu1 %v2822_v7, %s2708_s22  ;;  %277 = vrot.lane.b32.xlu0 %v2822_v7, %s2706_s8 }
  0x3e   :  { %231 = vrot.lane.b32.xlu2 %v2808_v6, %s2705_s6 }
  0x45   :  { %331 = vrot.lane.b32.xlu1 %v2822_v7, %s2705_s6  ;;  %253 = vrot.lane.b32.xlu0 %v2808_v6, %s2707_s21 }
  0x46   :  { %179 = vrot.lane.b32.xlu2 %v2830_v8, %s2706_s8 }
  0x4d   :  { %279 = vrot.lane.b32.xlu1 %v2838_v9, %s2706_s8  ;;  %201 = vrot.lane.b32.xlu0 %v2830_v8, %s2708_s22 }
  0x4e   :  { %353 = vrot.lane.b32.xlu2 %v2822_v7, %s2707_s21 }
  0x55   :  { %379 = vrot.lane.b32.xlu1 %v2794_v1, %s2706_s8  ;;  %301 = vrot.lane.b32.xlu0 %v2838_v9, %s2708_s22 }
  0x56   :  { %233 = vrot.lane.b32.xlu2 %v2830_v8, %s2705_s6 }
  0x5d   :  { %255 = vrot.lane.b32.xlu1 %v2830_v8, %s2707_s21  ;;  %401 = vrot.lane.b32.xlu0 %v2794_v1, %s2708_s22 }
  0x5e   :  { %333 = vrot.lane.b32.xlu2 %v2838_v9, %s2705_s6 }
  0x65   :  { %203 = vrot.lane.b32.xlu1 %v2858_v10, %s2708_s22  ;;  %181 = vrot.lane.b32.xlu0 %v2858_v10, %s2706_s8 }
  0x66   :  { %281 = vrot.lane.b32.xlu2 %v2860_v11, %s2706_s8 }
  0x6d   :  { %433 = vrot.lane.b32.xlu1 %v2794_v1, %s2705_s6  ;;  %355 = vrot.lane.b32.xlu0 %v2838_v9, %s2707_s21 }
  0x6e   :  { %303 = vrot.lane.b32.xlu2 %v2860_v11, %s2708_s22 }
  0x75   :  { %455 = vrot.lane.b32.xlu1 %v2794_v1, %s2707_s21  ;;  %381 = vrot.lane.b32.xlu0 %v2796_v2, %s2706_s8 }
  0x76   :  { %235 = vrot.lane.b32.xlu2 %v2858_v10, %s2705_s6 }
  0x7d   :  { %481 = vrot.lane.b32.xlu1 %v2880_v12, %s2706_s8  ;;  %403 = vrot.lane.b32.xlu0 %v2796_v2, %s2708_s22 }
  0x7e   :  { %257 = vrot.lane.b32.xlu2 %v2858_v10, %s2707_s21 }
  0x85   :  { %503 = vrot.lane.b32.xlu1 %v2880_v12, %s2708_s22  ;;  %335 = vrot.lane.b32.xlu0 %v2860_v11, %s2705_s6 }
  0x86   :  { %283 = vrot.lane.b32.xlu2 %v2888_v13, %s2706_s8 }
  0x88   :  { %v2896_v14 = vpop.permute.xlu2 %177 }
  0x8d   :  { %435 = vrot.lane.b32.xlu1 %v2796_v2, %s2705_s6  ;;  %357 = vrot.lane.b32.xlu0 %v2860_v11, %s2707_s21  ;;  %v3167_v11 = vstv %s2438_s12  ;;  %s2459_s12 = sld [smem:[#allocation3 + $0x20]] }
  0x8e   :  { %305 = vrot.lane.b32.xlu2 %v2888_v13, %s2708_s22 }
  0x90   :  { %v2904_v15 = vpop.permute.xlu2 %199 }
  0x95   :  { %457 = vrot.lane.b32.xlu1 %v2796_v2, %s2707_s21  ;;  %383 = vrot.lane.b32.xlu0 %v2800_v3, %s2706_s8 }
  0x96   :  { %535 = vrot.lane.b32.xlu2 %v2880_v12, %s2705_s6 }
  0x98   :  { %v2912_v16 = vpop.permute.xlu2 %231 }
  0x9d   :  { %483 = vrot.lane.b32.xlu1 %v2914_v17, %s2706_s8  ;;  %405 = vrot.lane.b32.xlu0 %v2800_v3, %s2708_s22 }
  0x9e   :  { %557 = vrot.lane.b32.xlu2 %v2880_v12, %s2707_s21 }
  0x9f   :  { %v2922_v18 = vpop.permute.xlu1 %229  ;;  %v2924_v19 = vpop.permute.xlu0 %175 }
  0xa0   :  { %v2926_v20 = vpop.permute.xlu2 %179  ;;  %v183_v61 = vsel %vm158_vm0, %v2924_v19, 0.0 }
  0xa1   :  { %v188_v63 = vmul.f32 %v3064_v59, %v183_v61  ;;  %v3097_v61 = vstv %s2430_s4  ;;  %s3392_s4 = sld [smem:[#allocation7]] }
  0xa5   :  { %505 = vrot.lane.b32.xlu1 %v2914_v17, %s2708_s22  ;;  %337 = vrot.lane.b32.xlu0 %v2888_v13, %s2705_s6 }
  0xa6   :  { %583 = vrot.lane.b32.xlu2 %v2928_v21, %s2706_s8 }
  0xa7   :  { %v2936_v22 = vpop.permute.xlu1 %251  ;;  %v2938_v23 = vpop.permute.xlu0 %197 }
  0xa8   :  { %v2940_v24 = vpop.permute.xlu2 %353  ;;  %v205_v62 = vsel %vm159_vm1, %v2938_v23, 0.0 }
  0xa9   :  { %v210_v0 = vmul.f32 %v3066_v60, %v205_v62  ;;  %v237_v62 = vsel %vm160_vm2, %v2922_v18, 0.0 }
  0xad   :  { %437 = vrot.lane.b32.xlu1 %v2800_v3, %s2705_s6  ;;  %359 = vrot.lane.b32.xlu0 %v2888_v13, %s2707_s21  ;;  %v3113_v13 = vstv %s2432_s27  ;;  %s2452_s27 = sld [smem:[#allocation3 + $0x19]] }
  0xae   :  { %605 = vrot.lane.b32.xlu2 %v2928_v21, %s2708_s22 }
  0xaf   :  { %v2948_v25 = vpop.permute.xlu1 %299  ;;  %v2950_v26 = vpop.permute.xlu0 %277 }
  0xb0   :  { %v2952_v27 = vpop.permute.xlu2 %233  ;;  %v285_v18 = vsel %vm158_vm0, %v2950_v26, 0.0  ;;  %v307_v26 = vsel %vm159_vm1, %v2948_v25, 0.0 }
  0xb5   :  { %459 = vrot.lane.b32.xlu1 %v2800_v3, %s2707_s21  ;;  %385 = vrot.lane.b32.xlu0 %v2802_v4, %s2706_s8 }
  0xb6   :  { %537 = vrot.lane.b32.xlu2 %v2914_v17, %s2705_s6 }
  0xb7   :  { %v2960_v28 = vpop.permute.xlu1 %331  ;;  %v2962_v29 = vpop.permute.xlu0 %253 }
  0xb8   :  { %v2964_v30 = vpop.permute.xlu2 %333 }
  0xbd   :  { %485 = vrot.lane.b32.xlu1 %v2966_v31, %s2706_s8  ;;  %407 = vrot.lane.b32.xlu0 %v2802_v4, %s2708_s22 }
  0xbe   :  { %559 = vrot.lane.b32.xlu2 %v2914_v17, %s2707_s21  ;;  %v290_v17 = vmul.f32 %v3113_v13, %v285_v18  ;;  %v339_v18 = vsel %vm160_vm2, %v2960_v28, 0.0 }
  0xbf   :  { %v2974_v32 = vpop.permute.xlu1 %279  ;;  %v2976_v33 = vpop.permute.xlu0 %201 }
  0xc0   :  { %v2978_v34 = vpop.permute.xlu2 %281 }
  0xc5   :  { %507 = vrot.lane.b32.xlu1 %v2966_v31, %s2708_s22  ;;  %637 = vrot.lane.b32.xlu0 %v2928_v21, %s2705_s6 }
  0xc6   :  { %585 = vrot.lane.b32.xlu2 %v2980_v35, %s2706_s8 }
  0xc7   :  { %v2988_v36 = vpop.permute.xlu1 %379  ;;  %v2990_v37 = vpop.permute.xlu0 %301 }
  0xc8   :  { %v2992_v38 = vpop.permute.xlu2 %303 }
  0xcd   :  { %439 = vrot.lane.b32.xlu1 %v2802_v4, %s2705_s6  ;;  %659 = vrot.lane.b32.xlu0 %v2928_v21, %s2707_s21 }
  0xce   :  { %607 = vrot.lane.b32.xlu2 %v2980_v35, %s2708_s22 }
  0xcf   :  { %v3000_v39 = vpop.permute.xlu1 %255  ;;  %v3002_v40 = vpop.permute.xlu0 %401 }
  0xd0   :  { %v3004_v41 = vpop.permute.xlu2 %235 }
  0xd5   :  { %539 = vrot.lane.b32.xlu1 %v2966_v31, %s2705_s6  ;;  %461 = vrot.lane.b32.xlu0 %v2802_v4, %s2707_s21  ;;  %v3108_v4 = vstv %s2431_s26  ;;  %s2453_s26 = sld [smem:[#allocation3 + $0x1a]] }
  0xd6   :  { %487 = vrot.lane.b32.xlu2 %v3006_v42, %s2706_s8 }
  0xd7   :  { %v3014_v43 = vpop.permute.xlu1 %203  ;;  %v3016_v44 = vpop.permute.xlu0 %181 }
  0xd8   :  { %v3018_v45 = vpop.permute.xlu2 %257 }
  0xdd   :  { %639 = vrot.lane.b32.xlu1 %v2980_v35, %s2705_s6  ;;  %561 = vrot.lane.b32.xlu0 %v2966_v31, %s2707_s21 }
  0xde   :  { %509 = vrot.lane.b32.xlu2 %v3006_v42, %s2708_s22 }
  0xdf   :  { %v3026_v46 = vpop.permute.xlu1 %433  ;;  %v3028_v47 = vpop.permute.xlu0 %355 }
  0xe0   :  { %v3030_v48 = vpop.permute.xlu2 %283 }
  0xe5   :  { %661 = vrot.lane.b32.xlu1 %v2980_v35, %s2707_s21  ;;  %587 = vrot.lane.b32.xlu0 %v3032_v49, %s2706_s8 }
  0xe6   :  { %609 = vrot.lane.b32.xlu2 %v3032_v49, %s2708_s22 }
  0xe7   :  { %v3040_v50 = vpop.permute.xlu1 %455  ;;  %v3042_v51 = vpop.permute.xlu0 %381 }
  0xe8   :  { %v3044_v52 = vpop.permute.xlu2 %305 }
  0xe9   :  { %4860 = vst [vmem:[#allocation32_spill] sm:$0xff] %v3044_v52 }
  0xed   :  { %563 = vrot.lane.b32.xlu1 %v3006_v42, %s2707_s21  ;;  %541 = vrot.lane.b32.xlu0 %v3006_v42, %s2705_s6  ;;  %v3086_v42 = vstv %s2429_s25  ;;  %s3363_s25 = sld [smem:[#allocation3 + $0x18]] }
  0xee   :  { %641 = vrot.lane.b32.xlu2 %v3032_v49, %s2705_s6  ;;  %v220_v35 = vmul.f32 %v3086_v42, %v2806_v5  ;;  %v242_v5 = vmul.f32 %v3097_v61, %v237_v62 }
  0xef   :  { %v3054_v55 = vpop.permute.xlu1 %481  ;;  %v3056_v56 = vpop.permute.xlu0 %403 }
  0xf0   :  { %v3058_v57 = vpop.permute.xlu2 %535 }
  0xf5   :  { %663 = vrot.lane.b32.xlu1 %v3032_v49, %s2707_s21  ;;  %589 = vrot.lane.b32.xlu0 %v3062_v58, %s2706_s8  ;;  %v214_v49 = vadd.f32 %v210_v0, %v188_v63 }
  0xf6   :  { %611 = vrot.lane.b32.xlu2 %v3062_v58, %s2708_s22 }
  0xf7   :  { %v3082_v53 = vpop.permute.xlu1 %503  ;;  %v3084_v19 = vpop.permute.xlu0 %335  ;;  %v224_v31 = vadd.f32 %v220_v35, %v214_v49 }
  0xf8   :  { %4862 = vst [vmem:[#allocation34_spill] sm:$0xff] %v3084_v19  ;;  %v3088_v23 = vpop.permute.xlu2 %557  ;;  %v3154_v19 = vstv %s2436_s30  ;;  %s2457_s30 = sld [smem:[#allocation3 + $0x1e]] }
  0xf9   :  { %v246_v3 = vadd.f32 %v242_v5, %v224_v31  ;;  %v3126_v31 = vstv %s2433_s28  ;;  %s2454_s28 = sld [smem:[#allocation3 + $0x1b]] }
  0xfd   :  { %643 = vrot.lane.b32.xlu0 %v3062_v58, %s2705_s6  ;;  %665 = vrot.lane.b32.xlu1 %v3062_v58, %s2707_s21  ;;  %v259_v58 = vsel %vm161_vm3, %v2936_v22, 0.0 }
  0xfe   :  { %v264_v49 = vmul.f32 %v3108_v4, %v259_v58  ;;  %v312_v58 = vmul.f32 %v3126_v31, %v307_v26  ;;  %v206_v26 = vsel %vm159_vm1, %v2904_v15, 0.0 }
  0xff   :  { %v3103_v63 = vpop.permute.xlu1 %435  ;;  %v3105_v0 = vpop.permute.xlu0 %357 }
 0x100   :  { %4863 = vst [vmem:[#allocation35_spill] sm:$0xff] %v3105_v0  ;;  %v3118_v35 = vpop.permute.xlu2 %583  ;;  %v268_v62 = vadd.f32 %v264_v49, %v246_v3  ;;  %v3131_v0 = vstv %s2434_s29  ;;  %v3134_v3 = vstv %s2435_s0  ;;  %s2455_s29 = sld [smem:[#allocation3 + $0x1c]] }
 0x101   :  { %v322_v21 = vmul.f32 %v3131_v0, %v2822_v7  ;;  %v344_v28 = vmul.f32 %v3134_v3, %v339_v18  ;;  %v361_v7 = vsel %vm161_vm3, %v2940_v24, 0.0  ;;  %v409_v24 = vsel %vm159_vm1, %v3002_v40, 0.0  ;;  %s2456_s0 = sld [smem:[#allocation3 + $0x1d]] }
 0x102   :  { %v294_v5 = vadd.f32 %v290_v17, %v268_v62  ;;  %v184_v62 = vsel %vm158_vm0, %v2896_v14, 0.0  ;;  %v387_v14 = vsel %vm158_vm0, %v2988_v36, 0.0  ;;  %v366_v15 = vmul.f32 %v3154_v19, %v361_v7 }
 0x103   :  { %v414_v40 = vmul.f32 %v3167_v11, %v409_v24  ;;  %v441_v24 = vsel %vm160_vm2, %v3026_v46, 0.0 }
 0x107   :  { %v3122_v52 = vpop.permute.xlu1 %457  ;;  %v3124_v22 = vpop.permute.xlu0 %383 }
 0x108   :  { %4864 = vst [vmem:[#allocation36_spill] sm:$0xff] %v3124_v22  ;;  %v3139_v49 = vpop.permute.xlu2 %605  ;;  %v316_v22 = vadd.f32 %v312_v58, %v294_v5  ;;  %v189_v5 = vmul.f32 %v3064_v59, %v184_v62  ;;  %v211_v58 = vmul.f32 %v3066_v60, %v206_v26 }
 0x10a   :  { %v215_v62 = vadd.f32 %v211_v58, %v189_v5  ;;  %v3185_v5 = vstv %s2439_s13  ;;  %s2460_s13 = sld [smem:[#allocation3 + $0x21]] }
 0x10f   :  { %v3143_v25 = vpop.permute.xlu1 %483  ;;  %v3145_v17 = vpop.permute.xlu0 %405 }
 0x110   :  { %4865 = vst [vmem:[#allocation37_spill] sm:$0xff] %v3143_v25  ;;  %v3161_v25 = vstv %s2437_s11  ;;  %s2458_s11 = sld [smem:[#allocation3 + $0x1f]] }
 0x111   :  { %4866 = vst [vmem:[#allocation38_spill] sm:$0xff] %v3145_v17  ;;  %v326_v17 = vadd.f32 %v322_v21, %v316_v22  ;;  %v221_v21 = vmul.f32 %v3086_v42, %v2808_v6  ;;  %v392_v22 = vmul.f32 %v3161_v25, %v387_v14  ;;  %v260_v14 = vsel %vm161_vm3, %v2962_v29, 0.0 }
 0x113   :  { %v348_v18 = vadd.f32 %v344_v28, %v326_v17  ;;  %v238_v17 = vsel %vm160_vm2, %v2912_v16, 0.0  ;;  %v3182_v28 = vpop.permute.xlu2 %537  ;;  %v225_v6 = vadd.f32 %v221_v21, %v215_v62  ;;  %v185_v16 = vsel %vm158_vm0, %v2926_v20, 0.0 }
 0x114   :  { %v243_v58 = vmul.f32 %v3097_v61, %v238_v17  ;;  %v207_v62 = vsel %vm159_vm1, %v2976_v33, 0.0  ;;  %v424_v21 = vmul.f32 %v3185_v5, %v2794_v1  ;;  %v265_v20 = vmul.f32 %v3108_v4, %v260_v14 }
 0x115   :  { %v370_v7 = vadd.f32 %v366_v15, %v348_v18  ;;  %v286_v15 = vsel %vm158_vm0, %v2974_v32, 0.0  ;;  %v3197_v18 = vstv %s2440_s1  ;;  %v463_v32 = vsel %vm161_vm3, %v3040_v50, 0.0  ;;  %s2461_s1 = sld [smem:[#allocation3 + $0x22]] }
 0x116   :  { %v247_v17 = vadd.f32 %v243_v58, %v225_v6  ;;  %v190_v46 = vmul.f32 %v3064_v59, %v185_v16  ;;  %v446_v33 = vmul.f32 %v3197_v18, %v441_v24  ;;  %v308_v14 = vsel %vm159_vm1, %v2990_v37, 0.0 }
 0x117   :  { %v3175_v26 = vpop.permute.xlu1 %505  ;;  %v3177_v36 = vpop.permute.xlu0 %337  ;;  %v3226_v50 = vstv %s2442_s15  ;;  %v489_v6 = vsel %vm158_vm0, %v3054_v55, 0.0  ;;  %v3234_v24 = vstv %s2443_s3  ;;  %s2463_s15 = sld [smem:[#allocation3 + $0x24]] }
 0x118   :  { %4867 = vst [vmem:[#allocation39_spill] sm:$0xff] %v3177_v36  ;;  %v396_v36 = vadd.f32 %v392_v22, %v370_v7  ;;  %v3208_v22 = vstv %s2441_s14  ;;  %v291_v7 = vmul.f32 %v3113_v13, %v286_v15  ;;  %v269_v15 = vadd.f32 %v265_v20, %v247_v17  ;;  %s2462_s14 = sld [smem:[#allocation3 + $0x23]] }
 0x119   :  { %v468_v16 = vmul.f32 %v3208_v22, %v463_v32  ;;  %v494_v55 = vmul.f32 %v3226_v50, %v489_v6  ;;  %v222_v20 = vmul.f32 %v3086_v42, %v2830_v8  ;;  %v186_v17 = vsel %vm158_vm0, %v3016_v44, 0.0  ;;  %s2464_s3 = sld [smem:[#allocation3 + $0x25]] }
 0x11a   :  { %v418_v29 = vadd.f32 %v414_v40, %v396_v36  ;;  %v212_v40 = vmul.f32 %v3066_v60, %v207_v62  ;;  %v511_v62 = vsel %vm159_vm1, %v3082_v53, 0.0  ;;  %v208_v53 = vsel %vm159_vm1, %v3014_v43, 0.0 }
 0x11b   :  { %v3239_v37 = vpop.permute.xlu2 %559  ;;  %v323_v6 = vmul.f32 %v3131_v0, %v2838_v9  ;;  %v340_v43 = vsel %vm160_vm2, %v2964_v30, 0.0  ;;  %v261_v9 = vsel %vm161_vm3, %v3000_v39, 0.0  ;;  %v362_v30 = vsel %vm161_vm3, %v3028_v47, 0.0 }
 0x11c   :  { %v428_v58 = vadd.f32 %v424_v21, %v418_v29  ;;  %v239_v29 = vsel %vm160_vm2, %v2952_v27, 0.0  ;;  %v295_v21 = vadd.f32 %v291_v7, %v269_v15  ;;  %v216_v32 = vadd.f32 %v212_v40, %v190_v46 }
 0x11d   :  { %v3260_v27 = vstv %s3213_s16  ;;  %v244_v8 = vmul.f32 %v3097_v61, %v239_v29  ;;  %v345_v39 = vmul.f32 %v3134_v3, %v340_v43  ;;  %v223_v47 = vmul.f32 %v3086_v42, %v2858_v10  ;;  %s2465_s16 = sld [smem:[#allocation3 + $0x26]] }
 0x11e   :  { %v226_v40 = vadd.f32 %v222_v20, %v216_v32  ;;  %v526_v15 = vmul.f32 %v3260_v27, %v2880_v12  ;;  %v287_v12 = vsel %vm158_vm0, %v2978_v34, 0.0  ;;  %v240_v34 = vsel %vm160_vm2, %v3004_v41, 0.0 }
 0x11f   :  { %v3218_v36 = vpop.permute.xlu1 %437  ;;  %v3220_v1 = vpop.permute.xlu0 %359  ;;  %v367_v32 = vmul.f32 %v3154_v19, %v362_v30  ;;  %v292_v10 = vmul.f32 %v3113_v13, %v287_v12  ;;  %v410_v42 = vsel %vm159_vm1, %v3056_v56, 0.0  ;;  %v309_v41 = vsel %vm159_vm1, %v2992_v38, 0.0 }
 0x120   :  { %4868 = vst [vmem:[#allocation40_spill] sm:$0xff] %v3218_v36  ;;  %v313_v36 = vmul.f32 %v3126_v31, %v308_v14  ;;  %v516_v14 = vmul.f32 %v3234_v24, %v511_v62  ;;  %v248_v29 = vadd.f32 %v244_v8, %v226_v40  ;;  %v245_v56 = vmul.f32 %v3097_v61, %v240_v34 }
 0x121   :  { %4869 = vst [vmem:[#allocation41_spill] sm:$0xff] %v3220_v1  ;;  %v450_v1 = vadd.f32 %v446_v33, %v428_v58  ;;  %v213_v58 = vmul.f32 %v3066_v60, %v208_v53  ;;  %v266_v60 = vmul.f32 %v3108_v4, %v261_v9  ;;  %v415_v38 = vmul.f32 %v3167_v11, %v410_v42  ;;  %v4871_v42 = vld [vmem:[#allocation37_spill] sm:$0xff] }
 0x122   :  { %v317_v46 = vadd.f32 %v313_v36, %v295_v21  ;;  %v3281_v36 = vstv %s3232_s17  ;;  %v591_v61 = vsel %vm158_vm0, %v3118_v35, 0.0  ;;  %v442_v12 = vsel %vm160_vm2, %v3103_v63, 0.0  ;;  %v4870_v63 = vld [vmem:[#allocation24_spill] sm:$0xff]  ;;  %s2466_s17 = sld [smem:[#allocation3 + $0x27]] }
 0x123   :  { %v472_v33 = vadd.f32 %v468_v16, %v450_v1  ;;  %v191_v16 = vmul.f32 %v3064_v59, %v186_v17  ;;  %v3300_v20 = vpop.permute.xlu2 %585  ;;  %v613_v35 = vsel %vm159_vm1, %v3139_v49, 0.0  ;;  %v447_v49 = vmul.f32 %v3197_v18, %v442_v12 }
 0x124   :  { %v327_v59 = vadd.f32 %v323_v6, %v317_v46 }
 0x125   :  { %v498_v7 = vadd.f32 %v494_v55, %v472_v33  ;;  %v543_v55 = vsel %vm160_vm2, %v3058_v57, 0.0  ;;  %v217_v21 = vadd.f32 %v213_v58, %v191_v16  ;;  %v388_v57 = vsel %vm158_vm0, %v3042_v51, 0.0 }
 0x126   :  { %v548_v53 = vmul.f32 %v3281_v36, %v543_v55  ;;  %v3312_v51 = vstv %s3257_s18  ;;  %v565_v33 = vsel %vm161_vm3, %v3088_v23, 0.0  ;;  %v349_v6 = vadd.f32 %v345_v39, %v327_v59  ;;  %s2467_s18 = sld [smem:[#allocation3 + $0x28]] }
 0x127   :  { %v3266_v44 = vpop.permute.xlu1 %459  ;;  %v3268_v1 = vpop.permute.xlu0 %385  ;;  %v520_v62 = vadd.f32 %v516_v14, %v498_v7  ;;  %v270_v14 = vadd.f32 %v266_v60, %v248_v29  ;;  %v393_v8 = vmul.f32 %v3161_v25, %v388_v57  ;;  %v262_v23 = vsel %vm161_vm3, %v3018_v45, 0.0 }
 0x128   :  { %v227_v7 = vadd.f32 %v223_v47, %v217_v21  ;;  %v371_v40 = vadd.f32 %v367_v32, %v349_v6  ;;  %v570_v9 = vmul.f32 %v3312_v51, %v565_v33  ;;  %v314_v16 = vmul.f32 %v3126_v31, %v309_v41  ;;  %v4872_v41 = vld [vmem:[#allocation34_spill] sm:$0xff] }
 0x129   :  { %v530_v17 = vadd.f32 %v526_v15, %v520_v62  ;;  %v3335_v15 = vstv %s3286_s19  ;;  %v296_v62 = vadd.f32 %v292_v10, %v270_v14  ;;  %v267_v45 = vmul.f32 %v3108_v4, %v262_v23  ;;  %s2468_s19 = sld [smem:[#allocation3 + $0x29]] }
 0x12a   :  { %v397_v30 = vadd.f32 %v393_v8, %v371_v40  ;;  %v425_v55 = vmul.f32 %v3185_v5, %v2796_v2  ;;  %v249_v39 = vadd.f32 %v245_v56, %v227_v7  ;;  %v3349_v59 = vstv %s3298_s20  ;;  %v4873_v7 = vld [vmem:[#allocation27_spill] sm:$0xff]  ;;  %s2469_s20 = sld [smem:[#allocation3 + $0x2a]] }
 0x12b   :  { %v552_v58 = vadd.f32 %v548_v53, %v530_v17  ;;  %v288_v4 = vsel %vm158_vm0, %v3030_v48, 0.0  ;;  %v596_v2 = vmul.f32 %v3335_v15, %v591_v61  ;;  %v464_v47 = vsel %vm161_vm3, %v3122_v52, 0.0  ;;  %v3361_v21 = vpop.permute.xlu2 %607 }
 0x12c   :  { %v419_v60 = vadd.f32 %v415_v38, %v397_v30  ;;  %v324_v57 = vmul.f32 %v3131_v0, %v4870_v63  ;;  %v618_v48 = vmul.f32 %v3349_v59, %v613_v35  ;;  %v3372_v32 = vstv %s3325_s23  ;;  %s2470_s23 = sld [smem:[#allocation3 + $0x2b]] }
 0x12d   :  { %v574_v29 = vadd.f32 %v570_v9, %v552_v58  ;;  %v271_v17 = vadd.f32 %v267_v45, %v249_v39  ;;  %v293_v52 = vmul.f32 %v3113_v13, %v288_v4  ;;  %v318_v10 = vadd.f32 %v314_v16, %v296_v62  ;;  %v4874_v58 = vld [vmem:[#allocation35_spill] sm:$0xff]  ;;  %v4876_v39 = vld [vmem:[#allocation36_spill] sm:$0xff] }
 0x12e   :  { %v490_v33 = vsel %vm158_vm0, %v4871_v42, 0.0  ;;  %v341_v14 = vsel %vm160_vm2, %v4872_v41, 0.0  ;;  %v429_v8 = vadd.f32 %v425_v55, %v419_v60  ;;  %v469_v56 = vmul.f32 %v3208_v22, %v464_v47 }
 0x12f   :  { %v3321_v43 = vpop.permute.xlu1 %485  ;;  %v3323_v46 = vpop.permute.xlu0 %407  ;;  %v600_v6 = vadd.f32 %v596_v2, %v574_v29  ;;  %v512_v23 = vsel %vm159_vm1, %v3175_v26, 0.0  ;;  %v628_v13 = vmul.f32 %v3372_v32, %v4873_v7  ;;  %v3388_v40 = vstv %s3340_s24  ;;  %v4875_v26 = vld [vmem:[#allocation32_spill] sm:$0xff]  ;;  %s2471_s24 = sld [smem:[#allocation3 + $0x2c]] }
 0x130   :  { %v451_v9 = vadd.f32 %v447_v49, %v429_v8  ;;  %v363_v16 = vsel %vm161_vm3, %v4874_v58, 0.0  ;;  %v495_v62 = vmul.f32 %v3226_v50, %v490_v33  ;;  %v310_v45 = vsel %vm159_vm1, %v4875_v26, 0.0 }
 0x131   :  { %v622_v61 = vadd.f32 %v618_v48, %v600_v6  ;;  %v346_v30 = vmul.f32 %v3134_v3, %v341_v14  ;;  %v389_v12 = vsel %vm158_vm0, %v4876_v39, 0.0  ;;  %v517_v35 = vmul.f32 %v3234_v24, %v512_v23 }
 0x132   :  { %v473_v55 = vadd.f32 %v469_v56, %v451_v9  ;;  %v297_v60 = vadd.f32 %v293_v52, %v271_v17  ;;  %v328_v29 = vadd.f32 %v324_v57, %v318_v10  ;;  %v368_v2 = vmul.f32 %v3154_v19, %v363_v16  ;;  %v4878_v17 = vld [vmem:[#allocation26_spill] sm:$0xff] }
 0x133   :  { %v3409_v47 = vstv %s3363_s25  ;;  %v3411_v63 = vpop.permute.xlu2 %487  ;;  %v315_v49 = vmul.f32 %v3126_v31, %v310_v45  ;;  %v632_v33 = vadd.f32 %v628_v13, %v622_v61  ;;  %v394_v57 = vmul.f32 %v3161_v25, %v389_v12  ;;  %v4880_v61 = vld [vmem:[#allocation25_spill] sm:$0xff]  ;;  %s2472_s25 = sld [smem:[#allocation3 + $0x2d]] }
 0x134   :  { %v499_v48 = vadd.f32 %v495_v62, %v473_v55  ;;  %v350_v6 = vadd.f32 %v346_v30, %v328_v29  ;;  %v527_v52 = vmul.f32 %v3260_v27, %v4878_v17  ;;  %v544_v31 = vsel %vm160_vm2, %v3182_v28, 0.0  ;;  %v4881_v55 = vld [vmem:[#allocation41_spill] sm:$0xff] }
 0x135   :  { %v3431_v58 = vstv %s3392_s4  ;;  %v319_v16 = vadd.f32 %v315_v49, %v297_v60  ;;  %v325_v62 = vmul.f32 %v3131_v0, %v4880_v61  ;;  %v549_v28 = vmul.f32 %v3281_v36, %v544_v31  ;;  %s2473_s4 = sld [smem:[#allocation3 + $0x2e]] }
 0x136   :  { %v521_v8 = vadd.f32 %v517_v35, %v499_v48  ;;  %v372_v7 = vadd.f32 %v368_v2, %v350_v6  ;;  %v566_v30 = vsel %vm161_vm3, %v3239_v37, 0.0  ;;  %v364_v39 = vsel %vm161_vm3, %v4881_v55, 0.0  ;;  %v4883_v2 = vld [vmem:[#allocation22_spill] sm:$0xff] }
 0x137   :  { %v3369_v34 = vpop.permute.xlu1 %507  ;;  %v638_v53 = vpop.permute.xlu0 %637  ;;  %v426_v49 = vmul.f32 %v3185_v5, %v4883_v2  ;;  %v390_v37 = vsel %vm158_vm0, %v3268_v1, 0.0  ;;  %v329_v48 = vadd.f32 %v325_v62, %v319_v16  ;;  %v571_v6 = vmul.f32 %v3312_v51, %v566_v30 }
 0x138   :  { %v645_v38 = vsel %vm160_vm2, %v638_v53, 0.0  ;;  %v4877_v53 = vld [vmem:[#allocation38_spill] sm:$0xff]  ;;  %v398_v45 = vadd.f32 %v394_v57, %v372_v7  ;;  %v531_v12 = vadd.f32 %v527_v52, %v521_v8  ;;  %v412_v17 = vsel %vm159_vm1, %v3323_v46, 0.0 }
 0x139   :  { %v650_v4 = vmul.f32 %v3388_v40, %v645_v38  ;;  %v411_v42 = vsel %vm159_vm1, %v4877_v53, 0.0  ;;  %v4879_v38 = vld [vmem:[#allocation39_spill] sm:$0xff]  ;;  %v369_v53 = vmul.f32 %v3154_v19, %v364_v39  ;;  %v395_v19 = vmul.f32 %v3161_v25, %v390_v37 }
 0x13a   :  { %v416_v13 = vmul.f32 %v3167_v11, %v411_v42  ;;  %v342_v9 = vsel %vm160_vm2, %v4879_v38, 0.0  ;;  %v592_v31 = vsel %vm158_vm0, %v3300_v20, 0.0  ;;  %v417_v46 = vmul.f32 %v3167_v11, %v412_v17 }
 0x13b   :  { %v654_v56 = vadd.f32 %v650_v4, %v632_v33  ;;  %v347_v35 = vmul.f32 %v3134_v3, %v342_v9  ;;  %v4882_v4 = vld [vmem:[#allocation40_spill] sm:$0xff]  ;;  %v465_v3 = vsel %vm161_vm3, %v3266_v44, 0.0  ;;  %v510_v1 = vpop.permute.xlu2 %509  ;;  %v491_v44 = vsel %vm158_vm0, %v3321_v43, 0.0 }
 0x13c   :  { %v443_v60 = vsel %vm160_vm2, %v4882_v4, 0.0  ;;  %v420_v29 = vadd.f32 %v416_v13, %v398_v45  ;;  %v513_v25 = vsel %vm159_vm1, %v3369_v34, 0.0  ;;  %v614_v43 = vsel %vm159_vm1, %v3361_v21, 0.0 }
 0x13d   :  { %v448_v57 = vmul.f32 %v3197_v18, %v443_v60  ;;  %v351_v52 = vadd.f32 %v347_v35, %v329_v48  ;;  %v496_v13 = vmul.f32 %v3226_v50, %v491_v44  ;;  %v597_v20 = vmul.f32 %v3335_v15, %v592_v31  ;;  %v4885_v60 = vld [vmem:[#allocation28_spill] sm:$0xff] }
 0x13e   :  { %v430_v8 = vadd.f32 %v426_v49, %v420_v29  ;;  %v518_v61 = vmul.f32 %v3234_v24, %v513_v25  ;;  %v619_v62 = vmul.f32 %v3349_v59, %v614_v43  ;;  %v4886_v29 = vld [vmem:[#allocation29_spill] sm:$0xff] }
 0x13f   :  { %v440_v41 = vpop.permute.xlu1 %439  ;;  %v660_v14 = vpop.permute.xlu0 %659  ;;  %v629_v2 = vmul.f32 %v3372_v32, %v4886_v29 }
 0x140   :  { %v667_v10 = vsel %vm161_vm3, %v660_v14, 0.0  ;;  %v452_v7 = vadd.f32 %v448_v57, %v430_v8  ;;  %v444_v11 = vsel %vm160_vm2, %v440_v41, 0.0  ;;  %v514_v8 = vsel %vm159_vm1, %v510_v1, 0.0 }
 0x141   :  { %v672_v23 = vmul.f32 %v3409_v47, %v667_v10  ;;  %v553_v10 = vadd.f32 %v549_v28, %v531_v12  ;;  %v449_v4 = vmul.f32 %v3197_v18, %v444_v11 }
 0x143   :  { %v676_v26 = vadd.f32 %v672_v23, %v654_v56  ;;  %v470_v56 = vmul.f32 %v3208_v22, %v465_v3  ;;  %v373_v23 = vadd.f32 %v369_v53, %v351_v52  ;;  %v575_v38 = vadd.f32 %v571_v6, %v553_v10  ;;  %v610_v12 = vpop.permute.xlu2 %609 }
 0x144   :  { %v492_v3 = vsel %vm158_vm0, %v3411_v63, 0.0 }
 0x145   :  { %v682_v0 = vadd.f32 %v3431_v58, %v676_v26  ;;  %v399_v9 = vadd.f32 %v395_v19, %v373_v23  ;;  %v474_v16 = vadd.f32 %v470_v56, %v452_v7  ;;  %v4884_v26 = vld [vmem:[#allocation23_spill] sm:$0xff]  ;;  %v601_v35 = vadd.f32 %v597_v20, %v575_v38 }
 0x146   :  { %v427_v45 = vmul.f32 %v3185_v5, %v4884_v26  ;;  %v497_v52 = vmul.f32 %v3226_v50, %v492_v3 }
 0x147   :  { %v3456_v42 = vmax.f32 %v682_v0, 0.0  ;;  %v540_v33 = vpop.permute.xlu1 %539  ;;  %v462_v14 = vpop.permute.xlu0 %461  ;;  %v421_v34 = vadd.f32 %v417_v46, %v399_v9  ;;  %v500_v30 = vadd.f32 %v496_v13, %v474_v16  ;;  %v528_v0 = vmul.f32 %v3260_v27, %v4885_v60 }
 0x148   :  { %v466_v55 = vsel %vm161_vm3, %v462_v14, 0.0  ;;  %v545_v41 = vsel %vm160_vm2, %v540_v33, 0.0  ;;  %v623_v18 = vadd.f32 %v619_v62, %v601_v35  ;;  %v615_v46 = vsel %vm159_vm1, %v610_v12, 0.0 }
 0x149   :  { %690 = vst [vmem:[#allocation2 + $0x2] sm:$0xff] %v3456_v42  ;;  %v522_v5 = vadd.f32 %v518_v61, %v500_v30  ;;  %v431_v37 = vadd.f32 %v427_v45, %v421_v34  ;;  %v471_v48 = vmul.f32 %v3208_v22, %v466_v55  ;;  %v550_v33 = vmul.f32 %v3281_v36, %v545_v41  ;;  %v4887_v34 = vld [vmem:[#allocation30_spill] sm:$0xff] }
 0x14a   :  { %v633_v19 = vadd.f32 %v629_v2, %v623_v18  ;;  %v519_v13 = vmul.f32 %v3234_v24, %v514_v8  ;;  %v620_v20 = vmul.f32 %v3349_v59, %v615_v46  ;;  %v529_v26 = vmul.f32 %v3260_v27, %v4887_v34 }
 0x14b   :  { %v453_v14 = vadd.f32 %v449_v4, %v431_v37  ;;  %v532_v57 = vadd.f32 %v528_v0, %v522_v5  ;;  %v642_v43 = vpop.permute.xlu2 %641 }
 0x14c   :  { %v647_v55 = vsel %vm160_vm2, %v642_v43, 0.0 }
 0x14d   :  { %v475_v10 = vadd.f32 %v471_v48, %v453_v14  ;;  %v554_v31 = vadd.f32 %v550_v33, %v532_v57  ;;  %v652_v60 = vmul.f32 %v3388_v40, %v647_v55 }
 0x14f   :  { %v640_v28 = vpop.permute.xlu1 %639  ;;  %v562_v21 = vpop.permute.xlu0 %561  ;;  %v501_v1 = vadd.f32 %v497_v52, %v475_v10  ;;  %v4889_v52 = vld [vmem:[#allocation33_spill] sm:$0xff] }
 0x150   :  { %v3489_v39 = vld [vmem:[#allocation2] sm:$0xff]  ;;  %v646_v49 = vsel %vm160_vm2, %v640_v28, 0.0  ;;  %v567_v53 = vsel %vm161_vm3, %v562_v21, 0.0  ;;  %v631_v10 = vmul.f32 %v3372_v32, %v4889_v52 }
 0x151   :  { %753 = vrot.lane.b32.xlu1 %v3489_v39, %s2705_s6  ;;  %721 = vrot.lane.b32.xlu0 %v3489_v39, %s2708_s22  ;;  %v651_v6 = vmul.f32 %v3388_v40, %v646_v49  ;;  %v572_v17 = vmul.f32 %v3312_v51, %v567_v53  ;;  %v523_v61 = vadd.f32 %v519_v13, %v501_v1  ;;  %v4888_v21 = vld [vmem:[#allocation31_spill] sm:$0xff] }
 0x152   :  { %699 = vrot.lane.b32.xlu2 %v3489_v39, %s2706_s8  ;;  %v630_v30 = vmul.f32 %v3372_v32, %v4888_v21  ;;  %v3543_v35 = vld [vmem:[#allocation2 + $0x1] sm:$0xff] }
 0x153   :  { %v655_v23 = vadd.f32 %v651_v6, %v633_v19  ;;  %v576_v7 = vadd.f32 %v572_v17, %v554_v31  ;;  %v612_v4 = vpop.permute.xlu2 %611  ;;  %v533_v41 = vadd.f32 %v529_v26, %v523_v61 }
 0x154   :  { %v616_v2 = vsel %vm159_vm1, %v612_v4, 0.0  ;;  %v3718_v4 = vstv %s2453_s26  ;;  %s2474_s26 = sld [smem:[#allocation3 + $0x2f]] }
 0x155   :  { %v621_v53 = vmul.f32 %v3349_v59, %v616_v2 }
 0x157   :  { %v662_v22 = vpop.permute.xlu1 %661  ;;  %v588_v44 = vpop.permute.xlu0 %587 }
 0x158   :  { %v668_v63 = vsel %vm161_vm3, %v662_v22, 0.0  ;;  %v593_v56 = vsel %vm158_vm0, %v588_v44, 0.0 }
 0x159   :  { %v673_v50 = vmul.f32 %v3409_v47, %v668_v63  ;;  %v598_v25 = vmul.f32 %v3335_v15, %v593_v56 }
 0x15a   :  { %775 = vrot.lane.b32.xlu2 %v3489_v39, %s2707_s21 }
 0x15b   :  { %v677_v38 = vadd.f32 %v673_v50, %v655_v23  ;;  %v602_v9 = vadd.f32 %v598_v25, %v576_v7 }
 0x15d   :  { %v683_v16 = vadd.f32 %v3431_v58, %v677_v38  ;;  %v624_v28 = vadd.f32 %v620_v20, %v602_v9 }
 0x15f   :  { %v3531_v11 = vmax.f32 %v683_v16, 0.0  ;;  %v564_v62 = vpop.permute.xlu1 %563  ;;  %v542_v45 = vpop.permute.xlu0 %541  ;;  %v634_v5 = vadd.f32 %v630_v30, %v624_v28 }
 0x160   :  { %v546_v24 = vsel %vm160_vm2, %v542_v45, 0.0  ;;  %v568_v27 = vsel %vm161_vm3, %v564_v62, 0.0 }
 0x161   :  { %691 = vst [vmem:[#allocation2 + $0xa] sm:$0xff] %v3531_v11  ;;  %v551_v12 = vmul.f32 %v3281_v36, %v546_v24  ;;  %v573_v0 = vmul.f32 %v3312_v51, %v568_v27  ;;  %v656_v18 = vadd.f32 %v652_v60, %v634_v5  ;;  %v3722_v60 = vstv %s2452_s27  ;;  %s2475_s27 = sld [smem:[#allocation3 + $0x30]] }
 0x162   :  { %801 = vrot.lane.b32.xlu2 %v3543_v35, %s2706_s8 }
 0x163   :  { %v555_v29 = vadd.f32 %v551_v12, %v533_v41 }
 0x165   :  { %v577_v51 = vadd.f32 %v573_v0, %v555_v29 }
 0x167   :  { %v664_v36 = vpop.permute.xlu1 %663  ;;  %v590_v49 = vpop.permute.xlu0 %589 }
 0x168   :  { %v669_v37 = vsel %vm161_vm3, %v664_v36, 0.0  ;;  %v594_v48 = vsel %vm158_vm0, %v590_v49, 0.0  ;;  %v3558_v3 = vld [vmem:[#allocation2 + $0x8] sm:$0xff] }
 0x169   :  { %v674_v33 = vmul.f32 %v3409_v47, %v669_v37  ;;  %v599_v14 = vmul.f32 %v3335_v15, %v594_v48  ;;  %723 = vrot.lane.b32.xlu1 %v3558_v3, %s2708_s22  ;;  %701 = vrot.lane.b32.xlu0 %v3558_v3, %s2706_s8  ;;  %v3640_v43 = vld [vmem:[#allocation2 + $0x3] sm:$0xff]  ;;  %v3674_v9 = vld [vmem:[#allocation2 + $0xb] sm:$0xff]  ;;  %v3732_v48 = vstv %s2454_s28  ;;  %s2476_s28 = sld [smem:[#allocation3 + $0x31]] }
 0x16a   :  { %777 = vrot.lane.b32.xlu2 %v3558_v3, %s2707_s21  ;;  %v3686_v34 = vld [vmem:[#allocation2 + $0x4] sm:$0xff]  ;;  %v745_v52 = vmul.f32 %v3732_v48, %v3558_v3 }
 0x16b   :  { %v678_v6 = vadd.f32 %v674_v33, %v656_v18  ;;  %v603_v57 = vadd.f32 %v599_v14, %v577_v51 }
 0x16d   :  { %v684_v59 = vadd.f32 %v3431_v58, %v678_v6  ;;  %v625_v17 = vadd.f32 %v621_v53, %v603_v57 }
 0x16f   :  { %v3571_v19 = vmax.f32 %v684_v59, 0.0  ;;  %v644_v15 = vpop.permute.xlu0 %643  ;;  %v666_v22 = vpop.permute.xlu1 %665  ;;  %v635_v8 = vadd.f32 %v631_v10, %v625_v17  ;;  %v3747_v17 = vstv %s2455_s29  ;;  %s2477_s29 = sld [smem:[#allocation7 + $0x1]] }
 0x170   :  { %v648_v44 = vsel %vm160_vm2, %v644_v15, 0.0  ;;  %v670_v31 = vsel %vm161_vm3, %v666_v22, 0.0 }
 0x171   :  { %692 = vst [vmem:[#allocation2 + $0x1a] sm:$0xff] %v3571_v19  ;;  %v653_v63 = vmul.f32 %v3388_v40, %v648_v44  ;;  %v675_v56 = vmul.f32 %v3409_v47, %v670_v31  ;;  %755 = vrot.lane.b32.xlu1 %v3558_v3, %s2705_s6  ;;  %823 = vrot.lane.b32.xlu0 %v3543_v35, %s2708_s22  ;;  %v3596_v40 = vld [vmem:[#allocation2 + $0x9] sm:$0xff] }
 0x172   :  { %v3765_v3 = vld [vmem:[#allocation2 + $0xc] sm:$0xff] }
 0x173   :  { %v657_v32 = vadd.f32 %v653_v63, %v635_v8 }
 0x175   :  { %v679_v23 = vadd.f32 %v675_v56, %v657_v32  ;;  %v3761_v32 = vstv %s2456_s0  ;;  %s2479_s0 = sld [smem:[#allocation3 + $0x33]] }
 0x177   :  { %v685_v46 = vadd.f32 %v3431_v58, %v679_v23  ;;  %v3763_v23 = vstv %s2457_s30  ;;  %s2478_s30 = sld [smem:[#allocation3 + $0x32]] }
 0x178   :  { %v3585_v50 = vld [vmem:[#allocation2 + $0x18] sm:$0xff] }
 0x179   :  { %v3587_v25 = vmax.f32 %v685_v46, 0.0  ;;  %703 = vrot.lane.b32.xlu1 %v3585_v50, %s2706_s8  ;;  %855 = vrot.lane.b32.xlu0 %v3543_v35, %s2705_s6  ;;  %v3618_v58 = vld [vmem:[#allocation2 + $0x19] sm:$0xff]  ;;  %v746_v51 = vmul.f32 %v3732_v48, %v3585_v50 }
 0x17a   :  { %725 = vrot.lane.b32.xlu2 %v3585_v50, %s2708_s22 }
 0x17b   :  { %693 = vst [vmem:[#allocation2 + $0x22] sm:$0xff] %v3587_v25 }
 0x181   :  { %877 = vrot.lane.b32.xlu1 %v3543_v35, %s2707_s21  ;;  %803 = vrot.lane.b32.xlu0 %v3596_v40, %s2706_s8 }
 0x182   :  { %825 = vrot.lane.b32.xlu2 %v3596_v40, %s2708_s22  ;;  %v3614_v47 = vld [vmem:[#allocation2 + $0x20] sm:$0xff] }
 0x183   :  { %v3650_v13 = vld [vmem:[#allocation2 + $0x21] sm:$0xff] }
 0x184   :  { %v3741_v6 = vld [vmem:[#allocation2 + $0x1b] sm:$0xff] }
 0x189   :  { %757 = vrot.lane.b32.xlu1 %v3585_v50, %s2705_s6  ;;  %903 = vrot.lane.b32.xlu0 %v3456_v42, %s2706_s8 }
 0x18a   :  { %925 = vrot.lane.b32.xlu2 %v3456_v42, %s2708_s22 }
 0x191   :  { %857 = vrot.lane.b32.xlu1 %v3596_v40, %s2705_s6  ;;  %779 = vrot.lane.b32.xlu0 %v3585_v50, %s2707_s21 }
 0x192   :  { %705 = vrot.lane.b32.xlu2 %v3614_v47, %s2706_s8 }
 0x199   :  { %805 = vrot.lane.b32.xlu1 %v3618_v58, %s2706_s8  ;;  %727 = vrot.lane.b32.xlu0 %v3614_v47, %s2708_s22 }
 0x19a   :  { %879 = vrot.lane.b32.xlu2 %v3596_v40, %s2707_s21 }
 0x1a1   :  { %827 = vrot.lane.b32.xlu1 %v3618_v58, %s2708_s22  ;;  %957 = vrot.lane.b32.xlu0 %v3456_v42, %s2705_s6 }
 0x1a2   :  { %905 = vrot.lane.b32.xlu2 %v3531_v11, %s2706_s8 }
 0x1a9   :  { %759 = vrot.lane.b32.xlu1 %v3614_v47, %s2705_s6  ;;  %979 = vrot.lane.b32.xlu0 %v3456_v42, %s2707_s21 }
 0x1aa   :  { %927 = vrot.lane.b32.xlu2 %v3531_v11, %s2708_s22 }
 0x1ac   :  { %v3638_v7 = vpop.permute.xlu2 %699 }
 0x1b1   :  { %781 = vrot.lane.b32.xlu1 %v3614_v47, %s2707_s21  ;;  %1005 = vrot.lane.b32.xlu0 %v3640_v43, %s2706_s8 }
 0x1b2   :  { %859 = vrot.lane.b32.xlu2 %v3618_v58, %s2705_s6 }
 0x1b4   :  { %v3648_v1 = vpop.permute.xlu2 %775 }
 0x1b9   :  { %807 = vrot.lane.b32.xlu1 %v3650_v13, %s2706_s8  ;;  %1027 = vrot.lane.b32.xlu0 %v3640_v43, %s2708_s22 }
 0x1ba   :  { %881 = vrot.lane.b32.xlu2 %v3618_v58, %s2707_s21 }
 0x1bc   :  { %v3662_v38 = vpop.permute.xlu2 %801 }
 0x1c1   :  { %829 = vrot.lane.b32.xlu1 %v3650_v13, %s2708_s22  ;;  %959 = vrot.lane.b32.xlu0 %v3531_v11, %s2705_s6 }
 0x1c2   :  { %907 = vrot.lane.b32.xlu2 %v3571_v19, %s2706_s8 }
 0x1c3   :  { %v3682_v16 = vpop.permute.xlu1 %753  ;;  %v3684_v61 = vpop.permute.xlu0 %721 }
 0x1c4   :  { %v3672_v20 = vpop.permute.xlu2 %777 }
 0x1c5   :  { %v784_v8 = vsel %vm161_vm3, %v3672_v20, 0.0 }
 0x1c6   :  { %v789_v46 = vmul.f32 %v3761_v32, %v784_v8 }
 0x1c9   :  { %1059 = vrot.lane.b32.xlu1 %v3640_v43, %s2705_s6  ;;  %981 = vrot.lane.b32.xlu0 %v3531_v11, %s2707_s21 }
 0x1ca   :  { %929 = vrot.lane.b32.xlu2 %v3571_v19, %s2708_s22 }
 0x1d1   :  { %1081 = vrot.lane.b32.xlu1 %v3640_v43, %s2707_s21  ;;  %1007 = vrot.lane.b32.xlu0 %v3674_v9, %s2706_s8 }
 0x1d2   :  { %861 = vrot.lane.b32.xlu2 %v3650_v13, %s2705_s6 }
 0x1d4   :  { %v726_v62 = vpop.permute.xlu2 %725 }
 0x1d5   :  { %v731_v55 = vsel %vm159_vm1, %v726_v62, 0.0 }
 0x1d6   :  { %v736_v0 = vmul.f32 %v3718_v4, %v731_v55 }
 0x1d9   :  { %1107 = vrot.lane.b32.xlu1 %v3686_v34, %s2706_s8  ;;  %1029 = vrot.lane.b32.xlu0 %v3674_v9, %s2708_s22 }
 0x1da   :  { %883 = vrot.lane.b32.xlu2 %v3650_v13, %s2707_s21 }
 0x1db   :  { %v724_v26 = vpop.permute.xlu1 %723  ;;  %v702_v45 = vpop.permute.xlu0 %701 }
 0x1dc   :  { %v3694_v28 = vpop.permute.xlu2 %825  ;;  %v730_v12 = vsel %vm159_vm1, %v724_v26, 0.0  ;;  %v708_v27 = vsel %vm158_vm0, %v702_v45, 0.0  ;;  %v3777_v45 = vstv %s2458_s11  ;;  %s2480_s11 = sld [smem:[#allocation3 + $0x34]] }
 0x1dd   :  { %v735_v36 = vmul.f32 %v3718_v4, %v730_v12  ;;  %v713_v49 = vmul.f32 %v3722_v60, %v708_v27 }
 0x1df   :  { %v739_v57 = vadd.f32 %v735_v36, %v713_v49  ;;  %v3794_v36 = vstv %s2460_s13  ;;  %s2482_s13 = sld [smem:[#allocation3 + $0x36]] }
 0x1e1   :  { %1129 = vrot.lane.b32.xlu1 %v3686_v34, %s2708_s22  ;;  %961 = vrot.lane.b32.xlu0 %v3571_v19, %s2705_s6  ;;  %v749_v31 = vadd.f32 %v745_v52, %v739_v57 }
 0x1e2   :  { %909 = vrot.lane.b32.xlu2 %v3587_v25, %s2706_s8 }
 0x1e3   :  { %v756_v21 = vpop.permute.xlu1 %755  ;;  %v3702_v30 = vpop.permute.xlu0 %823 }
 0x1e4   :  { %v3704_v24 = vpop.permute.xlu2 %925  ;;  %v762_v14 = vsel %vm160_vm2, %v756_v21, 0.0  ;;  %v832_v21 = vsel %vm159_vm1, %v3694_v28, 0.0  ;;  %v3790_v28 = vstv %s2459_s12  ;;  %s2481_s12 = sld [smem:[#allocation3 + $0x35]] }
 0x1e5   :  { %v767_v10 = vmul.f32 %v3747_v17, %v762_v14  ;;  %v847_v49 = vmul.f32 %v3790_v28, %v3596_v40  ;;  %v3808_v40 = vstv %s2462_s14  ;;  %s2484_s14 = sld [smem:[#allocation3 + $0x38]] }
 0x1e7   :  { %v771_v56 = vadd.f32 %v767_v10, %v749_v31 }
 0x1e9   :  { %1061 = vrot.lane.b32.xlu1 %v3674_v9, %s2705_s6  ;;  %983 = vrot.lane.b32.xlu0 %v3571_v19, %s2707_s21  ;;  %v793_v20 = vadd.f32 %v789_v46, %v771_v56  ;;  %v3815_v46 = vld [vmem:[#allocation2 + $0x23] sm:$0xff] }
 0x1ea   :  { %931 = vrot.lane.b32.xlu2 %v3587_v25, %s2708_s22 }
 0x1eb   :  { %v704_v41 = vpop.permute.xlu1 %703  ;;  %v3720_v5 = vpop.permute.xlu0 %855 }
 0x1ec   :  { %v709_v29 = vsel %vm158_vm0, %v704_v41, 0.0  ;;  %v706_v2 = vpop.permute.xlu2 %705 }
 0x1ed   :  { %v714_v18 = vmul.f32 %v3722_v60, %v709_v29  ;;  %v710_v37 = vsel %vm158_vm0, %v706_v2, 0.0 }
 0x1ee   :  { %v3735_v53 = vmul.f32 %v3722_v60, %v710_v37 }
 0x1ef   :  { %v740_v33 = vadd.f32 %v736_v0, %v714_v18  ;;  %v837_v0 = vmul.f32 %v3777_v45, %v832_v21 }
 0x1f1   :  { %1083 = vrot.lane.b32.xlu1 %v3674_v9, %s2707_s21  ;;  %1009 = vrot.lane.b32.xlu0 %v3741_v6, %s2706_s8  ;;  %v750_v59 = vadd.f32 %v746_v51, %v740_v33  ;;  %v3798_v33 = vstv %s2461_s1  ;;  %s2483_s1 = sld [smem:[#allocation3 + $0x37]] }
 0x1f2   :  { %1161 = vrot.lane.b32.xlu2 %v3686_v34, %s2705_s6 }
 0x1f3   :  { %v3754_v15 = vpop.permute.xlu1 %877  ;;  %v804_v22 = vpop.permute.xlu0 %803 }
 0x1f4   :  { %v880_v44 = vpop.permute.xlu2 %879  ;;  %v810_v63 = vsel %vm158_vm0, %v804_v22, 0.0 }
 0x1f5   :  { %v815_v50 = vmul.f32 %v3763_v23, %v810_v63  ;;  %v886_v51 = vsel %vm161_vm3, %v880_v44, 0.0 }
 0x1f6   :  { %v891_v8 = vmul.f32 %v3798_v33, %v886_v51 }
 0x1f7   :  { %v819_v27 = vadd.f32 %v815_v50, %v793_v20 }
 0x1f9   :  { %1109 = vrot.lane.b32.xlu1 %v3765_v3, %s2706_s8  ;;  %1031 = vrot.lane.b32.xlu0 %v3741_v6, %s2708_s22  ;;  %v841_v2 = vadd.f32 %v837_v0, %v819_v27 }
 0x1fa   :  { %1183 = vrot.lane.b32.xlu2 %v3686_v34, %s2707_s21 }
 0x1fb   :  { %v758_v62 = vpop.permute.xlu1 %757  ;;  %v3775_v26 = vpop.permute.xlu0 %903  ;;  %v851_v52 = vadd.f32 %v847_v49, %v841_v2 }
 0x1fc   :  { %v763_v55 = vsel %vm160_vm2, %v758_v62, 0.0  ;;  %v906_v12 = vpop.permute.xlu2 %905  ;;  %v3822_v62 = vstv %s2463_s15  ;;  %s2485_s15 = sld [smem:[#allocation3 + $0x39]] }
 0x1fd   :  { %v768_v41 = vmul.f32 %v3747_v17, %v763_v55  ;;  %v912_v31 = vsel %vm158_vm0, %v906_v12, 0.0 }
 0x1fe   :  { %v917_v50 = vmul.f32 %v3808_v40, %v912_v31  ;;  %v729_v31 = vsel %vm159_vm1, %v3684_v61, 0.0 }
 0x1ff   :  { %v772_v29 = vadd.f32 %v768_v41, %v750_v59 }
 0x201   :  { %1131 = vrot.lane.b32.xlu1 %v3765_v3, %s2708_s22  ;;  %963 = vrot.lane.b32.xlu0 %v3587_v25, %s2705_s6 }
 0x202   :  { %985 = vrot.lane.b32.xlu2 %v3587_v25, %s2707_s21 }
 0x203   :  { %v858_v18 = vpop.permute.xlu1 %857  ;;  %v780_v37 = vpop.permute.xlu0 %779 }
 0x204   :  { %v864_v14 = vsel %vm160_vm2, %v858_v18, 0.0  ;;  %v785_v57 = vsel %vm161_vm3, %v780_v37, 0.0  ;;  %v928_v59 = vpop.permute.xlu2 %927 }
 0x205   :  { %v869_v10 = vmul.f32 %v3794_v36, %v864_v14  ;;  %v790_v22 = vmul.f32 %v3761_v32, %v785_v57  ;;  %v934_v56 = vsel %vm159_vm1, %v928_v59, 0.0  ;;  %v747_v14 = vmul.f32 %v3732_v48, %v3614_v47  ;;  %v3842_v57 = vld [vmem:[#allocation2 + $0x1c] sm:$0xff] }
 0x206   :  { %v939_v55 = vmul.f32 %v3822_v62, %v934_v56  ;;  %v707_v56 = vsel %vm158_vm0, %v3638_v7, 0.0 }
 0x207   :  { %v873_v44 = vadd.f32 %v869_v10, %v851_v52  ;;  %v794_v63 = vadd.f32 %v790_v22, %v772_v29 }
 0x209   :  { %v895_v20 = vadd.f32 %v891_v8, %v873_v44  ;;  %1011 = vrot.lane.b32.xlu1 %v3815_v46, %s2706_s8  ;;  %1063 = vrot.lane.b32.xlu0 %v3741_v6, %s2705_s6  ;;  %v848_v44 = vmul.f32 %v3790_v28, %v3618_v58  ;;  %v712_v58 = vmul.f32 %v3722_v60, %v707_v56 }
 0x20a   :  { %1085 = vrot.lane.b32.xlu2 %v3741_v6, %s2707_s21  ;;  %v744_v60 = vmul.f32 %v3732_v48, %v3489_v39 }
 0x20b   :  { %v921_v21 = vadd.f32 %v917_v50, %v895_v20  ;;  %v806_v12 = vpop.permute.xlu1 %805  ;;  %v728_v27 = vpop.permute.xlu0 %727  ;;  %v734_v20 = vmul.f32 %v3718_v4, %v729_v31 }
 0x20c   :  { %v811_v41 = vsel %vm158_vm0, %v806_v12, 0.0  ;;  %v732_v0 = vsel %vm159_vm1, %v728_v27, 0.0  ;;  %v860_v29 = vpop.permute.xlu2 %859 }
 0x20d   :  { %v3831_v2 = vadd.f32 %v939_v55, %v921_v21  ;;  %v816_v49 = vmul.f32 %v3763_v23, %v811_v41  ;;  %v737_v18 = vmul.f32 %v3718_v4, %v732_v0  ;;  %v865_v8 = vsel %vm160_vm2, %v860_v29, 0.0 }
 0x20e   :  { %v870_v21 = vmul.f32 %v3794_v36, %v865_v8  ;;  %v738_v0 = vadd.f32 %v734_v20, %v712_v58 }
 0x20f   :  { %v820_v37 = vadd.f32 %v816_v49, %v794_v63  ;;  %v741_v51 = vadd.f32 %v737_v18, %v3735_v53 }
 0x211   :  { %1033 = vrot.lane.b32.xlu1 %v3815_v46, %s2708_s22  ;;  %1163 = vrot.lane.b32.xlu0 %v3765_v3, %s2705_s6  ;;  %v751_v59 = vadd.f32 %v747_v14, %v741_v51  ;;  %v761_v14 = vsel %vm160_vm2, %v3682_v16, 0.0  ;;  %v783_v16 = vsel %vm161_vm3, %v3648_v1, 0.0  ;;  %v809_v1 = vsel %vm158_vm0, %v3662_v38, 0.0 }
 0x212   :  { %1111 = vrot.lane.b32.xlu2 %v3842_v57, %s2706_s8  ;;  %v766_v39 = vmul.f32 %v3747_v17, %v761_v14  ;;  %v814_v38 = vmul.f32 %v3763_v23, %v809_v1 }
 0x213   :  { %v828_v52 = vpop.permute.xlu1 %827  ;;  %v3846_v10 = vpop.permute.xlu0 %957 }
 0x214   :  { %v833_v53 = vsel %vm159_vm1, %v828_v52, 0.0  ;;  %v882_v22 = vpop.permute.xlu2 %881 }
 0x215   :  { %v838_v47 = vmul.f32 %v3777_v45, %v833_v53  ;;  %v887_v50 = vsel %vm161_vm3, %v882_v22, 0.0  ;;  %v748_v53 = vadd.f32 %v744_v60, %v738_v0  ;;  %v3890_v22 = vld [vmem:[#allocation2 + $0x24] sm:$0xff]  ;;  %v885_v60 = vsel %vm161_vm3, %v3754_v15, 0.0 }
 0x216   :  { %v892_v61 = vmul.f32 %v3798_v33, %v887_v50  ;;  %v3907_v50 = vstv %s2464_s3  ;;  %s2486_s3 = sld [smem:[#allocation3 + $0x3a]] }
 0x217   :  { %v842_v63 = vadd.f32 %v838_v47, %v820_v37  ;;  %v770_v8 = vadd.f32 %v766_v39, %v748_v53  ;;  %v950_v58 = vmul.f32 %v3907_v50, %v3571_v19 }
 0x219   :  { %v852_v55 = vadd.f32 %v848_v44, %v842_v63  ;;  %1133 = vrot.lane.b32.xlu1 %v3842_v57, %s2708_s22  ;;  %1185 = vrot.lane.b32.xlu0 %v3765_v3, %s2707_s21 }
 0x21a   :  { %1065 = vrot.lane.b32.xlu2 %v3815_v46, %s2705_s6 }
 0x21b   :  { %v874_v7 = vadd.f32 %v870_v21, %v852_v55  ;;  %v760_v12 = vpop.permute.xlu1 %759  ;;  %v3873_v27 = vpop.permute.xlu0 %979  ;;  %v831_v21 = vsel %vm159_vm1, %v3702_v30, 0.0 }
 0x21c   :  { %v764_v4 = vsel %vm160_vm2, %v760_v12, 0.0  ;;  %v908_v41 = vpop.permute.xlu2 %907  ;;  %v836_v30 = vmul.f32 %v3777_v45, %v831_v21  ;;  %v933_v21 = vsel %vm159_vm1, %v3704_v24, 0.0  ;;  %v965_v24 = vsel %vm160_vm2, %v3846_v10, 0.0 }
 0x21d   :  { %v896_v29 = vadd.f32 %v892_v61, %v874_v7  ;;  %v769_v49 = vmul.f32 %v3747_v17, %v764_v4  ;;  %v913_v18 = vsel %vm158_vm0, %v908_v41, 0.0  ;;  %v788_v17 = vmul.f32 %v3761_v32, %v783_v16 }
 0x21e   :  { %v918_v37 = vmul.f32 %v3808_v40, %v913_v18  ;;  %v863_v18 = vsel %vm160_vm2, %v3720_v5, 0.0  ;;  %v911_v5 = vsel %vm158_vm0, %v3775_v26, 0.0  ;;  %v890_v16 = vmul.f32 %v3798_v33, %v885_v60 }
 0x21f   :  { %v773_v51 = vadd.f32 %v769_v49, %v751_v59  ;;  %v792_v7 = vadd.f32 %v788_v17, %v770_v8  ;;  %v868_v14 = vmul.f32 %v3794_v36, %v863_v18  ;;  %v849_v8 = vmul.f32 %v3790_v28, %v3650_v13 }
 0x220   :  { %v922_v52 = vadd.f32 %v918_v37, %v896_v29  ;;  %v846_v37 = vmul.f32 %v3790_v28, %v3543_v35  ;;  %v3948_v35 = vstv %s2465_s16  ;;  %v3989_v18 = vstv %s2467_s18  ;;  %s2487_s16 = sld [smem:[#allocation3 + $0x3b]] }
 0x221   :  { %1165 = vrot.lane.b32.xlu1 %v3842_v57, %s2705_s6  ;;  %1087 = vrot.lane.b32.xlu0 %v3815_v46, %s2707_s21  ;;  %v818_v41 = vadd.f32 %v814_v38, %v792_v7  ;;  %s2489_s18 = sld [smem:[#allocation3 + $0x3d]] }
 0x222   :  { %1113 = vrot.lane.b32.xlu2 %v3890_v22, %s2706_s8 }
 0x223   :  { %v782_v48 = vpop.permute.xlu1 %781  ;;  %v3895_v59 = vpop.permute.xlu0 %1005  ;;  %v840_v29 = vadd.f32 %v836_v30, %v818_v41  ;;  %v938_v30 = vmul.f32 %v3822_v62, %v933_v21  ;;  %v3981_v41 = vstv %s2466_s17  ;;  %s2488_s17 = sld [smem:[#allocation3 + $0x3c]] }
 0x224   :  { %v786_v47 = vsel %vm161_vm3, %v782_v48, 0.0  ;;  %v930_v31 = vpop.permute.xlu2 %929 }
 0x225   :  { %v791_v44 = vmul.f32 %v3761_v32, %v786_v47  ;;  %v935_v63 = vsel %vm159_vm1, %v930_v31, 0.0 }
 0x226   :  { %v940_v56 = vmul.f32 %v3822_v62, %v935_v63  ;;  %v916_v63 = vmul.f32 %v3808_v40, %v911_v5 }
 0x227   :  { %v795_v20 = vadd.f32 %v791_v44, %v773_v51  ;;  %v850_v51 = vadd.f32 %v846_v37, %v840_v29  ;;  %v948_v29 = vmul.f32 %v3907_v50, %v3456_v42 }
 0x228   :  { %v944_v55 = vadd.f32 %v940_v56, %v922_v52  ;;  %v949_v52 = vmul.f32 %v3907_v50, %v3531_v11 }
 0x229   :  { %1135 = vrot.lane.b32.xlu1 %v3890_v22, %s2708_s22  ;;  %1187 = vrot.lane.b32.xlu0 %v3842_v57, %s2707_s21  ;;  %v872_v44 = vadd.f32 %v868_v14, %v850_v51 }
 0x22a   :  { %1167 = vrot.lane.b32.xlu2 %v3890_v22, %s2705_s6  ;;  %v3923_v32 = vadd.f32 %v950_v58, %v944_v55  ;;  %v953_v11 = vadd.f32 %v949_v52, %v3831_v2 }
 0x22b   :  { %v808_v61 = vpop.permute.xlu1 %807  ;;  %v3927_v12 = vpop.permute.xlu0 %1027 }
 0x22c   :  { %v812_v19 = vsel %vm158_vm0, %v808_v61, 0.0  ;;  %v862_v4 = vpop.permute.xlu2 %861  ;;  %v1035_v42 = vsel %vm159_vm1, %v3927_v12, 0.0  ;;  %v4009_v12 = vstv %s2469_s20  ;;  %s2491_s20 = sld [smem:[#allocation3 + $0x3f]] }
 0x22d   :  { %v817_v0 = vmul.f32 %v3763_v23, %v812_v19  ;;  %v866_v26 = vsel %vm160_vm2, %v862_v4, 0.0 }
 0x22e   :  { %v871_v2 = vmul.f32 %v3794_v36, %v866_v26 }
 0x22f   :  { %v821_v49 = vadd.f32 %v817_v0, %v795_v20  ;;  %v894_v20 = vadd.f32 %v890_v16, %v872_v44  ;;  %v4019_v44 = vstv %s2471_s24  ;;  %s2493_s24 = sld [smem:[#allocation3 + $0x41]] }
 0x231   :  { %1189 = vrot.lane.b32.xlu0 %v3890_v22, %s2707_s21  ;;  %v920_v13 = vadd.f32 %v916_v63, %v894_v20  ;;  %v1050_v63 = vmul.f32 %v4009_v12, %v3640_v43 }
 0x233   :  { %v830_v23 = vpop.permute.xlu1 %829  ;;  %v960_v53 = vpop.permute.xlu0 %959  ;;  %v942_v4 = vadd.f32 %v938_v30, %v920_v13 }
 0x234   :  { %v834_v39 = vsel %vm159_vm1, %v830_v23, 0.0  ;;  %v966_v15 = vsel %vm160_vm2, %v960_v53, 0.0  ;;  %v884_v48 = vpop.permute.xlu2 %883 }
 0x235   :  { %v839_v47 = vmul.f32 %v3777_v45, %v834_v39  ;;  %v971_v31 = vmul.f32 %v3948_v35, %v966_v15  ;;  %v888_v45 = vsel %vm161_vm3, %v884_v48, 0.0  ;;  %v952_v10 = vadd.f32 %v948_v29, %v942_v4 }
 0x236   :  { %v893_v55 = vmul.f32 %v3798_v33, %v888_v45  ;;  %v987_v33 = vsel %vm161_vm3, %v3873_v27, 0.0  ;;  %v3997_v27 = vstv %s2468_s19  ;;  %v951_v48 = vmul.f32 %v3907_v50, %v3587_v25  ;;  %s2490_s19 = sld [smem:[#allocation3 + $0x3e]] }
 0x237   :  { %v843_v56 = vadd.f32 %v839_v47, %v821_v49  ;;  %v3963_v17 = vadd.f32 %v971_v31, %v953_v11  ;;  %v970_v49 = vmul.f32 %v3948_v35, %v965_v24  ;;  %v992_v37 = vmul.f32 %v3981_v41, %v987_v33 }
 0x238   :  { %v1040_v39 = vmul.f32 %v3997_v27, %v1035_v42  ;;  %v4011_v47 = vstv %s2470_s23  ;;  %v4026_v45 = vstv %s2472_s25  ;;  %v4045_v29 = vstv %s2476_s28  ;;  %s2492_s23 = sld [smem:[#allocation3 + $0x40]] }
 0x239   :  { %v853_v1 = vadd.f32 %v849_v8, %v843_v56  ;;  %v974_v23 = vadd.f32 %v970_v49, %v952_v10  ;;  %s2494_s25 = sld [smem:[#allocation3 + $0x42]] }
 0x23a   :  { %s2499_s28 = sld [smem:[#allocation3 + $0x47]] }
 0x23b   :  { %v875_v28 = vadd.f32 %v871_v2, %v853_v1  ;;  %v1060_v58 = vpop.permute.xlu1 %1059  ;;  %v3972_v7 = vpop.permute.xlu0 %981  ;;  %v996_v5 = vadd.f32 %v992_v37, %v974_v23  ;;  %v4051_v23 = vstv %s2477_s29  ;;  %s2500_s29 = sld [smem:[#allocation3 + $0x48]] }
 0x23c   :  { %v910_v38 = vpop.permute.xlu2 %909  ;;  %v1067_v11 = vsel %vm160_vm2, %v1060_v58, 0.0 }
 0x23d   :  { %v897_v61 = vadd.f32 %v893_v55, %v875_v28  ;;  %v914_v36 = vsel %vm158_vm0, %v910_v38, 0.0  ;;  %v1072_v56 = vmul.f32 %v4011_v47, %v1067_v11  ;;  %v4032_v28 = vstv %s2473_s4  ;;  %s2496_s4 = sld [smem:[#allocation3 + $0x44]] }
 0x23e   :  { %v919_v19 = vmul.f32 %v3808_v40, %v914_v36  ;;  %v1013_v40 = vsel %vm158_vm0, %v3895_v59, 0.0  ;;  %v4034_v38 = vstv %s2474_s26  ;;  %s2497_s26 = sld [smem:[#allocation3 + $0x45]] }
 0x23f   :  { %v1018_v52 = vmul.f32 %v3989_v18, %v1013_v40  ;;  %v1152_v33 = vmul.f32 %v4034_v38, %v3686_v34 }
 0x240   :  { %v923_v0 = vadd.f32 %v919_v19, %v897_v61  ;;  %v4039_v19 = vstv %s2475_s27  ;;  %s2498_s27 = sld [smem:[#allocation3 + $0x46]] }
 0x241   :  { %v1022_v16 = vadd.f32 %v1018_v52, %v996_v5 }
 0x243   :  { %v1082_v60 = vpop.permute.xlu1 %1081  ;;  %v3995_v51 = vpop.permute.xlu0 %1007 }
 0x244   :  { %v932_v14 = vpop.permute.xlu2 %931  ;;  %v1089_v25 = vsel %vm161_vm3, %v1082_v60, 0.0 }
 0x245   :  { %v936_v59 = vsel %vm159_vm1, %v932_v14, 0.0  ;;  %v1094_v1 = vmul.f32 %v4019_v44, %v1089_v25 }
 0x246   :  { %v941_v53 = vmul.f32 %v3822_v62, %v936_v59  ;;  %v1044_v62 = vadd.f32 %v1040_v39, %v1022_v16 }
 0x248   :  { %v945_v15 = vadd.f32 %v941_v53, %v923_v0  ;;  %v1054_v2 = vadd.f32 %v1050_v63, %v1044_v62 }
 0x24a   :  { %v4015_v31 = vadd.f32 %v951_v48, %v945_v15  ;;  %v1076_v21 = vadd.f32 %v1072_v56, %v1054_v2 }
 0x24b   :  { %v1108_v26 = vpop.permute.xlu1 %1107  ;;  %v4017_v8 = vpop.permute.xlu0 %1029 }
 0x24c   :  { %v1162_v50 = vpop.permute.xlu2 %1161  ;;  %v1115_v20 = vsel %vm158_vm0, %v1108_v26, 0.0  ;;  %v1098_v55 = vadd.f32 %v1094_v1, %v1076_v21 }
 0x24d   :  { %v1120_v13 = vmul.f32 %v4026_v45, %v1115_v20  ;;  %v1169_v4 = vsel %vm160_vm2, %v1162_v50, 0.0 }
 0x24e   :  { %v1174_v40 = vmul.f32 %v4039_v19, %v1169_v4 }
 0x24f   :  { %v1124_v61 = vadd.f32 %v1120_v13, %v1098_v55  ;;  %v988_v13 = vsel %vm161_vm3, %v3972_v7, 0.0 }
 0x253   :  { %v1130_v58 = vpop.permute.xlu1 %1129  ;;  %v962_v43 = vpop.permute.xlu0 %961 }
 0x254   :  { %v1137_v30 = vsel %vm159_vm1, %v1130_v58, 0.0  ;;  %v1184_v24 = vpop.permute.xlu2 %1183  ;;  %v967_v53 = vsel %vm160_vm2, %v962_v43, 0.0  ;;  %v1052_v58 = vmul.f32 %v4009_v12, %v3741_v6  ;;  %v1014_v43 = vsel %vm158_vm0, %v3995_v51, 0.0 }
 0x255   :  { %v1142_v36 = vmul.f32 %v4032_v28, %v1137_v30  ;;  %v1191_v49 = vsel %vm161_vm3, %v1184_v24, 0.0  ;;  %v972_v16 = vmul.f32 %v3948_v35, %v967_v53 }
 0x256   :  { %v1196_v60 = vmul.f32 %v4045_v29, %v1191_v49 }
 0x257   :  { %v1146_v0 = vadd.f32 %v1142_v36, %v1124_v61  ;;  %v976_v26 = vadd.f32 %v972_v16, %v3923_v32  ;;  %v993_v61 = vmul.f32 %v3981_v41, %v988_v13  ;;  %v1036_v36 = vsel %vm159_vm1, %v4017_v8, 0.0 }
 0x258   :  { %v1041_v7 = vmul.f32 %v3997_v27, %v1036_v36 }
 0x259   :  { %v1156_v10 = vadd.f32 %v1152_v33, %v1146_v0  ;;  %v1019_v33 = vmul.f32 %v3989_v18, %v1014_v43  ;;  %v997_v6 = vadd.f32 %v993_v61, %v3963_v17 }
 0x25b   :  { %v1178_v37 = vadd.f32 %v1174_v40, %v1156_v10  ;;  %v1062_v42 = vpop.permute.xlu1 %1061  ;;  %v984_v14 = vpop.permute.xlu0 %983  ;;  %v1023_v0 = vadd.f32 %v1019_v33, %v997_v6  ;;  %v1051_v10 = vmul.f32 %v4009_v12, %v3674_v9  ;;  %v1053_v6 = vmul.f32 %v4009_v12, %v3815_v46 }
 0x25c   :  { %v989_v15 = vsel %vm161_vm3, %v984_v14, 0.0  ;;  %v986_v48 = vpop.permute.xlu2 %985  ;;  %v1068_v40 = vsel %vm160_vm2, %v1062_v42, 0.0 }
 0x25d   :  { %v1200_v52 = vadd.f32 %v1196_v60, %v1178_v37  ;;  %v994_v62 = vmul.f32 %v3981_v41, %v989_v15  ;;  %v1045_v8 = vadd.f32 %v1041_v7, %v1023_v0  ;;  %v1073_v17 = vmul.f32 %v4011_v47, %v1068_v40 }
 0x25e   :  { %v990_v9 = vsel %vm161_vm3, %v986_v48, 0.0 }
 0x25f   :  { %v1206_v59 = vadd.f32 %v4051_v23, %v1200_v52  ;;  %v998_v63 = vadd.f32 %v994_v62, %v976_v26 }
 0x261   :  { %v4054_v34 = vmax.f32 %v1206_v59, 0.0 }
 0x263   :  { %1214 = vst [vmem:[#allocation2 + $0x2] sm:$0xff] %v4054_v34  ;;  %v1084_v5 = vpop.permute.xlu1 %1083  ;;  %v1010_v39 = vpop.permute.xlu0 %1009 }
 0x264   :  { %v1015_v11 = vsel %vm158_vm0, %v1010_v39, 0.0  ;;  %v1086_v21 = vpop.permute.xlu2 %1085  ;;  %v1090_v59 = vsel %vm161_vm3, %v1084_v5, 0.0  ;;  %v1055_v39 = vadd.f32 %v1051_v10, %v1045_v8 }
 0x265   :  { %v1020_v25 = vmul.f32 %v3989_v18, %v1015_v11  ;;  %v1091_v53 = vsel %vm161_vm3, %v1086_v21, 0.0  ;;  %v1095_v11 = vmul.f32 %v4019_v44, %v1090_v59 }
 0x266   :  { %v1096_v62 = vmul.f32 %v4019_v44, %v1091_v53  ;;  %v1077_v48 = vadd.f32 %v1073_v17, %v1055_v39 }
 0x267   :  { %v1024_v32 = vadd.f32 %v1020_v25, %v998_v63  ;;  %v995_v63 = vmul.f32 %v3981_v41, %v990_v9 }
 0x268   :  { %v1099_v13 = vadd.f32 %v1095_v11, %v1077_v48 }
 0x26a   :  { %v4067_v50 = vld [vmem:[#allocation2] sm:$0xff] }
 0x26b   :  { %v1110_v56 = vpop.permute.xlu1 %1109  ;;  %v1032_v20 = vpop.permute.xlu0 %1031  ;;  %1277 = vrot.lane.b32.xlu0 %v4067_v50, %s2705_s6  ;;  %1245 = vrot.lane.b32.xlu2 %v4067_v50, %s2708_s22  ;;  %v4102_v52 = vld [vmem:[#allocation2 + $0x1] sm:$0xff] }
 0x26c   :  { %v1037_v2 = vsel %vm159_vm1, %v1032_v20, 0.0  ;;  %1223 = vrot.lane.b32.xlu1 %v4067_v50, %s2706_s8  ;;  %v1112_v51 = vpop.permute.xlu2 %1111  ;;  %v1116_v15 = vsel %vm158_vm0, %v1110_v56, 0.0 }
 0x26d   :  { %v1042_v1 = vmul.f32 %v3997_v27, %v1037_v2  ;;  %v1117_v5 = vsel %vm158_vm0, %v1112_v51, 0.0  ;;  %v1121_v56 = vmul.f32 %v4026_v45, %v1116_v15 }
 0x26e   :  { %v1122_v2 = vmul.f32 %v4026_v45, %v1117_v5 }
 0x26f   :  { %v1046_v55 = vadd.f32 %v1042_v1, %v1024_v32  ;;  %v1125_v61 = vadd.f32 %v1121_v56, %v1099_v13  ;;  %v1155_v13 = vmul.f32 %v4034_v38, %v3890_v22 }
 0x271   :  { %v1056_v30 = vadd.f32 %v1052_v58, %v1046_v55 }
 0x273   :  { %v1132_v24 = vpop.permute.xlu1 %1131  ;;  %v964_v4 = vpop.permute.xlu0 %963 }
 0x274   :  { %1299 = vrot.lane.b32.xlu1 %v4067_v50, %s2707_s21  ;;  %v968_v49 = vsel %vm160_vm2, %v964_v4, 0.0  ;;  %v1138_v20 = vsel %vm159_vm1, %v1132_v24, 0.0  ;;  %v1066_v21 = vpop.permute.xlu2 %1065 }
 0x275   :  { %v973_v37 = vmul.f32 %v3948_v35, %v968_v49  ;;  %v1143_v55 = vmul.f32 %v4032_v28, %v1138_v20  ;;  %v1070_v4 = vsel %vm160_vm2, %v1066_v21, 0.0  ;;  %v1153_v49 = vmul.f32 %v4034_v38, %v3765_v3 }
 0x276   :  { %v1075_v0 = vmul.f32 %v4011_v47, %v1070_v4  ;;  %v1154_v3 = vmul.f32 %v4034_v38, %v3842_v57 }
 0x277   :  { %v977_v26 = vadd.f32 %v973_v37, %v4015_v31  ;;  %v1147_v33 = vadd.f32 %v1143_v55, %v1125_v61 }
 0x279   :  { %v999_v58 = vadd.f32 %v995_v63, %v977_v26 }
 0x27b   :  { %v1012_v60 = vpop.permute.xlu1 %1011  ;;  %v1064_v14 = vpop.permute.xlu0 %1063 }
 0x27c   :  { %v1069_v42 = vsel %vm160_vm2, %v1064_v14, 0.0  ;;  %1325 = vrot.lane.b32.xlu1 %v4102_v52, %s2706_s8  ;;  %v1016_v16 = vsel %vm158_vm0, %v1012_v60, 0.0  ;;  %v1114_v53 = vpop.permute.xlu2 %1113 }
 0x27d   :  { %v1074_v35 = vmul.f32 %v4011_v47, %v1069_v42  ;;  %v1021_v32 = vmul.f32 %v3989_v18, %v1016_v16  ;;  %v1118_v5 = vsel %vm158_vm0, %v1114_v53, 0.0 }
 0x27f   :  { %v1078_v25 = vadd.f32 %v1074_v35, %v1056_v30  ;;  %v1025_v36 = vadd.f32 %v1021_v32, %v999_v58 }
 0x281   :  { %v1100_v1 = vadd.f32 %v1096_v62, %v1078_v25  ;;  %v1123_v62 = vmul.f32 %v4026_v45, %v1118_v5  ;;  %v4288_v5 = vstv %s2483_s1 }
 0x283   :  { %v1034_v31 = vpop.permute.xlu1 %1033  ;;  %v1164_v43 = vpop.permute.xlu0 %1163  ;;  %v1126_v30 = vadd.f32 %v1122_v2, %v1100_v1 }
 0x284   :  { %v1038_v41 = vsel %vm159_vm1, %v1034_v31, 0.0  ;;  %v1170_v18 = vsel %vm160_vm2, %v1164_v43, 0.0 }
 0x285   :  { %v1043_v24 = vmul.f32 %v3997_v27, %v1038_v41  ;;  %v1175_v40 = vmul.f32 %v4039_v19, %v1170_v18  ;;  %v1157_v27 = vadd.f32 %v1153_v49, %v1147_v33 }
 0x287   :  { %v1047_v7 = vadd.f32 %v1043_v24, %v1025_v36  ;;  %v1179_v46 = vadd.f32 %v1175_v40, %v1157_v27  ;;  %v4256_v27 = vstv %s2480_s11  ;;  %s2503_s11 = sld [smem:[#allocation7 + $0x2]] }
 0x289   :  { %v1057_v51 = vadd.f32 %v1053_v6, %v1047_v7  ;;  %v4244_v7 = vstv %s2479_s0  ;;  %s2501_s0 = sld [smem:[#allocation3 + $0x49]] }
 0x28b   :  { %v1134_v8 = vpop.permute.xlu1 %1133  ;;  %v1186_v10 = vpop.permute.xlu0 %1185  ;;  %v1079_v37 = vadd.f32 %v1075_v0, %v1057_v51  ;;  %v4252_v51 = vstv %s2478_s30  ;;  %s2502_s30 = sld [smem:[#allocation3 + $0x4a]] }
 0x28c   :  { %v1139_v60 = vsel %vm159_vm1, %v1134_v8, 0.0  ;;  %v1192_v14 = vsel %vm161_vm3, %v1186_v10, 0.0 }
 0x28d   :  { %v1144_v12 = vmul.f32 %v4032_v28, %v1139_v60  ;;  %v1197_v47 = vmul.f32 %v4045_v29, %v1192_v14  ;;  %v4262_v60 = vstv %s2481_s12 }
 0x28f   :  { %v1148_v17 = vadd.f32 %v1144_v12, %v1126_v30  ;;  %v1201_v59 = vadd.f32 %v1197_v47, %v1179_v46  ;;  %v1268_v12 = vmul.f32 %v4256_v27, %v4067_v50 }
 0x291   :  { %v1207_v42 = vadd.f32 %v4051_v23, %v1201_v59  ;;  %v1158_v9 = vadd.f32 %v1154_v3, %v1148_v17  ;;  %v4275_v3 = vstv %s2482_s13 }
 0x293   :  { %v4154_v35 = vmax.f32 %v1207_v42, 0.0  ;;  %v1166_v39 = vpop.permute.xlu1 %1165  ;;  %v1088_v15 = vpop.permute.xlu0 %1087 }
 0x294   :  { %v1092_v16 = vsel %vm161_vm3, %v1088_v15, 0.0  ;;  %v1171_v57 = vsel %vm160_vm2, %v1166_v39, 0.0 }
 0x295   :  { %1215 = vst [vmem:[#allocation2 + $0xa] sm:$0xff] %v4154_v35  ;;  %v1097_v11 = vmul.f32 %v4019_v44, %v1092_v16  ;;  %v1176_v25 = vmul.f32 %v4039_v19, %v1171_v57  ;;  %v1168_v44 = vpop.permute.xlu2 %1167 }
 0x296   :  { %v1172_v31 = vsel %vm160_vm2, %v1168_v44, 0.0  ;;  %v4314_v44 = vstv %s2485_s15 }
 0x297   :  { %v1101_v26 = vadd.f32 %v1097_v11, %v1079_v37  ;;  %v1180_v1 = vadd.f32 %v1176_v25, %v1158_v9  ;;  %v1177_v30 = vmul.f32 %v4039_v19, %v1172_v31  ;;  %v4307_v25 = vstv %s2484_s14 }
 0x299   :  { %v1127_v48 = vadd.f32 %v1123_v62, %v1101_v26 }
 0x29b   :  { %v1136_v63 = vpop.permute.xlu1 %1135  ;;  %v1188_v20 = vpop.permute.xlu0 %1187 }
 0x29c   :  { %v1140_v56 = vsel %vm159_vm1, %v1136_v63, 0.0  ;;  %v1193_v2 = vsel %vm161_vm3, %v1188_v20, 0.0  ;;  %v4170_v32 = vld [vmem:[#allocation2 + $0x8] sm:$0xff] }
 0x29d   :  { %v1145_v21 = vmul.f32 %v4032_v28, %v1140_v56  ;;  %v1198_v45 = vmul.f32 %v4045_v29, %v1193_v2  ;;  %1247 = vrot.lane.b32.xlu0 %v4170_v32, %s2708_s22  ;;  %1225 = vrot.lane.b32.xlu2 %v4170_v32, %s2706_s8  ;;  %v4269_v59 = vld [vmem:[#allocation2 + $0x3] sm:$0xff]  ;;  %v4312_v2 = vld [vmem:[#allocation2 + $0xb] sm:$0xff] }
 0x29e   :  { %1301 = vrot.lane.b32.xlu1 %v4170_v32, %s2707_s21 }
 0x29f   :  { %v1149_v55 = vadd.f32 %v1145_v21, %v1127_v48  ;;  %v1202_v58 = vadd.f32 %v1198_v45, %v1180_v1  ;;  %v4322_v1 = vstv %s2486_s3  ;;  %v1370_v21 = vmul.f32 %v4314_v44, %v4102_v52 }
 0x2a1   :  { %v1159_v28 = vadd.f32 %v1155_v13, %v1149_v55  ;;  %v1208_v43 = vadd.f32 %v4051_v23, %v1202_v58 }
 0x2a3   :  { %v4186_v41 = vmax.f32 %v1208_v43, 0.0  ;;  %v1190_v61 = vpop.permute.xlu0 %1189  ;;  %v1181_v24 = vadd.f32 %v1177_v30, %v1159_v28  ;;  %v4329_v28 = vld [vmem:[#allocation2 + $0x4] sm:$0xff] }
 0x2a4   :  { %v1194_v36 = vsel %vm161_vm3, %v1190_v61, 0.0 }
 0x2a5   :  { %1216 = vst [vmem:[#allocation2 + $0x1a] sm:$0xff] %v4186_v41  ;;  %v1199_v22 = vmul.f32 %v4045_v29, %v1194_v36  ;;  %1279 = vrot.lane.b32.xlu0 %v4170_v32, %s2705_s6  ;;  %1347 = vrot.lane.b32.xlu2 %v4102_v52, %s2708_s22  ;;  %v4208_v29 = vld [vmem:[#allocation2 + $0x9] sm:$0xff] }
 0x2a7   :  { %v1203_v38 = vadd.f32 %v1199_v22, %v1181_v24 }
 0x2a9   :  { %v1209_v19 = vadd.f32 %v4051_v23, %v1203_v38  ;;  %v1269_v38 = vmul.f32 %v4256_v27, %v4170_v32 }
 0x2ab   :  { %v4197_v4 = vmax.f32 %v1209_v19, 0.0 }
 0x2ac   :  { %v4199_v18 = vld [vmem:[#allocation2 + $0x18] sm:$0xff] }
 0x2ad   :  { %1217 = vst [vmem:[#allocation2 + $0x22] sm:$0xff] %v4197_v4  ;;  %1227 = vrot.lane.b32.xlu0 %v4199_v18, %s2706_s8  ;;  %1379 = vrot.lane.b32.xlu2 %v4102_v52, %s2705_s6  ;;  %v4230_v33 = vld [vmem:[#allocation2 + $0x19] sm:$0xff] }
 0x2ae   :  { %1249 = vrot.lane.b32.xlu1 %v4199_v18, %s2708_s22 }
 0x2b4   :  { %v4226_v23 = vld [vmem:[#allocation2 + $0x20] sm:$0xff] }
 0x2b5   :  { %1401 = vrot.lane.b32.xlu0 %v4102_v52, %s2707_s21  ;;  %1327 = vrot.lane.b32.xlu2 %v4208_v29, %s2706_s8  ;;  %v4282_v15 = vld [vmem:[#allocation2 + $0x21] sm:$0xff] }
 0x2b6   :  { %1349 = vrot.lane.b32.xlu1 %v4208_v29, %s2708_s22 }
 0x2bd   :  { %1281 = vrot.lane.b32.xlu0 %v4199_v18, %s2705_s6  ;;  %1427 = vrot.lane.b32.xlu2 %v4054_v34, %s2706_s8 }
 0x2be   :  { %1449 = vrot.lane.b32.xlu1 %v4054_v34, %s2708_s22 }
 0x2c5   :  { %1381 = vrot.lane.b32.xlu0 %v4208_v29, %s2705_s6  ;;  %1303 = vrot.lane.b32.xlu2 %v4199_v18, %s2707_s21  ;;  %v1246_v6 = vpop.permute.xlu2 %1245 }
 0x2c6   :  { %1229 = vrot.lane.b32.xlu1 %v4226_v23, %s2706_s8  ;;  %v1253_v0 = vsel %vm159_vm1, %v1246_v6, 0.0 }
 0x2c7   :  { %v1258_v10 = vmul.f32 %v4244_v7, %v1253_v0 }
 0x2cd   :  { %1329 = vrot.lane.b32.xlu0 %v4230_v33, %s2706_s8  ;;  %1251 = vrot.lane.b32.xlu2 %v4226_v23, %s2708_s22 }
 0x2ce   :  { %1403 = vrot.lane.b32.xlu1 %v4208_v29, %s2707_s21 }
 0x2d5   :  { %1351 = vrot.lane.b32.xlu0 %v4230_v33, %s2708_s22  ;;  %1481 = vrot.lane.b32.xlu2 %v4054_v34, %s2705_s6 }
 0x2d6   :  { %1429 = vrot.lane.b32.xlu1 %v4154_v35, %s2706_s8 }
 0x2dd   :  { %1283 = vrot.lane.b32.xlu0 %v4226_v23, %s2705_s6  ;;  %1503 = vrot.lane.b32.xlu2 %v4054_v34, %s2707_s21  ;;  %v1278_v49 = vpop.permute.xlu0 %1277 }
 0x2de   :  { %1451 = vrot.lane.b32.xlu1 %v4154_v35, %s2708_s22  ;;  %v1224_v40 = vpop.permute.xlu1 %1223  ;;  %v1285_v14 = vsel %vm160_vm2, %v1278_v49, 0.0 }
 0x2df   :  { %v1231_v8 = vsel %vm158_vm0, %v1224_v40, 0.0  ;;  %v1290_v47 = vmul.f32 %v4262_v60, %v1285_v14 }
 0x2e0   :  { %v1236_v37 = vmul.f32 %v4252_v51, %v1231_v8 }
 0x2e2   :  { %v1262_v46 = vadd.f32 %v1258_v10, %v1236_v37 }
 0x2e4   :  { %v1272_v17 = vadd.f32 %v1268_v12, %v1262_v46 }
 0x2e5   :  { %1305 = vrot.lane.b32.xlu0 %v4226_v23, %s2707_s21  ;;  %1529 = vrot.lane.b32.xlu2 %v4269_v59, %s2706_s8 }
 0x2e6   :  { %1383 = vrot.lane.b32.xlu1 %v4230_v33, %s2705_s6  ;;  %v1300_v53 = vpop.permute.xlu1 %1299  ;;  %v1294_v42 = vadd.f32 %v1290_v47, %v1272_v17 }
 0x2e7   :  { %v1307_v50 = vsel %vm161_vm3, %v1300_v53, 0.0 }
 0x2e8   :  { %v1312_v9 = vmul.f32 %v4275_v3, %v1307_v50 }
 0x2ea   :  { %v1316_v39 = vadd.f32 %v1312_v9, %v1294_v42 }
 0x2ed   :  { %1331 = vrot.lane.b32.xlu0 %v4282_v15, %s2706_s8  ;;  %1551 = vrot.lane.b32.xlu2 %v4269_v59, %s2708_s22 }
 0x2ee   :  { %1405 = vrot.lane.b32.xlu1 %v4230_v33, %s2707_s21  ;;  %v1326_v16 = vpop.permute.xlu1 %1325 }
 0x2ef   :  { %v1333_v11 = vsel %vm158_vm0, %v1326_v16, 0.0 }
 0x2f0   :  { %v1338_v57 = vmul.f32 %v4288_v5, %v1333_v11 }
 0x2f2   :  { %v1342_v62 = vadd.f32 %v1338_v57, %v1316_v39  ;;  %v4372_v57 = vld [vmem:[#allocation2 + $0x1b] sm:$0xff] }
 0x2f5   :  { %1353 = vrot.lane.b32.xlu0 %v4282_v15, %s2708_s22  ;;  %1483 = vrot.lane.b32.xlu2 %v4154_v35, %s2705_s6 }
 0x2f6   :  { %1431 = vrot.lane.b32.xlu1 %v4186_v41, %s2706_s8 }
 0x2f7   :  { %v1226_v26 = vpop.permute.xlu2 %1225 }
 0x2f8   :  { %v1232_v43 = vsel %vm158_vm0, %v1226_v26, 0.0  ;;  %v4382_v26 = vstv %s2487_s16 }
 0x2f9   :  { %v1237_v36 = vmul.f32 %v4252_v51, %v1232_v43 }
 0x2fd   :  { %1583 = vrot.lane.b32.xlu0 %v4269_v59, %s2705_s6  ;;  %1505 = vrot.lane.b32.xlu2 %v4154_v35, %s2707_s21 }
 0x2fe   :  { %1453 = vrot.lane.b32.xlu1 %v4186_v41, %s2708_s22 }
 0x2ff   :  { %v1348_v48 = vpop.permute.xlu2 %1347 }
 0x300   :  { %v1355_v63 = vsel %vm159_vm1, %v1348_v48, 0.0 }
 0x301   :  { %v1360_v20 = vmul.f32 %v4307_v25, %v1355_v63 }
 0x303   :  { %v1364_v56 = vadd.f32 %v1360_v20, %v1342_v62  ;;  %v1270_v62 = vmul.f32 %v4256_v27, %v4199_v18 }
 0x305   :  { %1605 = vrot.lane.b32.xlu0 %v4269_v59, %s2707_s21  ;;  %1531 = vrot.lane.b32.xlu2 %v4312_v2, %s2706_s8  ;;  %v1374_v55 = vadd.f32 %v1370_v21, %v1364_v56  ;;  %v4384_v56 = vstv %s2488_s17 }
 0x306   :  { %1385 = vrot.lane.b32.xlu1 %v4282_v15, %s2705_s6 }
 0x307   :  { %v1380_v45 = vpop.permute.xlu2 %1379 }
 0x308   :  { %v1387_v13 = vsel %vm160_vm2, %v1380_v45, 0.0 }
 0x309   :  { %v1392_v58 = vmul.f32 %v4322_v1, %v1387_v13 }
 0x30b   :  { %v1396_v31 = vadd.f32 %v1392_v58, %v1374_v55 }
 0x30d   :  { %1631 = vrot.lane.b32.xlu0 %v4329_v28, %s2706_s8  ;;  %1553 = vrot.lane.b32.xlu2 %v4312_v2, %s2708_s22 }
 0x30e   :  { %1407 = vrot.lane.b32.xlu1 %v4282_v15, %s2707_s21 }
 0x30f   :  { %v1248_v52 = vpop.permute.xlu0 %1247  ;;  %v1328_v30 = vpop.permute.xlu2 %1327 }
 0x310   :  { %v1254_v61 = vsel %vm159_vm1, %v1248_v52, 0.0  ;;  %v1302_v19 = vpop.permute.xlu1 %1301  ;;  %v1334_v10 = vsel %vm158_vm0, %v1328_v30, 0.0 }
 0x311   :  { %v1259_v24 = vmul.f32 %v4244_v7, %v1254_v61  ;;  %v1308_v40 = vsel %vm161_vm3, %v1302_v19, 0.0  ;;  %v1339_v46 = vmul.f32 %v4288_v5, %v1334_v10  ;;  %v4395_v61 = vld [vmem:[#allocation2 + $0xc] sm:$0xff]  ;;  %v4405_v19 = vstv %s2489_s18 }
 0x312   :  { %v1313_v37 = vmul.f32 %v4275_v3, %v1308_v40  ;;  %v4412_v40 = vstv %s2490_s19 }
 0x313   :  { %v1263_v22 = vadd.f32 %v1259_v24, %v1237_v36  ;;  %v1371_v36 = vmul.f32 %v4314_v44, %v4208_v29 }
 0x315   :  { %1653 = vrot.lane.b32.xlu0 %v4329_v28, %s2708_s22  ;;  %1485 = vrot.lane.b32.xlu2 %v4186_v41, %s2705_s6  ;;  %v1273_v6 = vadd.f32 %v1269_v38, %v1263_v22 }
 0x316   :  { %1433 = vrot.lane.b32.xlu1 %v4197_v4, %s2706_s8 }
 0x317   :  { %v1280_v0 = vpop.permute.xlu0 %1279  ;;  %v1428_v49 = vpop.permute.xlu2 %1427 }
 0x318   :  { %v1286_v8 = vsel %vm160_vm2, %v1280_v0, 0.0  ;;  %v1435_v18 = vsel %vm158_vm0, %v1428_v49, 0.0 }
 0x319   :  { %v1291_v32 = vmul.f32 %v4262_v60, %v1286_v8  ;;  %v1440_v43 = vmul.f32 %v4384_v56, %v1435_v18 }
 0x31b   :  { %v1295_v14 = vadd.f32 %v1291_v32, %v1273_v6 }
 0x31d   :  { %v1317_v12 = vadd.f32 %v1313_v37, %v1295_v14  ;;  %1585 = vrot.lane.b32.xlu0 %v4312_v2, %s2705_s6  ;;  %1507 = vrot.lane.b32.xlu2 %v4186_v41, %s2707_s21  ;;  %v4418_v14 = vstv %s2491_s20 }
 0x31e   :  { %1455 = vrot.lane.b32.xlu1 %v4197_v4, %s2708_s22 }
 0x31f   :  { %v1228_v47 = vpop.permute.xlu0 %1227  ;;  %v1304_v17 = vpop.permute.xlu2 %1303  ;;  %v1343_v53 = vadd.f32 %v1339_v46, %v1317_v12  ;;  %v1472_v12 = vmul.f32 %v4412_v40, %v4054_v34 }
 0x320   :  { %v1233_v42 = vsel %vm158_vm0, %v1228_v47, 0.0  ;;  %v1250_v50 = vpop.permute.xlu1 %1249  ;;  %v1309_v6 = vsel %vm161_vm3, %v1304_v17, 0.0 }
 0x321   :  { %v1238_v9 = vmul.f32 %v4252_v51, %v1233_v42  ;;  %v1255_v39 = vsel %vm159_vm1, %v1250_v50, 0.0  ;;  %v1314_v10 = vmul.f32 %v4275_v3, %v1309_v6  ;;  %v4431_v50 = vstv %s2492_s23 }
 0x322   :  { %v1260_v16 = vmul.f32 %v4244_v7, %v1255_v39 }
 0x324   :  { %v1264_v11 = vadd.f32 %v1260_v16, %v1238_v9 }
 0x325   :  { %1607 = vrot.lane.b32.xlu0 %v4312_v2, %s2707_s21  ;;  %1533 = vrot.lane.b32.xlu2 %v4372_v57, %s2706_s8 }
 0x326   :  { %1685 = vrot.lane.b32.xlu1 %v4329_v28, %s2705_s6  ;;  %v1274_v48 = vadd.f32 %v1270_v62, %v1264_v11 }
 0x327   :  { %v1402_v63 = vpop.permute.xlu0 %1401  ;;  %v1252_v20 = vpop.permute.xlu2 %1251 }
 0x328   :  { %v1409_v21 = vsel %vm161_vm3, %v1402_v63, 0.0  ;;  %v1350_v45 = vpop.permute.xlu1 %1349  ;;  %v1256_v34 = vsel %vm159_vm1, %v1252_v20, 0.0 }
 0x329   :  { %v1414_v13 = vmul.f32 %v4382_v26, %v1409_v21  ;;  %v1356_v55 = vsel %vm159_vm1, %v1350_v45, 0.0  ;;  %v1261_v45 = vmul.f32 %v4244_v7, %v1256_v34  ;;  %v4455_v7 = vstv %s2493_s24  ;;  %s2414_s24 = sshll.u32 %s4838_s10, 4  ;;  %s2415_s24 = int_to_ptr.hbm [resolvable:$true] %s2414_s24 }
 0x32a   :  { %v1361_v58 = vmul.f32 %v4307_v25, %v1356_v55 }
 0x32b   :  { %v1418_v52 = vadd.f32 %v1414_v13, %v1396_v31 }
 0x32c   :  { %v1365_v30 = vadd.f32 %v1361_v58, %v1343_v53 }
 0x32d   :  { %1633 = vrot.lane.b32.xlu0 %v4395_v61, %s2706_s8  ;;  %1555 = vrot.lane.b32.xlu2 %v4372_v57, %s2708_s22  ;;  %v1444_v24 = vadd.f32 %v1440_v43, %v1418_v52  ;;  %v4445_v43 = vld [vmem:[#allocation2 + $0x23] sm:$0xff]  ;;  %v1271_v52 = vmul.f32 %v4256_v27, %v4226_v23 }
 0x32e   :  { %1707 = vrot.lane.b32.xlu1 %v4329_v28, %s2707_s21  ;;  %v1375_v22 = vadd.f32 %v1371_v36, %v1365_v30 }
 0x32f   :  { %v1282_v31 = vpop.permute.xlu0 %1281  ;;  %v1482_v38 = vpop.permute.xlu2 %1481 }
 0x330   :  { %v1287_v29 = vsel %vm160_vm2, %v1282_v31, 0.0  ;;  %v1450_v0 = vpop.permute.xlu1 %1449  ;;  %v1489_v46 = vsel %vm160_vm2, %v1482_v38, 0.0 }
 0x331   :  { %v1292_v49 = vmul.f32 %v4262_v60, %v1287_v29  ;;  %v1457_v8 = vsel %vm159_vm1, %v1450_v0, 0.0  ;;  %v1494_v53 = vmul.f32 %v4418_v14, %v1489_v46 }
 0x332   :  { %v1462_v32 = vmul.f32 %v4405_v19, %v1457_v8  ;;  %v4470_v8 = vld [vmem:[#allocation2 + $0x1c] sm:$0xff] }
 0x333   :  { %v1296_v37 = vadd.f32 %v1292_v49, %v1274_v48 }
 0x334   :  { %v1466_v47 = vadd.f32 %v1462_v32, %v1444_v24  ;;  %v4474_v32 = vstv %s2494_s25 }
 0x335   :  { %1655 = vrot.lane.b32.xlu0 %v4395_v61, %s2708_s22  ;;  %1487 = vrot.lane.b32.xlu2 %v4197_v4, %s2705_s6  ;;  %v1318_v17 = vadd.f32 %v1314_v10, %v1296_v37 }
 0x336   :  { %v1476_v42 = vadd.f32 %v1472_v12, %v1466_v47  ;;  %1509 = vrot.lane.b32.xlu1 %v4197_v4, %s2707_s21 }
 0x337   :  { %v1382_v9 = vpop.permute.xlu0 %1381  ;;  %v1504_v39 = vpop.permute.xlu2 %1503 }
 0x338   :  { %v1388_v16 = vsel %vm160_vm2, %v1382_v9, 0.0  ;;  %v1498_v11 = vadd.f32 %v1494_v53, %v1476_v42  ;;  %v1511_v62 = vsel %vm161_vm3, %v1504_v39, 0.0  ;;  %v1230_v48 = vpop.permute.xlu1 %1229 }
 0x339   :  { %v1393_v63 = vmul.f32 %v4322_v1, %v1388_v16  ;;  %v1516_v18 = vmul.f32 %v4431_v50, %v1511_v62  ;;  %v1234_v21 = vsel %vm158_vm0, %v1230_v48, 0.0 }
 0x33a   :  { %v1239_v20 = vmul.f32 %v4252_v51, %v1234_v21 }
 0x33b   :  { %v1397_v13 = vadd.f32 %v1393_v63, %v1375_v22  ;;  %v1520_v55 = vadd.f32 %v1516_v18, %v1498_v11 }
 0x33c   :  { %v1265_v58 = vadd.f32 %v1261_v45, %v1239_v20 }
 0x33d   :  { %1535 = vrot.lane.b32.xlu0 %v4445_v43, %s2706_s8  ;;  %1587 = vrot.lane.b32.xlu2 %v4372_v57, %s2705_s6 }
 0x33e   :  { %1609 = vrot.lane.b32.xlu1 %v4372_v57, %s2707_s21  ;;  %v1275_v51 = vadd.f32 %v1271_v52, %v1265_v58 }
 0x33f   :  { %v1330_v30 = vpop.permute.xlu0 %1329  ;;  %v1530_v36 = vpop.permute.xlu2 %1529 }
 0x340   :  { %v1335_v24 = vsel %vm158_vm0, %v1330_v30, 0.0  ;;  %v1537_v23 = vsel %vm158_vm0, %v1530_v36, 0.0  ;;  %v1404_v27 = vpop.permute.xlu1 %1403 }
 0x341   :  { %v1340_v22 = vmul.f32 %v4288_v5, %v1335_v24  ;;  %v1542_v31 = vmul.f32 %v4455_v7, %v1537_v23  ;;  %v1410_v38 = vsel %vm161_vm3, %v1404_v27, 0.0  ;;  %v1372_v23 = vmul.f32 %v4314_v44, %v4230_v33 }
 0x342   :  { %v1415_v6 = vmul.f32 %v4382_v26, %v1410_v38 }
 0x343   :  { %v1344_v29 = vadd.f32 %v1340_v22, %v1318_v17  ;;  %v1546_v0 = vadd.f32 %v1542_v31, %v1520_v55  ;;  %v1473_v55 = vmul.f32 %v4412_v40, %v4154_v35 }
 0x344   :  { %v1419_v49 = vadd.f32 %v1415_v6, %v1397_v13 }
 0x345   :  { %1557 = vrot.lane.b32.xlu0 %v4445_v43, %s2708_s22  ;;  %1687 = vrot.lane.b32.xlu2 %v4395_v61, %s2705_s6 }
 0x346   :  { %1635 = vrot.lane.b32.xlu1 %v4470_v8, %s2706_s8 }
 0x347   :  { %v1352_v10 = vpop.permute.xlu0 %1351  ;;  %v1552_v37 = vpop.permute.xlu2 %1551 }
 0x348   :  { %v1357_v46 = vsel %vm159_vm1, %v1352_v10, 0.0  ;;  %v1559_v12 = vsel %vm159_vm1, %v1552_v37, 0.0  ;;  %v1430_v47 = vpop.permute.xlu1 %1429 }
 0x349   :  { %v1362_v17 = vmul.f32 %v4307_v25, %v1357_v46  ;;  %v1564_v53 = vmul.f32 %v4474_v32, %v1559_v12  ;;  %v1436_v42 = vsel %vm158_vm0, %v1430_v47, 0.0 }
 0x34a   :  { %v1441_v34 = vmul.f32 %v4384_v56, %v1436_v42 }
 0x34b   :  { %v1366_v9 = vadd.f32 %v1362_v17, %v1344_v29  ;;  %v4485_v39 = vadd.f32 %v1564_v53, %v1546_v0 }
 0x34c   :  { %v1445_v16 = vadd.f32 %v1441_v34, %v1419_v49 }
 0x34d   :  { %1657 = vrot.lane.b32.xlu0 %v4470_v8, %s2708_s22  ;;  %1709 = vrot.lane.b32.xlu2 %v4395_v61, %s2707_s21  ;;  %v1376_v38 = vadd.f32 %v1372_v23, %v1366_v9 }
 0x34e   :  { %1589 = vrot.lane.b32.xlu1 %v4445_v43, %s2705_s6 }
 0x34f   :  { %v1284_v11 = vpop.permute.xlu0 %1283  ;;  %v1484_v62 = vpop.permute.xlu2 %1483 }
 0x350   :  { %v1288_v48 = vsel %vm160_vm2, %v1284_v11, 0.0  ;;  %v1452_v63 = vpop.permute.xlu1 %1451  ;;  %v1490_v13 = vsel %vm160_vm2, %v1484_v62, 0.0  ;;  %v1753_v11 = vld [vmem:[#allocation10 + $0x78] sm:$0xff] }
 0x351   :  { %v1293_v18 = vmul.f32 %v4262_v60, %v1288_v48  ;;  %v1458_v21 = vsel %vm159_vm1, %v1452_v63, 0.0  ;;  %v4507_v60 = vld [vmem:[#allocation2 + $0x24] sm:$0xff]  ;;  %v1495_v52 = vmul.f32 %v4418_v14, %v1490_v13  ;;  %1763 = vmatpush.msra.mxu0 %v1753_v11  ;;  %1784 = vmatpush.msra.mxu1 %v1753_v11 }
 0x352   :  { %v1463_v45 = vmul.f32 %v4405_v19, %v1458_v21  ;;  %v1752_v63 = vld [vmem:[#allocation10 + $0x70] sm:$0xff]  ;;  %v1751_v21 = vld [vmem:[#allocation10 + $0x68] sm:$0xff] }
 0x353   :  { %v1297_v20 = vadd.f32 %v1293_v18, %v1275_v51  ;;  %1764 = vmatpush.msra.mxu0 %v1752_v63  ;;  %1785 = vmatpush.msra.mxu1 %v1752_v63 }
 0x354   :  { %v1467_v58 = vadd.f32 %v1463_v45, %v1445_v16  ;;  %v1750_v45 = vld [vmem:[#allocation10 + $0x60] sm:$0xff] }
 0x355   :  { %1689 = vrot.lane.b32.xlu0 %v4470_v8, %s2705_s6  ;;  %1611 = vrot.lane.b32.xlu2 %v4445_v43, %s2707_s21 }
 0x356   :  { %v1477_v30 = vadd.f32 %v1473_v55, %v1467_v58  ;;  %1637 = vrot.lane.b32.xlu1 %v4507_v60, %s2706_s8  ;;  %1765 = vmatpush.msra.mxu0 %v1751_v21  ;;  %v1749_v55 = vld [vmem:[#allocation10 + $0x58] sm:$0xff]  ;;  %v1748_v58 = vld [vmem:[#allocation10 + $0x50] sm:$0xff] }
 0x357   :  { %v1306_v51 = vpop.permute.xlu0 %1305  ;;  %v4512_v36 = vpop.permute.xlu2 %1505  ;;  %1786 = vmatpush.msra.mxu1 %v1751_v21 }
 0x358   :  { %v1310_v35 = vsel %vm161_vm3, %v1306_v51, 0.0  ;;  %v4516_v24 = vadd.f32 %v1495_v52, %v1477_v30  ;;  %v1384_v27 = vpop.permute.xlu1 %1383  ;;  %1766 = vmatpush.msra.mxu0 %v1750_v45  ;;  %v1747_v52 = vld [vmem:[#allocation10 + $0x48] sm:$0xff]  ;;  %v1746_v30 = vld [vmem:[#allocation10 + $0x40] sm:$0xff]  ;;  %v2709_v51 = vmov 6.0  }
 0x359   :  { %v1315_v22 = vmul.f32 %v4275_v3, %v1310_v35  ;;  %v1389_v31 = vsel %vm160_vm2, %v1384_v27, 0.0  ;;  %1787 = vmatpush.msra.mxu1 %v1750_v45  ;;  %2526 = vrcp.f32 %v2709_v51 }
 0x35a   :  { %v1394_v6 = vmul.f32 %v4322_v1, %v1389_v31  ;;  %1767 = vmatpush.msra.mxu0 %v1749_v55  ;;  %v125_v31 = vld [vmem:[%s4830_s2 + $0x8] sm:$0x3f] }
 0x35b   :  { %v1319_v29 = vadd.f32 %v1315_v22, %v1297_v20  ;;  %1788 = vmatpush.msra.mxu1 %v1749_v55  ;;  %v124_v22 = vld [vmem:[%s4830_s2] sm:$0x3f]  ;;  %s2495_s2 = sld [smem:[#allocation3 + $0x43]] }
 0x35c   :  { %v1398_v0 = vadd.f32 %v1394_v6, %v1376_v38  ;;  %1768 = vmatpush.msra.mxu0 %v1748_v58  ;;  %v1745_v38 = vld [vmem:[#allocation10 + $0x38] sm:$0xff]  ;;  %v127_v6 = vsel %vm126_vm4, %v124_v22, 0.0  ;;  %v1740_v55 = vld [vmem:[#allocation10 + $0x10] sm:$0xff]  ;;  %v1738_v22 = vld [vmem:[#allocation10] sm:$0xff] }
 0x35d   :  { %1659 = vrot.lane.b32.xlu0 %v4507_v60, %s2708_s22  ;;  %1711 = vrot.lane.b32.xlu2 %v4470_v8, %s2707_s21 }
 0x35e   :  { %1691 = vrot.lane.b32.xlu1 %v4507_v60, %s2705_s6  ;;  %1789 = vmatpush.msra.mxu1 %v1748_v58 }
 0x35f   :  { %v1332_v33 = vpop.permute.xlu0 %1331  ;;  %v4530_v49 = vpop.permute.xlu2 %1531  ;;  %1769 = vmatpush.msra.mxu0 %v1747_v52 }
 0x360   :  { %v1336_v3 = vsel %vm158_vm0, %v1332_v33, 0.0  ;;  %v1406_v10 = vpop.permute.xlu1 %1405  ;;  %1790 = vmatpush.msra.mxu1 %v1747_v52  ;;  %v128_v33 = vrot.slane %v127_v6, 4  ;;  %v1739_v52 = vld [vmem:[#allocation10 + $0x8] sm:$0xff] }
 0x361   :  { %v1341_v37 = vmul.f32 %v4288_v5, %v1336_v3  ;;  %v1411_v46 = vsel %vm161_vm3, %v1406_v10, 0.0  ;;  %1770 = vmatpush.msra.mxu0 %v1746_v30  ;;  %v2527_v10 = vpop.eup %2526 }
 0x362   :  { %v1416_v12 = vmul.f32 %v4382_v26, %v1411_v46  ;;  %1791 = vmatpush.msra.mxu1 %v1746_v30  ;;  %v1742_v46 = vld [vmem:[#allocation10 + $0x20] sm:$0xff]  ;;  %vm146_vm5 = vweird.f32 %v2527_v10 }
 0x363   :  { %v1345_v47 = vadd.f32 %v1341_v37, %v1319_v29  ;;  %1771 = vmatpush.msra.mxu0 %v1745_v38  ;;  %v134_v29 = vsel %vm126_vm4, %v125_v31, 0.0  ;;  %v1743_v37 = vld [vmem:[#allocation10 + $0x28] sm:$0xff] }
 0x364   :  { %v1420_v17 = vadd.f32 %v1416_v12, %v1398_v0  ;;  %1792 = vmatpush.msra.mxu1 %v1745_v38  ;;  %v1744_v0 = vld [vmem:[#allocation10 + $0x30] sm:$0xff]  ;;  %v135_v3 = vrot.slane %v134_v29, 4  ;;  %v129_v12 = vadd.f32 %v128_v33, %v127_v6 }
 0x365   :  { %1713 = vrot.lane.b32.xlu2 %v4507_v60, %s2707_s21  ;;  %1772 = vmatpush.msra.mxu0 %v1744_v0 }
 0x366   :  { %1793 = vmatpush.msra.mxu1 %v1744_v0 }
 0x367   :  { %v1354_v53 = vpop.permute.xlu0 %1353  ;;  %v4540_v42 = vpop.permute.xlu2 %1553  ;;  %1773 = vmatpush.msra.mxu0 %v1743_v37 }
 0x368   :  { %v1358_v34 = vsel %vm159_vm1, %v1354_v53, 0.0  ;;  %v1432_v9 = vpop.permute.xlu1 %1431  ;;  %1794 = vmatpush.msra.mxu1 %v1743_v37 }
 0x369   :  { %v1363_v16 = vmul.f32 %v4307_v25, %v1358_v34  ;;  %v1437_v5 = vsel %vm158_vm0, %v1432_v9, 0.0  ;;  %v130_v9 = vrot.slane %v129_v12, 2  ;;  %1774 = vmatpush.msra.mxu0 %v1742_v46 }
 0x36a   :  { %v1442_v62 = vmul.f32 %v4384_v56, %v1437_v5  ;;  %1795 = vmatpush.msra.mxu1 %v1742_v46 }
 0x36b   :  { %v4548_v48 = vadd.f32 %v1363_v16, %v1345_v47  ;;  %v136_v47 = vadd.f32 %v135_v3, %v134_v29  ;;  %v131_v63 = vadd.f32 %v130_v9, %v129_v12  ;;  %v4584_v12 = vstv %s2496_s4 }
 0x36c   :  { %v4550_v18 = vadd.f32 %v1442_v62, %v1420_v17  ;;  %v142_v17 = vmul.f32 6.0, %v2527_v10  ;;  %v1741_v62 = vld [vmem:[#allocation10 + $0x18] sm:$0xff] }
 0x36d   :  { %v137_v16 = vrot.slane %v136_v47, 2  ;;  %1775 = vmatpush.msra.mxu0 %v1741_v62  ;;  %1796 = vmatpush.msra.mxu1 %v1741_v62  ;;  %v132_v58 = vrot.slane %v131_v63, 1 }
 0x36e   :  { %v143_v5 = vsub.f32 1.0, %v142_v17 }
 0x36f   :  { %v4552_v25 = vpop.permute.xlu0 %1583  ;;  %v4554_v20 = vpop.permute.xlu2 %1485  ;;  %v138_v21 = vadd.f32 %v137_v16, %v136_v47  ;;  %1776 = vmatpush.msra.mxu0 %v1740_v55  ;;  %1797 = vmatpush.msra.mxu1 %v1740_v55  ;;  %v133_v31 = vadd.f32 %v132_v58, %v131_v63  ;;  %v1512_v55 = vsel %vm161_vm3, %v4512_v36, 0.0 }
 0x370   :  { %v4556_v13 = vpop.permute.xlu1 %1453  ;;  %v144_v45 = vmul.f32 %v2527_v10, %v143_v5  ;;  %v1591_v47 = vsel %vm160_vm2, %v4552_v25, 0.0  ;;  %v4593_v5 = vstv %s2497_s26 }
 0x371   :  { %v139_v30 = vrot.slane %v138_v21, 1  ;;  %1777 = vmatpush.msra.mxu0 %v1739_v52  ;;  %1798 = vmatpush.msra.mxu1 %v1739_v52  ;;  %v4610_v52 = vstv %s2499_s28 }
 0x372   :  { %v145_v51 = vadd.f32 %v2527_v10, %v144_v45  ;;  %v4601_v45 = vstv %s2498_s27 }
 0x373   :  { %v140_v38 = vadd.f32 %v139_v30, %v138_v21  ;;  %1778 = vmatpush.msra.mxu0 %v1738_v22  ;;  %1799 = vmatpush.msra.mxu1 %v1738_v22  ;;  %v1596_v21 = vmul.f32 %v4584_v12, %v1591_v47  ;;  %v1538_v30 = vsel %vm158_vm0, %v4530_v49, 0.0  ;;  %v1517_v22 = vmul.f32 %v4431_v50, %v1512_v55 }
 0x374   :  { %v147_v6 = vsel %vm146_vm5, %v2527_v10, %v145_v51  ;;  %v4582_v10 = vstv %s2495_s2 }
 0x375   :  { %v148_v33 = vmul.f32 %v147_v6, %v133_v31  ;;  %v149_v37 = vmul.f32 %v147_v6, %v140_v38  ;;  %v1574_v63 = vmul.f32 %v4582_v10, %v4269_v59  ;;  %v1521_v47 = vadd.f32 %v1517_v22, %v4516_v24 }
 0x377   :  { %v4558_v35 = vpop.permute.xlu0 %1605  ;;  %v4560_v23 = vpop.permute.xlu2 %1507  ;;  %v4579_v46 = vsel %vm1760_vm6, %v149_v37, %v148_v33  ;;  %v1578_v58 = vadd.f32 %v1574_v63, %v4485_v39  ;;  %v1560_v39 = vsel %vm159_vm1, %v4540_v42, 0.0  ;;  %v1543_v33 = vmul.f32 %v4455_v7, %v1538_v30 }
 0x378   :  { %v4562_v27 = vpop.permute.xlu1 %1385  ;;  %1779 = vmatmul.f32.vlgmr.msra.gmra.mxu0 %v4579_v46  ;;  %v1613_v62 = vsel %vm161_vm3, %v4558_v35, 0.0  ;;  %v4626_v37 = vstv %s2500_s29  ;;  %v4630_v63 = vstv %s2501_s0 }
 0x379   :  { %v1618_v35 = vmul.f32 %v4593_v5, %v1613_v62  ;;  %v1600_v51 = vadd.f32 %v1596_v21, %v1578_v58  ;;  %v1565_v62 = vmul.f32 %v4474_v32, %v1560_v39  ;;  %v1676_v58 = vmul.f32 %v4626_v37, %v4329_v28 }
 0x37b   :  { %v1622_v38 = vadd.f32 %v1618_v35, %v1600_v51  ;;  %v4639_v51 = vstv %s2502_s30 }
 0x37f   :  { %v1632_v53 = vpop.permute.xlu0 %1631  ;;  %v4570_v34 = vpop.permute.xlu2 %1533 }
 0x380   :  { %v4572_v11 = vpop.permute.xlu1 %1407  ;;  %v1639_v25 = vsel %vm158_vm0, %v1632_v53, 0.0 }
 0x381   :  { %v1644_v53 = vmul.f32 %v4601_v45, %v1639_v25  ;;  %v1547_v25 = vadd.f32 %v1543_v33, %v1521_v47 }
 0x383   :  { %v1648_v49 = vadd.f32 %v1644_v53, %v1622_v38  ;;  %v1575_v38 = vmul.f32 %v4582_v10, %v4312_v2 }
 0x387   :  { %v1654_v29 = vpop.permute.xlu0 %1653  ;;  %v4574_v0 = vpop.permute.xlu2 %1555 }
 0x388   :  { %v4576_v3 = vpop.permute.xlu1 %1433  ;;  %v1661_v59 = vsel %vm159_vm1, %v1654_v29, 0.0 }
 0x389   :  { %v1666_v6 = vmul.f32 %v4610_v52, %v1661_v59  ;;  %v1569_v59 = vadd.f32 %v1565_v62, %v1547_v25  ;;  %v4655_v62 = vstv %s2503_s11 }
 0x38b   :  { %v1670_v42 = vadd.f32 %v1666_v6, %v1648_v49  ;;  %v1579_v49 = vadd.f32 %v1575_v38, %v1569_v59 }
 0x38d   :  { %v1680_v22 = vadd.f32 %v1676_v58, %v1670_v42 }
 0x38f   :  { %v1586_v17 = vpop.permute.xlu0 %1585  ;;  %v4589_v9 = vpop.permute.xlu2 %1487 }
 0x390   :  { %v4591_v16 = vpop.permute.xlu1 %1455  ;;  %v1592_v55 = vsel %vm160_vm2, %v1586_v17, 0.0 }
 0x391   :  { %v1597_v17 = vmul.f32 %v4584_v12, %v1592_v55 }
 0x397   :  { %v1608_v31 = vpop.permute.xlu0 %1607  ;;  %v4619_v36 = vpop.permute.xlu2 %1587 }
 0x398   :  { %v1686_v29 = vpop.permute.xlu1 %1685  ;;  %v1614_v53 = vsel %vm161_vm3, %v1608_v31, 0.0  ;;  %v1459_v31 = vsel %vm159_vm1, %v4556_v13, 0.0 }
 0x399   :  { %v1693_v21 = vsel %vm160_vm2, %v1686_v29, 0.0  ;;  %v1619_v47 = vmul.f32 %v4593_v5, %v1614_v53  ;;  %v1464_v25 = vmul.f32 %v4405_v19, %v1459_v31  ;;  %v1373_v31 = vmul.f32 %v4314_v44, %v4282_v15 }
 0x39a   :  { %v1698_v35 = vmul.f32 %v4630_v63, %v1693_v21  ;;  %v1601_v21 = vadd.f32 %v1597_v17, %v1579_v49  ;;  %v1390_v17 = vsel %vm160_vm2, %v4562_v27, 0.0  ;;  %v1513_v15 = vsel %vm161_vm3, %v4560_v23, 0.0 }
 0x39b   :  { %v1468_v38 = vadd.f32 %v1464_v25, %v4550_v18  ;;  %v1412_v18 = vsel %vm161_vm3, %v4572_v11, 0.0  ;;  %v1438_v44 = vsel %vm158_vm0, %v4576_v3, 0.0  ;;  %v1377_v11 = vadd.f32 %v1373_v31, %v4548_v48 }
 0x39c   :  { %v1702_v6 = vadd.f32 %v1698_v35, %v1680_v22  ;;  %v1623_v58 = vadd.f32 %v1619_v47, %v1601_v21  ;;  %v1539_v25 = vsel %vm158_vm0, %v4570_v34, 0.0  ;;  %v1460_v23 = vsel %vm159_vm1, %v4591_v16, 0.0 }
 0x39d   :  { %v1518_v3 = vmul.f32 %v4431_v50, %v1513_v15  ;;  %v1465_v34 = vmul.f32 %v4405_v19, %v1460_v23  ;;  %v1475_v19 = vmul.f32 %v4412_v40, %v4197_v4  ;;  %v1492_v31 = vsel %vm160_vm2, %v4589_v9, 0.0 }
 0x39e   :  { %v1497_v9 = vmul.f32 %v4418_v14, %v1492_v31 }
 0x39f   :  { %v1634_v24 = vpop.permute.xlu0 %1633  ;;  %v1688_v30 = vpop.permute.xlu2 %1687 }
 0x3a0   :  { %v1708_v39 = vpop.permute.xlu1 %1707  ;;  %v1640_v29 = vsel %vm158_vm0, %v1634_v24, 0.0 }
 0x3a1   :  { %v1715_v28 = vsel %vm161_vm3, %v1708_v39, 0.0  ;;  %v1645_v42 = vmul.f32 %v4601_v45, %v1640_v29 }
 0x3a2   :  { %v1720_v33 = vmul.f32 %v4639_v51, %v1715_v28  ;;  %v1694_v28 = vsel %vm160_vm2, %v1688_v30, 0.0  ;;  %v1491_v30 = vsel %vm160_vm2, %v4554_v20, 0.0 }
 0x3a3   :  { %v1649_v59 = vadd.f32 %v1645_v42, %v1623_v58  ;;  %v1699_v49 = vmul.f32 %v4630_v63, %v1694_v28  ;;  %v1496_v42 = vmul.f32 %v4418_v14, %v1491_v30 }
 0x3a4   :  { %v1724_v2 = vadd.f32 %v1720_v33, %v1702_v6  ;;  %v1677_v6 = vmul.f32 %v4626_v37, %v4395_v61  ;;  %v1474_v33 = vmul.f32 %v4412_v40, %v4186_v41  ;;  %v1395_v61 = vmul.f32 %v4322_v1, %v1390_v17 }
 0x3a6   :  { %v1730_v55 = vadd.f32 %v4655_v62, %v1724_v2  ;;  %v1478_v41 = vadd.f32 %v1474_v33, %v1468_v38  ;;  %v1417_v2 = vmul.f32 %v4382_v26, %v1412_v18  ;;  %v1399_v48 = vadd.f32 %v1395_v61, %v1377_v11 }
 0x3a7   :  { %v1656_v35 = vpop.permute.xlu0 %1655  ;;  %v1710_v39 = vpop.permute.xlu2 %1709  ;;  %v1443_v26 = vmul.f32 %v4384_v56, %v1438_v44  ;;  %v1576_v61 = vmul.f32 %v4582_v10, %v4372_v57 }
 0x3a8   :  { %v1662_v24 = vsel %vm159_vm1, %v1656_v35, 0.0  ;;  %v1510_v22 = vpop.permute.xlu1 %1509  ;;  %v1734_v13 = vmax.f32 %v1730_v55, 0.0  ;;  %v1716_v27 = vsel %vm161_vm3, %v1710_v39, 0.0  ;;  %v1500_v35 = vadd.f32 %v1496_v42, %v1478_v41 }
 0x3a9   :  { %v1667_v53 = vmul.f32 %v4610_v52, %v1662_v24  ;;  %v1721_v20 = vmul.f32 %v4639_v51, %v1716_v27  ;;  %v1561_v24 = vsel %vm159_vm1, %v4574_v0, 0.0  ;;  %v1593_v0 = vsel %vm160_vm2, %v4619_v36, 0.0 }
 0x3aa   :  { %1800 = vmatmul.f32.vlgmr.msra.gmra.mxu1 %v1734_v13  ;;  %v1544_v13 = vmul.f32 %v4455_v7, %v1539_v25  ;;  %v1522_v16 = vadd.f32 %v1518_v3, %v1500_v35  ;;  %v1566_v39 = vmul.f32 %v4474_v32, %v1561_v24  ;;  %v1514_v18 = vsel %vm161_vm3, %v1510_v22, 0.0 }
 0x3ab   :  { %v1671_v29 = vadd.f32 %v1667_v53, %v1649_v59  ;;  %v1421_v59 = vadd.f32 %v1417_v2, %v1399_v48  ;;  %v1598_v36 = vmul.f32 %v4584_v12, %v1593_v0  ;;  %v1519_v22 = vmul.f32 %v4431_v50, %v1514_v18 }
 0x3ac   :  { %v1548_v28 = vadd.f32 %v1544_v13, %v1522_v16  ;;  %v1678_v24 = vmul.f32 %v4626_v37, %v4470_v8 }
 0x3ad   :  { %v1681_v47 = vadd.f32 %v1677_v6, %v1671_v29  ;;  %v1447_v38 = vadd.f32 %v1443_v26, %v1421_v59 }
 0x3ae   :  { %v1570_v33 = vadd.f32 %v1566_v39, %v1548_v28 }
 0x3af   :  { %v1703_v21 = vadd.f32 %v1699_v49, %v1681_v47  ;;  %v1536_v1 = vpop.permute.xlu0 %1535  ;;  %v1469_v56 = vadd.f32 %v1465_v34, %v1447_v38  ;;  %v1612_v49 = vpop.permute.xlu2 %1611 }
 0x3b0   :  { %v1610_v55 = vpop.permute.xlu1 %1609  ;;  %v1540_v4 = vsel %vm158_vm0, %v1536_v1, 0.0  ;;  %v1580_v47 = vadd.f32 %v1576_v61, %v1570_v33 }
 0x3b1   :  { %v1725_v58 = vadd.f32 %v1721_v20, %v1703_v21  ;;  %v1615_v27 = vsel %vm161_vm3, %v1610_v55, 0.0  ;;  %v1479_v30 = vadd.f32 %v1475_v19, %v1469_v56  ;;  %v1545_v11 = vmul.f32 %v4455_v7, %v1540_v4 }
 0x3b2   :  { %v1620_v41 = vmul.f32 %v4593_v5, %v1615_v27  ;;  %v1602_v57 = vadd.f32 %v1598_v36, %v1580_v47 }
 0x3b3   :  { %v1731_v53 = vadd.f32 %v4655_v62, %v1725_v58  ;;  %v1501_v44 = vadd.f32 %v1497_v9, %v1479_v30  ;;  %v1577_v58 = vmul.f32 %v4582_v10, %v4445_v43  ;;  %v1616_v43 = vsel %vm161_vm3, %v1612_v49, 0.0 }
 0x3b4   :  { %v1624_v42 = vadd.f32 %v1620_v41, %v1602_v57  ;;  %v2524_v41 = vld [vmem:[%s4833_s5] ss:$0 sm:$0xff] }
 0x3b5   :  { %v1735_v17 = vmax.f32 %v1731_v53, 0.0  ;;  %v1523_v14 = vadd.f32 %v1519_v22, %v1501_v44 }
 0x3b7   :  { %v1558_v6 = vpop.permute.xlu0 %1557  ;;  %1803 = vmatmul.f32.gmra.mxu1 %v1735_v17  ;;  %v1549_v23 = vadd.f32 %v1545_v11, %v1523_v14  ;;  %v1712_v7 = vpop.permute.xlu2 %1711  ;;  %v1621_v17 = vmul.f32 %v4593_v5, %v1616_v43  ;;  %v1895_v43 = vld [vmem:[#allocation12 + $0xc8] sm:$0xff] }
 0x3b8   :  { %v1636_v29 = vpop.permute.xlu1 %1635  ;;  %v1562_v15 = vsel %vm159_vm1, %v1558_v6, 0.0 }
 0x3b9   :  { %v1641_v40 = vsel %vm158_vm0, %v1636_v29, 0.0  ;;  %v1567_v50 = vmul.f32 %v4474_v32, %v1562_v15  ;;  %v1717_v32 = vsel %vm161_vm3, %v1712_v7, 0.0  ;;  %v1900_v7 = vld [vmem:[#allocation12 + $0xf0] sm:$0xff] }
 0x3ba   :  { %v1646_v2 = vmul.f32 %v4601_v45, %v1641_v40  ;;  %v1722_v8 = vmul.f32 %v4639_v51, %v1717_v32  ;;  %1940 = vmatpush.msra.mxu2 %v1900_v7  ;;  %v1896_v32 = vld [vmem:[#allocation12 + $0xd0] sm:$0xff]  ;;  %v1909_v7 = vld [vmem:[#allocation12 + $0x138] sm:$0xff] }
 0x3bb   :  { %v1571_v48 = vadd.f32 %v1567_v50, %v1549_v23 }
 0x3bc   :  { %v1650_v55 = vadd.f32 %v1646_v2, %v1624_v42 }
 0x3bd   :  { %v1581_v53 = vadd.f32 %v1577_v58, %v1571_v48  ;;  %v1898_v58 = vld [vmem:[#allocation12 + $0xe0] sm:$0xff] }
 0x3be   :  { %1941 = vmatpush.msra.mxu2 %v1898_v58  ;;  %v1872_v58 = vld [vmem:[#allocation12 + $0x10] sm:$0xff] }
 0x3bf   :  { %v1658_v21 = vpop.permute.xlu0 %1657  ;;  %v1714_v31 = vpop.permute.xlu2 %1713 }
 0x3c0   :  { %v1663_v20 = vsel %vm159_vm1, %v1658_v21, 0.0  ;;  %v1590_v1 = vpop.permute.xlu1 %1589  ;;  %v1718_v36 = vsel %vm161_vm3, %v1714_v31, 0.0  ;;  %1942 = vmatpush.msra.mxu2 %v1896_v32  ;;  %v1923_v31 = vld [vmem:[#allocation12 + $0x1a8] sm:$0xff] }
 0x3c1   :  { %v1668_v25 = vmul.f32 %v4610_v52, %v1663_v20  ;;  %v1594_v3 = vsel %vm160_vm2, %v1590_v1, 0.0  ;;  %v1723_v40 = vmul.f32 %v4639_v51, %v1718_v36  ;;  %v1885_v36 = vld [vmem:[#allocation12 + $0x78] sm:$0xff] }
 0x3c2   :  { %v1599_v35 = vmul.f32 %v4584_v12, %v1594_v3 }
 0x3c3   :  { %v1672_v26 = vadd.f32 %v1668_v25, %v1650_v55 }
 0x3c4   :  { %v1603_v12 = vadd.f32 %v1599_v35, %v1581_v53  ;;  %v1932_v35 = vld [vmem:[#allocation12 + $0x1f0] sm:$0xff]  ;;  %v1931_v53 = vld [vmem:[#allocation12 + $0x1e8] sm:$0xff] }
 0x3c5   :  { %v1682_v16 = vadd.f32 %v1678_v24, %v1672_v26  ;;  %v1901_v26 = vld [vmem:[#allocation12 + $0xf8] sm:$0xff]  ;;  %v1899_v24 = vld [vmem:[#allocation12 + $0xe8] sm:$0xff]  ;;  %1960 = vmatpush.msra.mxu3 %v1932_v35  ;;  %v1906_v35 = vld [vmem:[#allocation12 + $0x120] sm:$0xff] }
 0x3c6   :  { %v1625_v6 = vadd.f32 %v1621_v17, %v1603_v12  ;;  %1980 = vmatpush.msrb.mxu0 %v1901_v26  ;;  %v1926_v12 = vld [vmem:[#allocation12 + $0x1c0] sm:$0xff]  ;;  %v1927_v17 = vld [vmem:[#allocation12 + $0x1c8] sm:$0xff] }
 0x3c7   :  { %v1690_v13 = vpop.permute.xlu0 %1689 }
 0x3c8   :  { %v1695_v59 = vsel %vm160_vm2, %v1690_v13, 0.0  ;;  %v1638_v34 = vpop.permute.xlu1 %1637  ;;  %v1933_v13 = vld [vmem:[#allocation12 + $0x1f8] sm:$0xff]  ;;  %1981 = vmatpush.msrb.mxu0 %v1899_v24 }
 0x3c9   :  { %v1700_v39 = vmul.f32 %v4630_v63, %v1695_v59  ;;  %v1642_v10 = vsel %vm158_vm0, %v1638_v34, 0.0  ;;  %v1930_v59 = vld [vmem:[#allocation12 + $0x1e0] sm:$0xff]  ;;  %v1897_v34 = vld [vmem:[#allocation12 + $0xd8] sm:$0xff]  ;;  %2000 = vmatpush.msrb.mxu1 %v1933_v13  ;;  %v1907_v13 = vld [vmem:[#allocation12 + $0x128] sm:$0xff] }
 0x3ca   :  { %v1647_v28 = vmul.f32 %v4601_v45, %v1642_v10  ;;  %v1679_v45 = vmul.f32 %v4626_v37, %v4507_v60  ;;  %1961 = vmatpush.msra.mxu3 %v1930_v59  ;;  %1982 = vmatpush.msrb.mxu0 %v1897_v34  ;;  %v1929_v10 = vld [vmem:[#allocation12 + $0x1d8] sm:$0xff]  ;;  %v1870_v59 = vld [vmem:[#allocation12] sm:$0xff]  ;;  %v1904_v34 = vld [vmem:[#allocation12 + $0x110] sm:$0xff] }
 0x3cb   :  { %v1704_v38 = vadd.f32 %v1700_v39, %v1682_v16  ;;  %v1894_v16 = vld [vmem:[#allocation12 + $0xc0] sm:$0xff]  ;;  %v1928_v39 = vld [vmem:[#allocation12 + $0x1d0] sm:$0xff]  ;;  %2001 = vmatpush.msrb.mxu1 %v1931_v53  ;;  %v1873_v24 = vld [vmem:[#allocation12 + $0x18] sm:$0xff] }
 0x3cc   :  { %v1651_v18 = vadd.f32 %v1647_v28, %v1625_v6  ;;  %1962 = vmatpush.msra.mxu3 %v1928_v39  ;;  %1943 = vmatpush.msra.mxu2 %v1894_v16  ;;  %v1890_v28 = vld [vmem:[#allocation12 + $0xa0] sm:$0xff]  ;;  %v1891_v6 = vld [vmem:[#allocation12 + $0xa8] sm:$0xff] }
 0x3cd   :  { %v1726_v56 = vadd.f32 %v1722_v8, %v1704_v38  ;;  %1983 = vmatpush.msrb.mxu0 %v1895_v43  ;;  %2002 = vmatpush.msrb.mxu1 %v1929_v10  ;;  %v1892_v8 = vld [vmem:[#allocation12 + $0xb0] sm:$0xff]  ;;  %v1893_v38 = vld [vmem:[#allocation12 + $0xb8] sm:$0xff]  ;;  %v1871_v39 = vld [vmem:[#allocation12 + $0x8] sm:$0xff] }
 0x3ce   :  { %1944 = vmatpush.msra.mxu2 %v1892_v8  ;;  %1963 = vmatpush.msra.mxu3 %v1926_v12  ;;  %v1905_v43 = vld [vmem:[#allocation12 + $0x118] sm:$0xff]  ;;  %v1902_v8 = vld [vmem:[#allocation12 + $0x100] sm:$0xff]  ;;  %v1903_v12 = vld [vmem:[#allocation12 + $0x108] sm:$0xff] }
 0x3cf   :  { %v1660_v0 = vpop.permute.xlu0 %1659  ;;  %v1732_v29 = vadd.f32 %v4655_v62, %v1726_v56  ;;  %1984 = vmatpush.msrb.mxu0 %v1893_v38  ;;  %2003 = vmatpush.msrb.mxu1 %v1927_v17  ;;  %v1924_v56 = vld [vmem:[#allocation12 + $0x1b0] sm:$0xff]  ;;  %v2086_v17 = vld [vmem:[#allocation12 + $0x3f8] sm:$0xff] }
 0x3d0   :  { %v1664_v33 = vsel %vm159_vm1, %v1660_v0, 0.0  ;;  %v1692_v19 = vpop.permute.xlu1 %1691  ;;  %1945 = vmatpush.msra.mxu2 %v1890_v28  ;;  %1964 = vmatpush.msra.mxu3 %v1924_v56  ;;  %v1925_v0 = vld [vmem:[#allocation12 + $0x1b8] sm:$0xff]  ;;  %v2085_v38 = vld [vmem:[#allocation12 + $0x3f0] sm:$0xff]  ;;  %v2083_v28 = vld [vmem:[#allocation12 + $0x3e0] sm:$0xff] }
 0x3d1   :  { %v1669_v27 = vmul.f32 %v4610_v52, %v1664_v33  ;;  %v1736_v30 = vmax.f32 %v1732_v29, 0.0  ;;  %v1696_v61 = vsel %vm160_vm2, %v1692_v19, 0.0  ;;  %1985 = vmatpush.msrb.mxu0 %v1891_v6  ;;  %2004 = vmatpush.msrb.mxu1 %v1925_v0  ;;  %v1888_v29 = vld [vmem:[#allocation12 + $0x90] sm:$0xff]  ;;  %v1922_v33 = vld [vmem:[#allocation12 + $0x1a0] sm:$0xff]  ;;  %v1889_v19 = vld [vmem:[#allocation12 + $0x98] sm:$0xff] }
 0x3d2   :  { %v1701_v4 = vmul.f32 %v4630_v63, %v1696_v61  ;;  %1946 = vmatpush.msra.mxu2 %v1888_v29  ;;  %1965 = vmatpush.msra.mxu3 %v1922_v33  ;;  %v1921_v61 = vld [vmem:[#allocation12 + $0x198] sm:$0xff]  ;;  %v2051_v6 = vld [vmem:[#allocation12 + $0x2e0] sm:$0xff]  ;;  %v2081_v0 = vld [vmem:[#allocation12 + $0x3d0] sm:$0xff] }
 0x3d3   :  { %v1673_v5 = vadd.f32 %v1669_v27, %v1651_v18  ;;  %1806 = vmatmul.f32.gmra.mxu1 %v1736_v30  ;;  %1986 = vmatpush.msrb.mxu0 %v1889_v19  ;;  %v1886_v18 = vld [vmem:[#allocation12 + $0x80] sm:$0xff]  ;;  %v1920_v27 = vld [vmem:[#allocation12 + $0x190] sm:$0xff]  ;;  %v1887_v30 = vld [vmem:[#allocation12 + $0x88] sm:$0xff] }
 0x3d4   :  { %2005 = vmatpush.msrb.mxu1 %v1923_v31  ;;  %1947 = vmatpush.msra.mxu2 %v1886_v18  ;;  %v2054_v56 = vld [vmem:[#allocation12 + $0x2f8] sm:$0xff]  ;;  %v2052_v33 = vld [vmem:[#allocation12 + $0x2e8] sm:$0xff] }
 0x3d5   :  { %v1683_v49 = vadd.f32 %v1679_v45, %v1673_v5  ;;  %1966 = vmatpush.msra.mxu3 %v1920_v27  ;;  %1987 = vmatpush.msrb.mxu0 %v1887_v30  ;;  %v1884_v5 = vld [vmem:[#allocation12 + $0x70] sm:$0xff]  ;;  %v1918_v45 = vld [vmem:[#allocation12 + $0x180] sm:$0xff]  ;;  %v2082_v29 = vld [vmem:[#allocation12 + $0x3d8] sm:$0xff] }
 0x3d6   :  { %2006 = vmatpush.msrb.mxu1 %v1921_v61  ;;  %1948 = vmatpush.msra.mxu2 %v1884_v5  ;;  %v2050_v18 = vld [vmem:[#allocation12 + $0x2d8] sm:$0xff]  ;;  %v2079_v27 = vld [vmem:[#allocation12 + $0x3c0] sm:$0xff]  ;;  %v2080_v30 = vld [vmem:[#allocation12 + $0x3c8] sm:$0xff] }
 0x3d7   :  { %v1705_v9 = vadd.f32 %v1701_v4, %v1683_v49  ;;  %1967 = vmatpush.msra.mxu3 %v1918_v45  ;;  %v1919_v4 = vld [vmem:[#allocation12 + $0x188] sm:$0xff]  ;;  %1988 = vmatpush.msrb.mxu0 %v1885_v36  ;;  %v2047_v5 = vld [vmem:[#allocation12 + $0x2c0] sm:$0xff]  ;;  %v2077_v36 = vld [vmem:[#allocation12 + $0x3b0] sm:$0xff] }
 0x3d8   :  { %2007 = vmatpush.msrb.mxu1 %v1919_v4  ;;  %v2048_v45 = vld [vmem:[#allocation12 + $0x2c8] sm:$0xff] }
 0x3d9   :  { %v1727_v47 = vadd.f32 %v1723_v40, %v1705_v9  ;;  %v1882_v40 = vld [vmem:[#allocation12 + $0x60] sm:$0xff]  ;;  %v1916_v9 = vld [vmem:[#allocation12 + $0x170] sm:$0xff] }
 0x3da   :  { %1949 = vmatpush.msra.mxu2 %v1882_v40  ;;  %1968 = vmatpush.msra.mxu3 %v1916_v9  ;;  %v2045_v40 = vld [vmem:[#allocation12 + $0x2b0] sm:$0xff]  ;;  %v2046_v9 = vld [vmem:[#allocation12 + $0x2b8] sm:$0xff] }
 0x3db   :  { %v1733_v52 = vadd.f32 %v4655_v62, %v1727_v47  ;;  %v1883_v47 = vld [vmem:[#allocation12 + $0x68] sm:$0xff] }
 0x3dc   :  { %1989 = vmatpush.msrb.mxu0 %v1883_v47 }
 0x3dd   :  { %v1737_v22 = vmax.f32 %v1733_v52, 0.0 }
 0x3df   :  { %1809 = vmatmul.f32.gmra.mxu1 %v1737_v22  ;;  %v1917_v22 = vld [vmem:[#allocation12 + $0x178] sm:$0xff] }
 0x3e0   :  { %2008 = vmatpush.msrb.mxu1 %v1917_v22  ;;  %v2075_v22 = vld [vmem:[#allocation12 + $0x3a0] sm:$0xff] }
 0x3f5   :  { %v1780_v60 = vpop.f32.mrf.mxu0 }
 0x3f6   :  { %v1781_v37 = vadd.f32 %v2524_v41, %v1780_v60  ;;  %v1914_v60 = vld [vmem:[#allocation12 + $0x160] sm:$0xff] }
 0x3f7   :  { %1969 = vmatpush.msra.mxu3 %v1914_v60  ;;  %v2043_v60 = vld [vmem:[#allocation12 + $0x2a0] sm:$0xff] }
 0x3f8   :  { %v1783_v15 = vmax.f32 %v1781_v37, 0.0  ;;  %v1881_v37 = vld [vmem:[#allocation12 + $0x58] sm:$0xff] }
 0x3f9   :  { %1990 = vmatpush.msrb.mxu0 %v1881_v37  ;;  %v2044_v37 = vld [vmem:[#allocation12 + $0x2a8] sm:$0xff] }
 0x3fa   :  { %v1819_v57 = vperm.slane %v1783_v15, 0  ;;  %v1818_v20 = vrot.slane %v1783_v15, 1  ;;  %v1915_v15 = vld [vmem:[#allocation12 + $0x168] sm:$0xff] }
 0x3fb   :  { %2009 = vmatpush.msrb.mxu1 %v1915_v15 }
 0x3fc   :  { %v1820_v14 = vperm.slane %v1818_v20, 0  ;;  %v1910_v20 = vld [vmem:[#allocation12 + $0x140] sm:$0xff] }
 0x427   :  { %v1801_v54 = vpop.f32.mrf.mxu1 }
 0x428   :  { %v4775_v44 = vadd.f32 %v2524_v41, %v1801_v54  ;;  %v1878_v54 = vld [vmem:[#allocation12 + $0x40] sm:$0xff] }
 0x42a   :  { %v1813_v63 = vmax.f32 %v4775_v44, 0.0  ;;  %v2084_v44 = vld [vmem:[#allocation12 + $0x3e8] sm:$0xff] }
 0x42c   :  { %v1823_v51 = vmul.f32 %v1819_v57, %v1813_v63 }
 0x42e   :  { %1827 = vadd.xlane.f32.xlu0 %v1823_v51  ;;  %v1879_v51 = vld [vmem:[#allocation12 + $0x48] sm:$0xff] }
 0x42f   :  { %1991 = vmatpush.msrb.mxu0 %v1879_v51 }
 0x434   :  { %v1804_v62 = vpop.f32.mrf.mxu1 }
 0x435   :  { %v4780_v11 = vadd.f32 %v2524_v41, %v1804_v62  ;;  %v1913_v62 = vld [vmem:[#allocation12 + $0x158] sm:$0xff] }
 0x436   :  { %2010 = vmatpush.msrb.mxu1 %v1913_v62 }
 0x437   :  { %v1814_v2 = vmax.f32 %v4780_v11, 0.0 }
 0x439   :  { %v1824_v21 = vmul.f32 %v1819_v57, %v1814_v2  ;;  %v1912_v57 = vld [vmem:[#allocation12 + $0x150] sm:$0xff] }
 0x43a   :  { %1970 = vmatpush.msra.mxu3 %v1912_v57  ;;  %v2074_v57 = vld [vmem:[#allocation12 + $0x398] sm:$0xff] }
 0x43b   :  { %1829 = vadd.xlane.f32.xlu1 %v1824_v21  ;;  %v1876_v21 = vld [vmem:[#allocation12 + $0x30] sm:$0xff] }
 0x43c   :  { %1971 = vmatpush.msra.mxu3 %v1910_v20  ;;  %v2041_v20 = vld [vmem:[#allocation12 + $0x290] sm:$0xff] }
 0x450   :  { %v1807_v1 = vpop.f32.mrf.mxu1 }
 0x451   :  { %v4785_v42 = vadd.f32 %v2524_v41, %v1807_v1  ;;  %v1877_v1 = vld [vmem:[#allocation12 + $0x38] sm:$0xff] }
 0x452   :  { %1992 = vmatpush.msrb.mxu0 %v1877_v1  ;;  %v2042_v1 = vld [vmem:[#allocation12 + $0x298] sm:$0xff] }
 0x453   :  { %v1815_v50 = vmax.f32 %v4785_v42, 0.0  ;;  %v2069_v42 = vld [vmem:[#allocation12 + $0x370] sm:$0xff] }
 0x455   :  { %v1825_v25 = vmul.f32 %v1820_v14, %v1815_v50 }
 0x457   :  { %1831 = vadd.xlane.f32.xlu2 %v1825_v25  ;;  %v1874_v25 = vld [vmem:[#allocation12 + $0x20] sm:$0xff] }
 0x45c   :  { %v1810_v23 = vpop.f32.mrf.mxu1 }
 0x45d   :  { %v4790_v55 = vadd.f32 %v2524_v41, %v1810_v23  ;;  %v1880_v41 = vld [vmem:[#allocation12 + $0x50] sm:$0xff] }
 0x45e   :  { %1950 = vmatpush.msra.mxu2 %v1880_v41  ;;  %v1908_v23 = vld [vmem:[#allocation12 + $0x130] sm:$0xff]  ;;  %v2076_v41 = vld [vmem:[#allocation12 + $0x3a8] sm:$0xff] }
 0x45f   :  { %v1816_v3 = vmax.f32 %v4790_v55, 0.0  ;;  %1972 = vmatpush.msra.mxu3 %v1908_v23  ;;  %v2072_v23 = vld [vmem:[#allocation12 + $0x388] sm:$0xff] }
 0x460   :  { %1951 = vmatpush.msra.mxu2 %v1878_v54  ;;  %v2073_v54 = vld [vmem:[#allocation12 + $0x390] sm:$0xff] }
 0x461   :  { %v1826_v48 = vmul.f32 %v1820_v14, %v1816_v3  ;;  %v1911_v14 = vld [vmem:[#allocation12 + $0x148] sm:$0xff]  ;;  %1973 = vmatpush.msra.mxu3 %v1906_v35  ;;  %v2038_v35 = vld [vmem:[#allocation12 + $0x278] sm:$0xff] }
 0x462   :  { %1952 = vmatpush.msra.mxu2 %v1876_v21  ;;  %2011 = vmatpush.msrb.mxu1 %v1911_v14 }
 0x463   :  { %1833 = vadd.xlane.f32.xlu2 %v1826_v48  ;;  %v1875_v48 = vld [vmem:[#allocation12 + $0x28] sm:$0xff]  ;;  %1974 = vmatpush.msra.mxu3 %v1904_v34  ;;  %v2065_v34 = vld [vmem:[#allocation12 + $0x350] sm:$0xff] }
 0x464   :  { %1953 = vmatpush.msra.mxu2 %v1874_v25  ;;  %1993 = vmatpush.msrb.mxu0 %v1875_v48  ;;  %v2071_v25 = vld [vmem:[#allocation12 + $0x380] sm:$0xff] }
 0x465   :  { %2012 = vmatpush.msrb.mxu1 %v1909_v7  ;;  %1975 = vmatpush.msra.mxu3 %v1902_v8  ;;  %v2039_v7 = vld [vmem:[#allocation12 + $0x280] sm:$0xff]  ;;  %v2064_v8 = vld [vmem:[#allocation12 + $0x348] sm:$0xff] }
 0x466   :  { %1954 = vmatpush.msra.mxu2 %v1872_v58  ;;  %1994 = vmatpush.msrb.mxu0 %v1873_v24  ;;  %v2037_v58 = vld [vmem:[#allocation12 + $0x270] sm:$0xff] }
 0x467   :  { %2013 = vmatpush.msrb.mxu1 %v1907_v13  ;;  %2114 = vmatpush.msrb.mxu3 %v2085_v38  ;;  %v2067_v13 = vld [vmem:[#allocation12 + $0x360] sm:$0xff] }
 0x468   :  { %1955 = vmatpush.msra.mxu2 %v1870_v59  ;;  %1995 = vmatpush.msrb.mxu0 %v1871_v39 }
 0x469   :  { %2014 = vmatpush.msrb.mxu1 %v1905_v43  ;;  %1956 = vmatmul.f32.vlgmr.msra.gmra.mxu2 %v4579_v46 }
 0x46a   :  { %1996 = vmatmul.f32.vlgmr.msrb.gmra.mxu0 %v4579_v46  ;;  %2115 = vmatpush.msrb.mxu3 %v2083_v28  ;;  %v2049_v46 = vld [vmem:[#allocation12 + $0x2d0] sm:$0xff] }
 0x46b   :  { %2015 = vmatpush.msrb.mxu1 %v1903_v12  ;;  %2134 = vmatpush.msra.mxu0 %v2054_v56  ;;  %v2035_v56 = vld [vmem:[#allocation12 + $0x260] sm:$0xff] }
 0x46c   :  { %2116 = vmatpush.msrb.mxu3 %v2081_v0  ;;  %v2036_v0 = vld [vmem:[#allocation12 + $0x268] sm:$0xff] }
 0x46d   :  { %2154 = vmatpush.msra.mxu1 %v2086_v17  ;;  %2135 = vmatpush.msra.mxu0 %v2052_v33  ;;  %v2033_v33 = vld [vmem:[#allocation12 + $0x250] sm:$0xff] }
 0x46e   :  { %2117 = vmatpush.msrb.mxu3 %v2079_v27  ;;  %v2057_v27 = vld [vmem:[#allocation12 + $0x310] sm:$0xff] }
 0x46f   :  { %2155 = vmatpush.msra.mxu1 %v2084_v44  ;;  %2136 = vmatpush.msra.mxu0 %v2050_v18  ;;  %v2031_v18 = vld [vmem:[#allocation12 + $0x240] sm:$0xff] }
 0x470   :  { %2118 = vmatpush.msrb.mxu3 %v2077_v36  ;;  %v2030_v36 = vld [vmem:[#allocation12 + $0x238] sm:$0xff] }
 0x471   :  { %2156 = vmatpush.msra.mxu1 %v2082_v29  ;;  %2137 = vmatpush.msra.mxu0 %v2048_v45  ;;  %v2062_v29 = vld [vmem:[#allocation12 + $0x338] sm:$0xff]  ;;  %v2055_v45 = vld [vmem:[#allocation12 + $0x300] sm:$0xff] }
 0x472   :  { %2119 = vmatpush.msrb.mxu3 %v2075_v22  ;;  %v2024_v22 = vld [vmem:[#allocation12 + $0x208] sm:$0xff] }
 0x473   :  { %2157 = vmatpush.msra.mxu1 %v2080_v30  ;;  %2138 = vmatpush.msra.mxu0 %v2046_v9  ;;  %v2032_v30 = vld [vmem:[#allocation12 + $0x248] sm:$0xff]  ;;  %v2025_v9 = vld [vmem:[#allocation12 + $0x210] sm:$0xff] }
 0x474   :  { %2120 = vmatpush.msrb.mxu3 %v2073_v54  ;;  %v2235_v54 = vld [vmem:[#allocation12 + $0x5d0] sm:$0xff] }
 0x475   :  { %2139 = vmatpush.msra.mxu0 %v2044_v37  ;;  %v2237_v37 = vld [vmem:[#allocation12 + $0x5e0] sm:$0xff] }
 0x476   :  { %2121 = vmatpush.msrb.mxu3 %v2071_v25  ;;  %v2234_v25 = vld [vmem:[#allocation12 + $0x5c8] sm:$0xff] }
 0x477   :  { %2140 = vmatpush.msra.mxu0 %v2042_v1  ;;  %v2206_v1 = vld [vmem:[#allocation12 + $0x4e8] sm:$0xff] }
 0x478   :  { %2122 = vmatpush.msrb.mxu3 %v2069_v42  ;;  %v2202_v42 = vld [vmem:[#allocation12 + $0x4c8] sm:$0xff] }
 0x47a   :  { %2123 = vmatpush.msrb.mxu3 %v2067_v13  ;;  %v1934_v13 = vld [vmem:[%s4835_s7] sm:$0x3] }
 0x47c   :  { %2124 = vmatpush.msrb.mxu3 %v2065_v34  ;;  %v2225_v34 = vld [vmem:[#allocation12 + $0x580] sm:$0xff] }
 0x4a1   :  { %v1828_v52 = vpop.xlane.xlu0 %1827 }
 0x4ae   :  { %v1830_v49 = vpop.xlane.xlu1 %1829 }
 0x4af   :  { %2528 = vtanh.f32 %v1830_v49  ;;  %v2078_v49 = vld [vmem:[#allocation12 + $0x3b8] sm:$0xff] }
 0x4b0   :  { %2530 = vtanh.f32 %v1828_v52  ;;  %2158 = vmatpush.msra.mxu1 %v2078_v49  ;;  %v2056_v49 = vld [vmem:[#allocation12 + $0x308] sm:$0xff] }
 0x4b2   :  { %2159 = vmatpush.msra.mxu1 %v2076_v41  ;;  %v2239_v41 = vld [vmem:[#allocation12 + $0x5f0] sm:$0xff] }
 0x4b4   :  { %2160 = vmatpush.msra.mxu1 %v2074_v57  ;;  %v2207_v57 = vld [vmem:[#allocation12 + $0x4f0] sm:$0xff] }
 0x4b5   :  { %v2529_v26 = vpop.eup %2528 }
 0x4b6   :  { %v2531_v32 = vpop.eup %2530  ;;  %v1840_v53 = vmul.f32 %v2529_v26, %v1814_v2  ;;  %v2710_v2 = vmov 16.0   ;;  %v2040_v26 = vld [vmem:[#allocation12 + $0x288] sm:$0xff]  ;;  %2161 = vmatpush.msra.mxu1 %v2072_v23  ;;  %v2204_v23 = vld [vmem:[#allocation12 + $0x4d8] sm:$0xff] }
 0x4b7   :  { %v1839_v10 = vmul.f32 %v2531_v32, %v1813_v63  ;;  %2532 = vrcp.f32 %v2710_v2  ;;  %v2053_v63 = vld [vmem:[#allocation12 + $0x2f0] sm:$0xff]  ;;  %v2068_v32 = vld [vmem:[#allocation12 + $0x368] sm:$0xff]  ;;  %2141 = vmatpush.msra.mxu0 %v2040_v26  ;;  %v2232_v26 = vld [vmem:[#allocation12 + $0x5b8] sm:$0xff] }
 0x4b8   :  { %2094 = vmatpush.msrb.mxu2 %v2053_v63 }
 0x4b9   :  { %v1843_v11 = vadd.f32 %v1840_v53, %v1839_v10  ;;  %v2066_v53 = vld [vmem:[#allocation12 + $0x358] sm:$0xff]  ;;  %2142 = vmatpush.msra.mxu0 %v2038_v35  ;;  %v2063_v10 = vld [vmem:[#allocation12 + $0x340] sm:$0xff]  ;;  %v2227_v35 = vld [vmem:[#allocation12 + $0x590] sm:$0xff] }
 0x4ba   :  { %2095 = vmatpush.msrb.mxu2 %v2051_v6  ;;  %2125 = vmatpush.msrb.mxu3 %v2063_v10  ;;  %v2061_v6 = vld [vmem:[#allocation12 + $0x330] sm:$0xff]  ;;  %v2224_v10 = vld [vmem:[#allocation12 + $0x578] sm:$0xff] }
 0x4bb   :  { %v1844_v19 = vrot.slane %v1843_v11, 4  ;;  %2143 = vmatpush.msra.mxu0 %v2036_v0  ;;  %v2221_v0 = vld [vmem:[#allocation12 + $0x560] sm:$0xff] }
 0x4bc   :  { %2096 = vmatpush.msrb.mxu2 %v2049_v46  ;;  %2126 = vmatpush.msrb.mxu3 %v2061_v6  ;;  %v2060_v46 = vld [vmem:[#allocation12 + $0x328] sm:$0xff]  ;;  %v2195_v6 = vld [vmem:[#allocation12 + $0x490] sm:$0xff] }
 0x4bd   :  { %v4801_v61 = vpop.eup %2532  ;;  %v1845_v4 = vadd.f32 %v1844_v19, %v1843_v11  ;;  %v2059_v19 = vld [vmem:[#allocation12 + $0x320] sm:$0xff] }
 0x4be   :  { %v1858_v52 = vmul.f32 16.0, %v4801_v61  ;;  %2097 = vmatpush.msrb.mxu2 %v2047_v5  ;;  %vm1862_vm7 = vweird.f32 %v4801_v61  ;;  %2127 = vmatpush.msrb.mxu3 %v2059_v19  ;;  %v2029_v5 = vld [vmem:[#allocation12 + $0x230] sm:$0xff]  ;;  %v2193_v19 = vld [vmem:[#allocation12 + $0x480] sm:$0xff] }
 0x4bf   :  { %v1846_v21 = vrot.slane %v1845_v4, 2 }
 0x4c0   :  { %2098 = vmatpush.msrb.mxu2 %v2045_v40  ;;  %v1859_v14 = vsub.f32 1.0, %v1858_v52  ;;  %2128 = vmatpush.msrb.mxu3 %v2057_v27  ;;  %v2028_v40 = vld [vmem:[#allocation12 + $0x228] sm:$0xff]  ;;  %v2023_v52 = vld [vmem:[#allocation12 + $0x200] sm:$0xff]  ;;  %v2191_v27 = vld [vmem:[#allocation12 + $0x470] sm:$0xff] }
 0x4c2   :  { %2099 = vmatpush.msrb.mxu2 %v2043_v60  ;;  %v1860_v24 = vmul.f32 %v4801_v61, %v1859_v14  ;;  %2129 = vmatpush.msrb.mxu3 %v2055_v45  ;;  %v2240_v60 = vld [vmem:[#allocation12 + $0x5f8] sm:$0xff]  ;;  %v2203_v14 = vld [vmem:[#allocation12 + $0x4d0] sm:$0xff]  ;;  %v2189_v45 = vld [vmem:[#allocation12 + $0x460] sm:$0xff] }
 0x4c4   :  { %2100 = vmatpush.msrb.mxu2 %v2041_v20  ;;  %v1861_v43 = vadd.f32 %v4801_v61, %v1860_v24  ;;  %v2233_v20 = vld [vmem:[#allocation12 + $0x5c0] sm:$0xff] }
 0x4c5   :  { %v2197_v24 = vld [vmem:[#allocation12 + $0x4a0] sm:$0xff] }
 0x4c6   :  { %2101 = vmatpush.msrb.mxu2 %v2039_v7  ;;  %v1863_v11 = vsel %vm1862_vm7, %v4801_v61, %v1861_v43  ;;  %v2058_v61 = vld [vmem:[#allocation12 + $0x318] sm:$0xff]  ;;  %v2201_v7 = vld [vmem:[#allocation12 + $0x4c0] sm:$0xff] }
 0x4c8   :  { %2102 = vmatpush.msrb.mxu2 %v2037_v58  ;;  %v2200_v58 = vld [vmem:[#allocation12 + $0x4b8] sm:$0xff] }
 0x4ca   :  { %v1832_v16 = vpop.xlane.xlu2 %1831  ;;  %2103 = vmatpush.msrb.mxu2 %v2035_v56 }
 0x4cb   :  { %2534 = vtanh.f32 %v1832_v16 }
 0x4cc   :  { %2104 = vmatpush.msrb.mxu2 %v2033_v33  ;;  %v2222_v33 = vld [vmem:[#allocation12 + $0x568] sm:$0xff] }
 0x4ce   :  { %2105 = vmatpush.msrb.mxu2 %v2031_v18  ;;  %v2220_v18 = vld [vmem:[#allocation12 + $0x558] sm:$0xff] }
 0x4d0   :  { %2106 = vmatpush.msrb.mxu2 %v2029_v5  ;;  %v2218_v5 = vld [vmem:[#allocation12 + $0x548] sm:$0xff] }
 0x4d1   :  { %v2535_v47 = vpop.eup %2534 }
 0x4d2   :  { %v1841_v51 = vmul.f32 %v2535_v47, %v1815_v50  ;;  %v2070_v50 = vld [vmem:[#allocation12 + $0x378] sm:$0xff] }
 0x4d3   :  { %2162 = vmatpush.msra.mxu1 %v2070_v50  ;;  %v2026_v47 = vld [vmem:[#allocation12 + $0x218] sm:$0xff]  ;;  %v2229_v50 = vld [vmem:[#allocation12 + $0x5a0] sm:$0xff] }
 0x4d5   :  { %2163 = vmatpush.msra.mxu1 %v2068_v32  ;;  %v2228_v32 = vld [vmem:[#allocation12 + $0x598] sm:$0xff] }
 0x4d6   :  { %v1834_v31 = vpop.xlane.xlu2 %1833 }
 0x4d7   :  { %2536 = vtanh.f32 %v1834_v31  ;;  %2164 = vmatpush.msra.mxu1 %v2066_v53  ;;  %v2034_v31 = vld [vmem:[#allocation12 + $0x258] sm:$0xff]  ;;  %v2226_v53 = vld [vmem:[#allocation12 + $0x588] sm:$0xff] }
 0x4d8   :  { %2144 = vmatpush.msra.mxu0 %v2034_v31  ;;  %v2219_v31 = vld [vmem:[#allocation12 + $0x550] sm:$0xff] }
 0x4d9   :  { %2165 = vmatpush.msra.mxu1 %v2064_v8 }
 0x4da   :  { %2145 = vmatpush.msra.mxu0 %v2032_v30  ;;  %v2217_v30 = vld [vmem:[#allocation12 + $0x540] sm:$0xff] }
 0x4db   :  { %2166 = vmatpush.msra.mxu1 %v2062_v29  ;;  %v2196_v29 = vld [vmem:[#allocation12 + $0x498] sm:$0xff] }
 0x4dc   :  { %2146 = vmatpush.msra.mxu0 %v2030_v36  ;;  %v2215_v36 = vld [vmem:[#allocation12 + $0x530] sm:$0xff] }
 0x4dd   :  { %v2537_v15 = vpop.eup %2536  ;;  %2167 = vmatpush.msra.mxu1 %v2060_v46  ;;  %v2194_v46 = vld [vmem:[#allocation12 + $0x488] sm:$0xff] }
 0x4de   :  { %v1842_v62 = vmul.f32 %v2537_v15, %v1816_v3  ;;  %v1847_v3 = vadd.f32 %v1846_v21, %v1845_v4  ;;  %v2027_v4 = vld [vmem:[#allocation12 + $0x220] sm:$0xff]  ;;  %2147 = vmatpush.msra.mxu0 %v2028_v40  ;;  %v2238_v15 = vld [vmem:[#allocation12 + $0x5e8] sm:$0xff]  ;;  %v2187_v40 = vld [vmem:[#allocation12 + $0x450] sm:$0xff] }
 0x4df   :  { %2168 = vmatpush.msra.mxu1 %v2058_v61  ;;  %2107 = vmatpush.msrb.mxu2 %v2027_v4  ;;  %v2205_v21 = vld [vmem:[#allocation12 + $0x4e0] sm:$0xff]  ;;  %v2192_v61 = vld [vmem:[#allocation12 + $0x478] sm:$0xff] }
 0x4e0   :  { %v1850_v48 = vadd.f32 %v1842_v62, %v1841_v51  ;;  %v1848_v16 = vrot.slane %v1847_v3, 1  ;;  %2148 = vmatpush.msra.mxu0 %v2026_v47  ;;  %v2208_v51 = vld [vmem:[#allocation12 + $0x4f8] sm:$0xff] }
 0x4e1   :  { %2169 = vmatpush.msra.mxu1 %v2056_v49  ;;  %2108 = vmatpush.msrb.mxu2 %v2025_v9  ;;  %v2236_v62 = vld [vmem:[#allocation12 + $0x5d8] sm:$0xff]  ;;  %v2190_v49 = vld [vmem:[#allocation12 + $0x468] sm:$0xff]  ;;  %v2213_v9 = vld [vmem:[#allocation12 + $0x520] sm:$0xff] }
 0x4e2   :  { %v1851_v55 = vrot.slane %v1850_v48, 4  ;;  %v1849_v38 = vadd.f32 %v1848_v16, %v1847_v3  ;;  %2149 = vmatpush.msra.mxu0 %v2024_v22  ;;  %v2230_v3 = vld [vmem:[#allocation12 + $0x5a8] sm:$0xff]  ;;  %v1937_v16 = vperm.slane %v1934_v13, 1  ;;  %v2216_v4 = vld [vmem:[#allocation12 + $0x538] sm:$0xff]  ;;  %v2185_v22 = vld [vmem:[#allocation12 + $0x440] sm:$0xff] }
 0x4e3   :  { %2109 = vmatpush.msrb.mxu2 %v2023_v52  ;;  %v2188_v47 = vld [vmem:[#allocation12 + $0x458] sm:$0xff]  ;;  %v2214_v52 = vld [vmem:[#allocation12 + $0x528] sm:$0xff] }
 0x4e4   :  { %v1852_v59 = vadd.f32 %v1851_v55, %v1850_v48  ;;  %v1864_v28 = vmul.f32 %v1863_v11, %v1849_v38  ;;  %2288 = vmatpush.msrb.mxu0 %v2208_v51  ;;  %v2231_v48 = vld [vmem:[#allocation12 + $0x5b0] sm:$0xff]  ;;  %v2210_v51 = vld [vmem:[#allocation12 + $0x508] sm:$0xff] }
 0x4e5   :  { %2248 = vmatpush.msra.mxu2 %v2207_v57  ;;  %v2199_v55 = vld [vmem:[#allocation12 + $0x4b0] sm:$0xff]  ;;  %v2184_v57 = vld [vmem:[#allocation12 + $0x438] sm:$0xff] }
 0x4e6   :  { %v1853_v39 = vrot.slane %v1852_v59, 2  ;;  %2289 = vmatpush.msrb.mxu0 %v2206_v1  ;;  %v2180_v1 = vld [vmem:[#allocation12 + $0x418] sm:$0xff] }
 0x4e7   :  { %2249 = vmatpush.msra.mxu2 %v2205_v21  ;;  %v1997_v43 = vpop.f32.mrf.mxu0  ;;  %v2182_v21 = vld [vmem:[#allocation12 + $0x428] sm:$0xff] }
 0x4e8   :  { %v1854_v12 = vadd.f32 %v1853_v39, %v1852_v59  ;;  %2290 = vmatpush.msrb.mxu0 %v2204_v23  ;;  %v2198_v59 = vld [vmem:[#allocation12 + $0x4a8] sm:$0xff]  ;;  %v2223_v39 = vld [vmem:[#allocation12 + $0x570] sm:$0xff]  ;;  %v1998_v8 = vadd.f32 %v1997_v43, %v1937_v16  ;;  %v2361_v23 = vld [vmem:[#allocation13 + $0xf8] sm:$0xff] }
 0x4e9   :  { %2250 = vmatpush.msra.mxu2 %v2203_v14  ;;  %v2177_v14 = vld [vmem:[#allocation12 + $0x400] sm:$0xff] }
 0x4ea   :  { %v1855_v17 = vrot.slane %v1854_v12, 1  ;;  %2291 = vmatpush.msrb.mxu0 %v2202_v42  ;;  %v2359_v42 = vld [vmem:[#allocation13 + $0xe8] sm:$0xff] }
 0x4eb   :  { %2251 = vmatpush.msra.mxu2 %v2201_v7  ;;  %v2345_v7 = vld [vmem:[#allocation13 + $0x78] sm:$0xff] }
 0x4ec   :  { %v1856_v2 = vadd.f32 %v1855_v17, %v1854_v12  ;;  %2292 = vmatpush.msrb.mxu0 %v2200_v58  ;;  %v1936_v12 = vperm.slane %v1934_v13, 0  ;;  %v1957_v17 = vpop.f32.mrf.mxu2  ;;  %v2357_v58 = vld [vmem:[#allocation13 + $0xd8] sm:$0xff]  ;;  %v2340_v13 = vld [vmem:[#allocation13 + $0x50] sm:$0xff] }
 0x4ed   :  { %2252 = vmatpush.msra.mxu2 %v2199_v55  ;;  %v2358_v55 = vld [vmem:[#allocation13 + $0xe0] sm:$0xff] }
 0x4ee   :  { %v1865_v44 = vmul.f32 %v1863_v11, %v1856_v2  ;;  %2293 = vmatpush.msrb.mxu0 %v2198_v59  ;;  %v2354_v59 = vld [vmem:[#allocation13 + $0xc0] sm:$0xff] }
 0x4ef   :  { %2253 = vmatpush.msra.mxu2 %v2197_v24  ;;  %v2356_v24 = vld [vmem:[#allocation13 + $0xd0] sm:$0xff] }
 0x4f0   :  { %v1868_v63 = vsel %vm1760_vm6, %v1865_v44, %v1864_v28  ;;  %v1958_v28 = vadd.f32 %v1957_v17, %v1936_v12  ;;  %2294 = vmatpush.msrb.mxu0 %v2196_v29  ;;  %v2337_v29 = vld [vmem:[#allocation13 + $0x38] sm:$0xff] }
 0x4f1   :  { %1976 = vmatmul.f32.vlgmr.msra.gmra.mxu3 %v1868_v63  ;;  %2016 = vmatmul.f32.vlgmr.msrb.gmra.mxu1 %v1868_v63 }
 0x4f2   :  { %2268 = vmatpush.msra.mxu3 %v2239_v41  ;;  %2308 = vmatpush.msrb.mxu1 %v2240_v60  ;;  %v2211_v41 = vld [vmem:[#allocation12 + $0x510] sm:$0xff]  ;;  %v2186_v60 = vld [vmem:[#allocation12 + $0x448] sm:$0xff] }
 0x4f3   :  { %2254 = vmatpush.msra.mxu2 %v2195_v6  ;;  %2295 = vmatpush.msrb.mxu0 %v2194_v46  ;;  %v2338_v6 = vld [vmem:[#allocation13 + $0x40] sm:$0xff]  ;;  %v2335_v46 = vld [vmem:[#allocation13 + $0x28] sm:$0xff] }
 0x4f4   :  { %2269 = vmatpush.msra.mxu3 %v2237_v37  ;;  %2309 = vmatpush.msrb.mxu1 %v2238_v15  ;;  %v2212_v37 = vld [vmem:[#allocation12 + $0x518] sm:$0xff]  ;;  %v2183_v15 = vld [vmem:[#allocation12 + $0x430] sm:$0xff] }
 0x4f5   :  { %2255 = vmatpush.msra.mxu2 %v2193_v19  ;;  %2296 = vmatpush.msrb.mxu0 %v2192_v61  ;;  %v2336_v19 = vld [vmem:[#allocation13 + $0x30] sm:$0xff]  ;;  %v2333_v61 = vld [vmem:[#allocation13 + $0x18] sm:$0xff] }
 0x4f6   :  { %2270 = vmatpush.msra.mxu3 %v2235_v54  ;;  %2310 = vmatpush.msrb.mxu1 %v2236_v62  ;;  %v2209_v54 = vld [vmem:[#allocation12 + $0x500] sm:$0xff] }
 0x4f7   :  { %2256 = vmatpush.msra.mxu2 %v2191_v27  ;;  %2297 = vmatpush.msrb.mxu0 %v2190_v49  ;;  %v2181_v62 = vld [vmem:[#allocation12 + $0x420] sm:$0xff] }
 0x4f8   :  { %2271 = vmatpush.msra.mxu3 %v2233_v20  ;;  %2311 = vmatpush.msrb.mxu1 %v2234_v25  ;;  %v2179_v20 = vld [vmem:[#allocation12 + $0x410] sm:$0xff]  ;;  %v2178_v25 = vld [vmem:[#allocation12 + $0x408] sm:$0xff]  ;;  %v2334_v27 = vld [vmem:[#allocation13 + $0x20] sm:$0xff] }
 0x4f9   :  { %2257 = vmatpush.msra.mxu2 %v2189_v45  ;;  %2298 = vmatpush.msrb.mxu0 %v2188_v47  ;;  %v2332_v45 = vld [vmem:[#allocation13 + $0x10] sm:$0xff]  ;;  %v2330_v49 = vld [vmem:[#allocation13] sm:$0xff] }
 0x4fa   :  { %2272 = vmatpush.msra.mxu3 %v2231_v48  ;;  %2312 = vmatpush.msrb.mxu1 %v2232_v26  ;;  %v2360_v48 = vld [vmem:[#allocation13 + $0xf0] sm:$0xff] }
 0x4fb   :  { %2258 = vmatpush.msra.mxu2 %v2187_v40  ;;  %2299 = vmatpush.msrb.mxu0 %v2186_v60  ;;  %v2344_v26 = vld [vmem:[#allocation13 + $0x70] sm:$0xff] }
 0x4fc   :  { %2273 = vmatpush.msra.mxu3 %v2229_v50  ;;  %2313 = vmatpush.msrb.mxu1 %v2230_v3  ;;  %v2343_v50 = vld [vmem:[#allocation13 + $0x68] sm:$0xff]  ;;  %v2342_v3 = vld [vmem:[#allocation13 + $0x60] sm:$0xff] }
 0x4fd   :  { %2259 = vmatpush.msra.mxu2 %v2185_v22  ;;  %2300 = vmatpush.msrb.mxu0 %v2184_v57 }
 0x4fe   :  { %2274 = vmatpush.msra.mxu3 %v2227_v35  ;;  %2314 = vmatpush.msrb.mxu1 %v2228_v32  ;;  %v2341_v35 = vld [vmem:[#allocation13 + $0x58] sm:$0xff]  ;;  %v2355_v32 = vld [vmem:[#allocation13 + $0xc8] sm:$0xff] }
 0x4ff   :  { %2260 = vmatpush.msra.mxu2 %v2183_v15  ;;  %2301 = vmatpush.msrb.mxu0 %v2182_v21 }
 0x500   :  { %2275 = vmatpush.msra.mxu3 %v2225_v34  ;;  %2315 = vmatpush.msrb.mxu1 %v2226_v53  ;;  %v2504_v34 = vld [vmem:[%s4835_s7 + $0x2] sm:$0x3]  ;;  %v2353_v53 = vld [vmem:[#allocation13 + $0xb8] sm:$0xff] }
 0x501   :  { %2261 = vmatpush.msra.mxu2 %v2181_v62  ;;  %2302 = vmatpush.msrb.mxu0 %v2180_v1  ;;  %v2091_v16 = vperm.slane %v2504_v34, 1  ;;  %v2090_v12 = vperm.slane %v2504_v34, 0  ;;  %v2525_v62 = vld [vmem:[%s4837_s9] ss:$0 sm:$0xff] }
 0x502   :  { %2276 = vmatpush.msra.mxu3 %v2223_v39  ;;  %2316 = vmatpush.msrb.mxu1 %v2224_v10 }
 0x503   :  { %2262 = vmatpush.msra.mxu2 %v2179_v20  ;;  %2303 = vmatpush.msrb.mxu0 %v2178_v25 }
 0x504   :  { %2277 = vmatpush.msra.mxu3 %v2221_v0  ;;  %2317 = vmatpush.msrb.mxu1 %v2222_v33  ;;  %v2351_v0 = vld [vmem:[#allocation13 + $0xa8] sm:$0xff]  ;;  %v2350_v33 = vld [vmem:[#allocation13 + $0xa0] sm:$0xff] }
 0x505   :  { %2263 = vmatpush.msra.mxu2 %v2177_v14 }
 0x506   :  { %2278 = vmatpush.msra.mxu3 %v2219_v31  ;;  %2318 = vmatpush.msrb.mxu1 %v2220_v18  ;;  %v2349_v31 = vld [vmem:[#allocation13 + $0x98] sm:$0xff]  ;;  %v2348_v18 = vld [vmem:[#allocation13 + $0x90] sm:$0xff] }
 0x508   :  { %2279 = vmatpush.msra.mxu3 %v2217_v30  ;;  %2319 = vmatpush.msrb.mxu1 %v2218_v5  ;;  %v2347_v30 = vld [vmem:[#allocation13 + $0x88] sm:$0xff]  ;;  %v2346_v5 = vld [vmem:[#allocation13 + $0x80] sm:$0xff] }
 0x50a   :  { %2280 = vmatpush.msra.mxu3 %v2215_v36  ;;  %2320 = vmatpush.msrb.mxu1 %v2216_v4  ;;  %v2331_v36 = vld [vmem:[#allocation13 + $0x8] sm:$0xff]  ;;  %v2505_v4 = vld [vmem:[%s4835_s7 + $0x4] sm:$0x3]  ;;  %s2711_s7 = smov [#allocation15]  }
 0x50b   :  { %v2245_v40 = vperm.slane %v2505_v4, 1  ;;  %s2412_s19 = sshll.u32 %s2711_s7, 4  ;;  %s2413_s19 = int_to_ptr.vmem [resolvable:$true] %s2412_s19 }
 0x50c   :  { %2281 = vmatpush.msra.mxu3 %v2213_v9  ;;  %2321 = vmatpush.msrb.mxu1 %v2214_v52 }
 0x50e   :  { %2282 = vmatpush.msra.mxu3 %v2211_v41  ;;  %2322 = vmatpush.msrb.mxu1 %v2212_v37  ;;  %v2244_v41 = vperm.slane %v2505_v4, 0 }
 0x510   :  { %2283 = vmatpush.msra.mxu3 %v2209_v54  ;;  %2323 = vmatpush.msrb.mxu1 %v2210_v51 }
 0x56e   :  { %v2017_v38 = vpop.f32.mrf.mxu1 }
 0x56f   :  { %v2018_v11 = vadd.f32 %v2017_v38, %v1998_v8 }
 0x571   :  { %v2021_v2 = vmax.f32 %v2018_v11, 0.0 }
 0x573   :  { %2130 = vmatmul.f32.vlgmr.msrb.gmra.mxu3 %v2021_v2  ;;  %2170 = vmatmul.f32.vlgmr.msra.gmra.mxu1 %v2021_v2 }
 0x574   :  { %v1977_v44 = vpop.f32.mrf.mxu3  ;;  %2386 = vmatpush.msrb.mxu3 %v2361_v23 }
 0x575   :  { %v1978_v63 = vadd.f32 %v1977_v44, %v1958_v28 }
 0x576   :  { %2387 = vmatpush.msrb.mxu3 %v2360_v48 }
 0x577   :  { %v2020_v56 = vmax.f32 %v1978_v63, 0.0  ;;  %v2339_v63 = vld [vmem:[#allocation13 + $0x48] sm:$0xff] }
 0x578   :  { %2388 = vmatpush.msrb.mxu3 %v2359_v42 }
 0x579   :  { %2110 = vmatmul.f32.vlgmr.msrb.gmra.mxu2 %v2020_v56  ;;  %2150 = vmatmul.f32.vlgmr.msra.gmra.mxu0 %v2020_v56  ;;  %v2352_v56 = vld [vmem:[#allocation13 + $0xb0] sm:$0xff] }
 0x57a   :  { %2366 = vmatpush.msrb.mxu2 %v2345_v7  ;;  %2389 = vmatpush.msrb.mxu3 %v2358_v55 }
 0x57c   :  { %2367 = vmatpush.msrb.mxu2 %v2344_v26  ;;  %2390 = vmatpush.msrb.mxu3 %v2357_v58 }
 0x57e   :  { %2368 = vmatpush.msrb.mxu2 %v2343_v50  ;;  %2391 = vmatpush.msrb.mxu3 %v2356_v24 }
 0x580   :  { %2369 = vmatpush.msrb.mxu2 %v2342_v3  ;;  %2392 = vmatpush.msrb.mxu3 %v2355_v32 }
 0x582   :  { %2370 = vmatpush.msrb.mxu2 %v2341_v35  ;;  %2393 = vmatpush.msrb.mxu3 %v2354_v59 }
 0x584   :  { %2371 = vmatpush.msrb.mxu2 %v2340_v13  ;;  %2394 = vmatpush.msrb.mxu3 %v2353_v53 }
 0x586   :  { %2372 = vmatpush.msrb.mxu2 %v2339_v63  ;;  %2395 = vmatpush.msrb.mxu3 %v2352_v56 }
 0x588   :  { %2373 = vmatpush.msrb.mxu2 %v2338_v6  ;;  %2396 = vmatpush.msrb.mxu3 %v2351_v0 }
 0x58a   :  { %2374 = vmatpush.msrb.mxu2 %v2337_v29  ;;  %2397 = vmatpush.msrb.mxu3 %v2350_v33 }
 0x58c   :  { %2375 = vmatpush.msrb.mxu2 %v2336_v19  ;;  %2398 = vmatpush.msrb.mxu3 %v2349_v31 }
 0x58e   :  { %2376 = vmatpush.msrb.mxu2 %v2335_v46  ;;  %2399 = vmatpush.msrb.mxu3 %v2348_v18 }
 0x590   :  { %2377 = vmatpush.msrb.mxu2 %v2334_v27  ;;  %2400 = vmatpush.msrb.mxu3 %v2347_v30 }
 0x592   :  { %2378 = vmatpush.msrb.mxu2 %v2333_v61  ;;  %2401 = vmatpush.msrb.mxu3 %v2346_v5 }
 0x594   :  { %2379 = vmatpush.msrb.mxu2 %v2332_v45 }
 0x596   :  { %2380 = vmatpush.msrb.mxu2 %v2331_v36 }
 0x598   :  { %2381 = vmatpush.msrb.mxu2 %v2330_v49 }
 0x5f0   :  { %v2171_v10 = vpop.f32.mrf.mxu1 }
 0x5f6   :  { %v2151_v39 = vpop.f32.mrf.mxu0  ;;  %v2131_v2 = vpop.f32.mrf.mxu3 }
 0x5f7   :  { %v2152_v43 = vadd.f32 %v2151_v39, %v2091_v16 }
 0x5f9   :  { %v2172_v8 = vadd.f32 %v2171_v10, %v2152_v43 }
 0x5fb   :  { %v2175_v38 = vmax.f32 %v2172_v8, 0.0 }
 0x5fc   :  { %v2111_v17 = vpop.f32.mrf.mxu2 }
 0x5fd   :  { %v2112_v11 = vadd.f32 %v2111_v17, %v2090_v12  ;;  %2284 = vmatmul.f32.vlgmr.msra.gmra.mxu3 %v2175_v38  ;;  %2324 = vmatmul.f32.vlgmr.msrb.gmra.mxu1 %v2175_v38 }
 0x5ff   :  { %v2132_v28 = vadd.f32 %v2131_v2, %v2112_v11 }
 0x601   :  { %v2174_v44 = vmax.f32 %v2132_v28, 0.0 }
 0x603   :  { %2264 = vmatmul.f32.vlgmr.msra.gmra.mxu2 %v2174_v44  ;;  %2304 = vmatmul.f32.vlgmr.msrb.gmra.mxu0 %v2174_v44 }
 0x67a   :  { %v2325_v52 = vpop.f32.mrf.mxu1 }
 0x680   :  { %v2305_v9 = vpop.f32.mrf.mxu0  ;;  %v2285_v54 = vpop.f32.mrf.mxu3 }
 0x681   :  { %v2306_v47 = vadd.f32 %v2305_v9, %v2245_v40 }
 0x683   :  { %v2326_v22 = vadd.f32 %v2325_v52, %v2306_v47 }
 0x685   :  { %v2329_v60 = vmax.f32 %v2326_v22, 0.0 }
 0x686   :  { %v2265_v37 = vpop.f32.mrf.mxu2 }
 0x687   :  { %v2266_v15 = vadd.f32 %v2265_v37, %v2244_v41  ;;  %2402 = vmatmul.f32.vlgmr.msrb.gmra.mxu3 %v2329_v60 }
 0x689   :  { %v2286_v57 = vadd.f32 %v2285_v54, %v2266_v15 }
 0x68b   :  { %v2328_v51 = vmax.f32 %v2286_v57, 0.0 }
 0x68d   :  { %2382 = vmatmul.f32.vlgmr.msrb.gmra.mxu2 %v2328_v51 }
 0x70a   :  { %v2403_v1 = vpop.f32.mrf.mxu3 }
 0x710   :  { %v2383_v21 = vpop.f32.mrf.mxu2 }
 0x711   :  { %v2384_v20 = vadd.f32 %v2525_v62, %v2383_v21 }
 0x713   :  { %v2404_v14 = vadd.f32 %v2403_v1, %v2384_v20 }
 0x715   :  { %2406 = vst [vmem:[#allocation15] sm:$0x3] %v2404_v14 }
 0x716   :  { %2417 = dma.vmem_to_hbm [thread:$0]  %s2413_s19, 32, %s2415_s24, [#allocation5]  }
 0x717   :  { %2692 = dma.done.wait [#allocation5], 32  }
 0x718   :  { %2693 = vsyncadd [#allocation5], 4294967264 }
 0x719   :  { %2422 = vsyncpa [#allocation4], 1 }
 0x71a   :  { %2423 = vsyncpa [#allocation11], 1 }
 0x71b   :  { %2424 = vsyncpa [#allocation14], 1 }
 0x71c   :  { %2425 = vsyncpa [#allocation5], 1 }
 0x71d   :  { %2426 = vsyncpa [#allocation6], 1 }
 0x71e   :  { %2427 = vsyncpa [#allocation8], 1 }

</bundles_post_ra>
